<compile_context>
chip_gen: v7x
topology: tpu7x:2x2x1
jax: 0.10.0
libtpu: 0.0.40
codegen_flags: <defaults>
</compile_context>

<pallas_src>
import math

import jax
import jax.numpy as jnp
from jax.experimental import pallas as pl
from jax.experimental.pallas import tpu as pltpu

# ---------------- model hyper-parameters (small, synthetic) ----------------
D_MODEL   = 32
D_FF      = 64
N_HEADS   = 4
D_HEAD    = D_MODEL // N_HEADS
N_LAYERS  = 2
SRC_VOCAB = 11
TGT_VOCAB = 11
V_PAD     = 16                       # vocab padded to a sublane multiple
EPS       = 1e-6
MAX_LEN   = 64
NEG_INF   = -1e9
MASK_SCALE = 1e9                     # additive mask: (mask - 1) * MASK_SCALE

# LayerNorm slot indices: enc: 2 per layer + final; dec: 3 per layer + final.
N_LN = 5 * N_LAYERS + 2

# packed-weight ordering (11 arrays total)
_WEIGHT_NAMES = ["emb", "pe", "wqkv", "bqkv", "wo", "bo",
                 "w1", "b1", "w2", "b2", "ln"]


# ------------------------------ fused kernel ---------------------------------

def _fused_kernel(src_tok_ref, tgt_tok_ref, src_mask_ref, tgt_mask_ref,
                  emb_ref, pe_ref, wqkv_ref, bqkv_ref, wo_ref, bo_ref,
                  w1_ref, b1_ref, w2_ref, b2_ref, ln_ref, out_ref):
    Bp, Ss, _ = src_tok_ref.shape
    _, St, _ = tgt_tok_ref.shape
    scale = 1.0 / math.sqrt(D_HEAD)

    # ---- additive masks, hoisted: computed once, reused by every layer/head ----
    # src mask: [1, Ss] per batch (broadcasts over all query rows & heads).
    src_addm = [(src_mask_ref[bi] - 1.0) * MASK_SCALE for bi in range(Bp)]
    # tgt (causal) mask: tiled over heads along sublanes -> [H*St, St] per batch.
    tgt_addm = [jnp.concatenate(
                    [(tgt_mask_ref[bi] - 1.0) * MASK_SCALE] * N_HEADS, axis=0)
                for bi in range(Bp)]

    # ------------------------------ helpers ----------------------------------
    def layer_norm(x, idx):
        g = ln_ref[0, idx]                       # [1, D]
        b = ln_ref[1, idx]
        m = jnp.mean(x, axis=-1, keepdims=True)
        v = jnp.mean(jnp.square(x - m), axis=-1, keepdims=True)
        return g * (x - m) * jax.lax.rsqrt(v + EPS) + b

    def softmax(s):
        s = s - jnp.max(s, axis=-1, keepdims=True)
        p = jnp.exp(s)
        return p * pl.reciprocal(jnp.sum(p, axis=-1, keepdims=True), approx=True)

    def mha(xq, xkv, addm, widx, l, Sq, Sk):
        # xq: [Bp*Sq, D]   xkv: [Bp*Sk, D]   addm[bi]: broadcastable to [H*Sq, Sk]
        w = wqkv_ref[widx, l]                    # [D, 3D]
        bqkv = bqkv_ref[widx, l]                 # [1, 3D]
        if xq is xkv:
            # one wide QKV matmul for self-attention
            qkv = jnp.dot(xq, w, preferred_element_type=jnp.float32) + bqkv
            q = qkv[:, :D_MODEL]
            k = qkv[:, D_MODEL:2 * D_MODEL]
            v = qkv[:, 2 * D_MODEL:]
        else:
            # cross-attention: q from decoder, fused KV from memory
            q = jnp.dot(xq, w[:, :D_MODEL],
                        preferred_element_type=jnp.float32) + bqkv[:, :D_MODEL]
            kv = jnp.dot(xkv, w[:, D_MODEL:],
                         preferred_element_type=jnp.float32) + bqkv[:, D_MODEL:]
            k = kv[:, :D_MODEL]
            v = kv[:, D_MODEL:]

        ctx_rows = []
        for bi in range(Bp):
            qb = q[bi * Sq:(bi + 1) * Sq]
            kb = k[bi * Sk:(bi + 1) * Sk]
            vb = v[bi * Sk:(bi + 1) * Sk]
            # per-head scores stacked along sublanes -> one [H*Sq, Sk] tile
            s = jnp.concatenate(
                [jax.lax.dot_general(qb[:, h * D_HEAD:(h + 1) * D_HEAD],
                                     kb[:, h * D_HEAD:(h + 1) * D_HEAD],
                                     (((1,), (1,)), ((), ())),
                                     preferred_element_type=jnp.float32)
                 for h in range(N_HEADS)], axis=0)
            p = softmax(s * scale + addm[bi])    # mask/softmax once per MHA
            ctx = jnp.concatenate(
                [jnp.dot(p[h * Sq:(h + 1) * Sq],
                         vb[:, h * D_HEAD:(h + 1) * D_HEAD],
                         preferred_element_type=jnp.float32)
                 for h in range(N_HEADS)], axis=1)        # [Sq, D]
            ctx_rows.append(ctx)
        ctx_all = ctx_rows[0] if Bp == 1 else jnp.concatenate(ctx_rows, axis=0)
        # single output projection for the whole batch
        return jnp.dot(ctx_all, wo_ref[widx, l],
                       preferred_element_type=jnp.float32) + bo_ref[widx, l]

    def ffn(x, sidx, l):
        h = jnp.maximum(
            jnp.dot(x, w1_ref[sidx, l], preferred_element_type=jnp.float32)
            + b1_ref[sidx, l], 0.0)
        return jnp.dot(h, w2_ref[sidx, l],
                       preferred_element_type=jnp.float32) + b2_ref[sidx, l]

    def embed(tok_ref, table, S):
        # one-hot gather (padded vocab, K=16 sublane-aligned) + PE, whole batch
        rows = []
        for bi in range(Bp):
            tok = tok_ref[bi]                    # [S, 1] int32
            rows.append(
                (tok == jax.lax.broadcasted_iota(jnp.int32, (S, V_PAD), 1)
                 ).astype(jnp.float32))
        onehot = rows[0] if Bp == 1 else jnp.concatenate(rows, axis=0)
        x = jnp.dot(onehot, table,
                    preferred_element_type=jnp.float32) * math.sqrt(D_MODEL)
        pe = pe_ref[...][:S]
        pe_b = pe if Bp == 1 else jnp.concatenate([pe] * Bp, axis=0)
        return x + pe_b                          # [Bp*S, D]

    # ------------------------------ forward -----------------------------------
    x = embed(src_tok_ref, emb_ref[0], Ss)       # [Bp*Ss, D]
    y = embed(tgt_tok_ref, emb_ref[1], St)       # [Bp*St, D]

    # encoder stack (pre-norm)
    for l in range(N_LAYERS):
        h = layer_norm(x, 2 * l)
        x = x + mha(h, h, src_addm, 0, l, Ss, Ss)
        h = layer_norm(x, 2 * l + 1)
        x = x + ffn(h, 0, l)
    memory = layer_norm(x, 2 * N_LAYERS)

    # decoder stack (pre-norm)
    dec0 = 2 * N_LAYERS + 1
    for l in range(N_LAYERS):
        h = layer_norm(y, dec0 + 3 * l)
        y = y + mha(h, h, tgt_addm, 1, l, St, St)
        h = layer_norm(y, dec0 + 3 * l + 1)
        y = y + mha(h, memory, src_addm, 2, l, St, Ss)
        h = layer_norm(y, dec0 + 3 * l + 2)
        y = y + ffn(h, 1, l)
    y_fin = layer_norm(y, dec0 + 3 * N_LAYERS)

    for bi in range(Bp):
        out_ref[bi] = y_fin[bi * St:(bi + 1) * St]


# ------------------------------- wrapper -------------------------------------

def encoder_decoder_forward(params, src, tgt, src_mask, tgt_mask):
    """Same semantics as EncoderDecoder.forward: decode(encode(src, src_mask), src_mask, tgt, tgt_mask)."""
    B, Ss = src.shape
    _, St = tgt.shape

    # 2-way "parallel" split engages v7x's second TensorCore; otherwise a single
    # grid step carries the whole batch (batch flattened inside the kernel).
    G = 2 if (B % 2 == 0 and B >= 2) else 1
    Bp = B // G

    src_tok = src.astype(jnp.int32).reshape(B, Ss, 1)
    tgt_tok = tgt.astype(jnp.int32).reshape(B, St, 1)
    src_m = src_mask.astype(jnp.float32)                 # [B, 1, Ss]
    tgt_m = tgt_mask.astype(jnp.float32)                 # [B, St, St]

    weights = dict(params)
    weights["pe"] = params["pe"][:max(Ss, St)]
    w_list = [weights[n] for n in _WEIGHT_NAMES]

    def _rep(a):
        z = (0,) * a.ndim
        return pl.BlockSpec(a.shape, lambda g, _z=z: _z)  # replicated (constant index)

    in_specs = [
        pl.BlockSpec((Bp, Ss, 1), lambda g: (g, 0, 0)),
        pl.BlockSpec((Bp, St, 1), lambda g: (g, 0, 0)),
        pl.BlockSpec((Bp, 1, Ss), lambda g: (g, 0, 0)),
        pl.BlockSpec((Bp, St, St), lambda g: (g, 0, 0)),
    ] + [_rep(a) for a in w_list]

    return pl.pallas_call(
        _fused_kernel,
        out_shape=jax.ShapeDtypeStruct((B, St, D_MODEL), jnp.float32),
        grid=(G,),
        in_specs=in_specs,
        out_specs=pl.BlockSpec((Bp, St, D_MODEL), lambda g: (g, 0, 0)),
        compiler_params=pltpu.CompilerParams(dimension_semantics=("parallel",)),
    )(src_tok, tgt_tok, src_m, tgt_m, *w_list)


# ----------------------------- parameters ------------------------------------

def positional_encoding(max_len, d):
    pos = jnp.arange(max_len, dtype=jnp.float32)[:, None]
    div = jnp.exp(jnp.arange(0, d, 2, dtype=jnp.float32) * (-math.log(10000.0) / d))
    pe = jnp.zeros((max_len, d), jnp.float32)
    pe = pe.at[:, 0::2].set(jnp.sin(pos * div))
    pe = pe.at[:, 1::2].set(jnp.cos(pos * div))
    return pe


def init_params(key):
    keys = iter(jax.random.split(key, 64))

    def w(shape, scale=0.05):
        return (scale * jax.random.normal(next(keys), shape)).astype(jnp.float32)

    emb = jnp.zeros((2, V_PAD, D_MODEL), jnp.float32)
    emb = emb.at[0, :SRC_VOCAB].set(w((SRC_VOCAB, D_MODEL), scale=1.0))
    emb = emb.at[1, :TGT_VOCAB].set(w((TGT_VOCAB, D_MODEL), scale=1.0))

    ln_g = 1.0 + w((N_LN, 1, D_MODEL), scale=0.02)
    ln_b = w((N_LN, 1, D_MODEL), scale=0.02)

    # MHA slot 0 = encoder self-attn, 1 = decoder self-attn, 2 = decoder cross-attn
    # FFN slot 0 = encoder, 1 = decoder
    return {
        "emb":  emb,                                                    # [2, V_PAD, D]
        "pe":   positional_encoding(MAX_LEN, D_MODEL),                  # [MAX_LEN, D]
        "wqkv": w((3, N_LAYERS, D_MODEL, 3 * D_MODEL)),                 # merged Q|K|V
        "bqkv": w((3, N_LAYERS, 1, 3 * D_MODEL), scale=0.02),
        "wo":   w((3, N_LAYERS, D_MODEL, D_MODEL)),
        "bo":   w((3, N_LAYERS, 1, D_MODEL), scale=0.02),
        "w1":   w((2, N_LAYERS, D_MODEL, D_FF)),
        "b1":   w((2, N_LAYERS, 1, D_FF), scale=0.02),
        "w2":   w((2, N_LAYERS, D_FF, D_MODEL)),
        "b2":   w((2, N_LAYERS, 1, D_MODEL), scale=0.02),
        "ln":   jnp.stack([ln_g, ln_b]),                                # [2, N_LN, 1, D]
    }


# ------------------------ pure-JAX reference (for check) ---------------------

def reference_forward(params, src, tgt, src_mask, tgt_mask):
    D = D_MODEL

    def ln(x, idx):
        g = params["ln"][0, idx]
        b = params["ln"][1, idx]
        m = jnp.mean(x, axis=-1, keepdims=True)
        v = jnp.mean((x - m) ** 2, axis=-1, keepdims=True)
        return g * (x - m) * jax.lax.rsqrt(v + EPS) + b

    def mha(widx, l, xq, xkv, mask):
        w = params["wqkv"][widx, l]
        bqkv = params["bqkv"][widx, l]
        q = xq @ w[:, :D] + bqkv[:, :D]
        k = xkv @ w[:, D:2 * D] + bqkv[:, D:2 * D]
        v = xkv @ w[:, 2 * D:] + bqkv[:, 2 * D:]
        Bb, Sq, _ = q.shape
        Sk = k.shape[1]
        qh = q.reshape(Bb, Sq, N_HEADS, D_HEAD).transpose(0, 2, 1, 3)
        kh = k.reshape(Bb, Sk, N_HEADS, D_HEAD).transpose(0, 2, 1, 3)
        vh = v.reshape(Bb, Sk, N_HEADS, D_HEAD).transpose(0, 2, 1, 3)
        s = jnp.einsum("bhqd,bhkd->bhqk", qh, kh) / math.sqrt(D_HEAD)
        s = jnp.where(mask[:, None] > 0, s, NEG_INF)
        p = jax.nn.softmax(s, axis=-1)
        ctx = jnp.einsum("bhqk,bhkd->bhqd", p, vh).transpose(0, 2, 1, 3).reshape(Bb, Sq, D)
        return ctx @ params["wo"][widx, l] + params["bo"][widx, l]

    def ffn(sidx, l, x):
        h = jax.nn.relu(x @ params["w1"][sidx, l] + params["b1"][sidx, l])
        return h @ params["w2"][sidx, l] + params["b2"][sidx, l]

    def embed(tokens, tidx, S):
        return params["emb"][tidx][tokens] * math.sqrt(D) + params["pe"][:S][None]

    _, Ss = src.shape
    _, St = tgt.shape

    x = embed(src, 0, Ss)
    for l in range(N_LAYERS):
        h = ln(x, 2 * l)
        x = x + mha(0, l, h, h, src_mask)
        h = ln(x, 2 * l + 1)
        x = x + ffn(0, l, h)
    memory = ln(x, 2 * N_LAYERS)

    dec0 = 2 * N_LAYERS + 1
    y = embed(tgt, 1, St)
    for l in range(N_LAYERS):
        h = ln(y, dec0 + 3 * l)
        y = y + mha(1, l, h, h, tgt_mask)
        h = ln(y, dec0 + 3 * l + 1)
        y = y + mha(2, l, h, memory, src_mask)
        h = ln(y, dec0 + 3 * l + 2)
        y = y + ffn(1, l, h)
    return ln(y, dec0 + 3 * N_LAYERS)


# -------------------------------- main ----------------------------------------

if __name__ == "__main__":
    root = jax.random.PRNGKey(0)
    pkey, skey, tkey = jax.random.split(root, 3)
    params = init_params(pkey)

    B, S_SRC, S_TGT = 2, 8, 8
    src = jax.random.randint(skey, (B, S_SRC), 1, SRC_VOCAB)
    tgt = jax.random.randint(tkey, (B, S_TGT), 1, TGT_VOCAB)
    src_mask = jnp.ones((B, 1, S_SRC), jnp.float32)                       # [B, 1, S_src]
    tgt_mask = jnp.broadcast_to(jnp.tril(jnp.ones((S_TGT, S_TGT), jnp.float32)),
                                (B, S_TGT, S_TGT))                        # [B, S_tgt, S_tgt]

    forward = jax.jit(encoder_decoder_forward)
    out = forward(params, src, tgt, src_mask, tgt_mask)
    jax.block_until_ready(out)

    assert out.shape == (B, S_TGT, D_MODEL) and out.dtype == jnp.float32
    assert bool(jnp.all(jnp.isfinite(out)))

    # correctness check vs pure-JAX reference (loose tol: approx reciprocal in softmax)
    ref = reference_forward(params, src, tgt, src_mask, tgt_mask)
    max_err = float(jnp.max(jnp.abs(out - ref)))
    assert max_err < 5e-2, f"max abs err vs reference: {max_err}"

    print("KERNEL_OK")
</pallas_src>

<mosaic_0001>
module attributes {stable_mosaic.version = 11 : i64} {
  func.func @_fused_kernel(%arg0: i32, %arg1: memref<1x8x1xi32, #tpu.memory_space<vmem>>, %arg2: memref<1x8x1xi32, #tpu.memory_space<vmem>>, %arg3: memref<1x1x8xf32, #tpu.memory_space<vmem>>, %arg4: memref<1x8x8xf32, #tpu.memory_space<vmem>>, %arg5: memref<2x16x32xf32, #tpu.memory_space<vmem>>, %arg6: memref<8x32xf32, #tpu.memory_space<vmem>>, %arg7: memref<3x2x32x96xf32, #tpu.memory_space<vmem>>, %arg8: memref<3x2x1x96xf32, #tpu.memory_space<vmem>>, %arg9: memref<3x2x32x32xf32, #tpu.memory_space<vmem>>, %arg10: memref<3x2x1x32xf32, #tpu.memory_space<vmem>>, %arg11: memref<2x2x32x64xf32, #tpu.memory_space<vmem>>, %arg12: memref<2x2x1x64xf32, #tpu.memory_space<vmem>>, %arg13: memref<2x2x64x32xf32, #tpu.memory_space<vmem>>, %arg14: memref<2x2x1x32xf32, #tpu.memory_space<vmem>>, %arg15: memref<2x12x1x32xf32, #tpu.memory_space<vmem>>, %arg16: memref<1x8x32xf32, #tpu.memory_space<vmem>>) attributes {dimension_semantics = [#tpu.dimension_semantics<parallel>], iteration_bounds = array<i64: 2>, scalar_prefetch = 0 : i64, scratch_operands = 0 : i64, tpu.core_type = #tpu.core_type<tc>, window_params = [{transform_indices = @transform_0, window_bounds = array<i64: 1, 8, 1>}, {transform_indices = @transform_1, window_bounds = array<i64: 1, 8, 1>}, {transform_indices = @transform_2, window_bounds = array<i64: 1, 1, 8>}, {transform_indices = @transform_3, window_bounds = array<i64: 1, 8, 8>}, {pipeline_mode = #tpu.pipeline_mode<synchronous>, transform_indices = @transform_4, window_bounds = array<i64: 2, 16, 32>}, {pipeline_mode = #tpu.pipeline_mode<synchronous>, transform_indices = @transform_5, window_bounds = array<i64: 8, 32>}, {pipeline_mode = #tpu.pipeline_mode<synchronous>, transform_indices = @transform_6, window_bounds = array<i64: 3, 2, 32, 96>}, {pipeline_mode = #tpu.pipeline_mode<synchronous>, transform_indices = @transform_7, window_bounds = array<i64: 3, 2, 1, 96>}, {pipeline_mode = #tpu.pipeline_mode<synchronous>, transform_indices = @transform_8, window_bounds = array<i64: 3, 2, 32, 32>}, {pipeline_mode = #tpu.pipeline_mode<synchronous>, transform_indices = @transform_9, window_bounds = array<i64: 3, 2, 1, 32>}, {pipeline_mode = #tpu.pipeline_mode<synchronous>, transform_indices = @transform_10, window_bounds = array<i64: 2, 2, 32, 64>}, {pipeline_mode = #tpu.pipeline_mode<synchronous>, transform_indices = @transform_11, window_bounds = array<i64: 2, 2, 1, 64>}, {pipeline_mode = #tpu.pipeline_mode<synchronous>, transform_indices = @transform_12, window_bounds = array<i64: 2, 2, 64, 32>}, {pipeline_mode = #tpu.pipeline_mode<synchronous>, transform_indices = @transform_13, window_bounds = array<i64: 2, 2, 1, 32>}, {pipeline_mode = #tpu.pipeline_mode<synchronous>, transform_indices = @transform_14, window_bounds = array<i64: 2, 12, 1, 32>}, {transform_indices = @transform_15, window_bounds = array<i64: 1, 8, 32>}]} {
    %c0 = arith.constant 0 : index
    %c0_0 = arith.constant 0 : index
    %c0_1 = arith.constant 0 : index
    %0 = vector.load %arg3[%c0, %c0_0, %c0_1] : memref<1x1x8xf32, #tpu.memory_space<vmem>>, vector<1x1x8xf32>
    %1 = vector.shape_cast %0 : vector<1x1x8xf32> to vector<1x8xf32>
    %cst = arith.constant 1.000000e+00 : f32
    %2 = vector.broadcast %cst : f32 to vector<1x8xf32>
    %3 = arith.subf %1, %2 : vector<1x8xf32>
    %cst_2 = arith.constant 1.000000e+09 : f32
    %4 = vector.broadcast %cst_2 : f32 to vector<1x8xf32>
    %5 = arith.mulf %3, %4 : vector<1x8xf32>
    %c0_3 = arith.constant 0 : index
    %c0_4 = arith.constant 0 : index
    %c0_5 = arith.constant 0 : index
    %6 = vector.load %arg4[%c0_3, %c0_4, %c0_5] : memref<1x8x8xf32, #tpu.memory_space<vmem>>, vector<1x8x8xf32>
    %7 = vector.shape_cast %6 : vector<1x8x8xf32> to vector<8x8xf32>
    %cst_6 = arith.constant 1.000000e+00 : f32
    %8 = vector.broadcast %cst_6 : f32 to vector<8x8xf32>
    %9 = arith.subf %7, %8 : vector<8x8xf32>
    %cst_7 = arith.constant 1.000000e+09 : f32
    %10 = vector.broadcast %cst_7 : f32 to vector<8x8xf32>
    %11 = arith.mulf %9, %10 : vector<8x8xf32>
    %12 = tpu.concatenate %11, %11, %11, %11 in 0 : vector<8x8xf32>, vector<8x8xf32>, vector<8x8xf32>, vector<8x8xf32> -> vector<32x8xf32>
    %c0_8 = arith.constant 0 : index
    %c0_9 = arith.constant 0 : index
    %c0_10 = arith.constant 0 : index
    %13 = vector.load %arg5[%c0_8, %c0_9, %c0_10] : memref<2x16x32xf32, #tpu.memory_space<vmem>>, vector<1x16x32xf32>
    %14 = vector.shape_cast %13 : vector<1x16x32xf32> to vector<16x32xf32>
    %c0_11 = arith.constant 0 : index
    %c0_12 = arith.constant 0 : index
    %c0_13 = arith.constant 0 : index
    %15 = vector.load %arg1[%c0_11, %c0_12, %c0_13] : memref<1x8x1xi32, #tpu.memory_space<vmem>>, vector<1x8x1xi32>
    %16 = vector.shape_cast %15 : vector<1x8x1xi32> to vector<8x1xi32>
    %17 = tpu.iota {dimensions = array<i32: 1>} : vector<8x16xi32>
    %18 = vector.broadcast %16 : vector<8x1xi32> to vector<8x16xi32>
    %19 = arith.cmpi eq, %18, %17 : vector<8x16xi32>
    %20 = arith.extui %19 : vector<8x16xi1> to vector<8x16xi32>
    %21 = arith.sitofp %20 : vector<8x16xi32> to vector<8x16xf32>
    %cst_14 = arith.constant dense<0.000000e+00> : vector<8x32xf32>
    %22 = tpu.matmul %21, %14, %cst_14 {dimension_numbers = #tpu.dot_dimension_numbers<[1], [0], [0], [1], [0, 0, 1, 1], [], []>} : vector<8x16xf32>, vector<16x32xf32>, vector<8x32xf32> -> vector<8x32xf32>
    %cst_15 = arith.constant 5.65685415 : f32
    %23 = vector.broadcast %cst_15 : f32 to vector<8x32xf32>
    %24 = arith.mulf %22, %23 : vector<8x32xf32>
    %c0_16 = arith.constant 0 : index
    %c0_17 = arith.constant 0 : index
    %25 = vector.load %arg6[%c0_16, %c0_17] : memref<8x32xf32, #tpu.memory_space<vmem>>, vector<8x32xf32>
    %26 = arith.addf %24, %25 : vector<8x32xf32>
    %c1 = arith.constant 1 : index
    %c0_18 = arith.constant 0 : index
    %c0_19 = arith.constant 0 : index
    %27 = vector.load %arg5[%c1, %c0_18, %c0_19] : memref<2x16x32xf32, #tpu.memory_space<vmem>>, vector<1x16x32xf32>
    %28 = vector.shape_cast %27 : vector<1x16x32xf32> to vector<16x32xf32>
    %c0_20 = arith.constant 0 : index
    %c0_21 = arith.constant 0 : index
    %c0_22 = arith.constant 0 : index
    %29 = vector.load %arg2[%c0_20, %c0_21, %c0_22] : memref<1x8x1xi32, #tpu.memory_space<vmem>>, vector<1x8x1xi32>
    %30 = vector.shape_cast %29 : vector<1x8x1xi32> to vector<8x1xi32>
    %31 = tpu.iota {dimensions = array<i32: 1>} : vector<8x16xi32>
    %32 = vector.broadcast %30 : vector<8x1xi32> to vector<8x16xi32>
    %33 = arith.cmpi eq, %32, %31 : vector<8x16xi32>
    %34 = arith.extui %33 : vector<8x16xi1> to vector<8x16xi32>
    %35 = arith.sitofp %34 : vector<8x16xi32> to vector<8x16xf32>
    %cst_23 = arith.constant dense<0.000000e+00> : vector<8x32xf32>
    %36 = tpu.matmul %35, %28, %cst_23 {dimension_numbers = #tpu.dot_dimension_numbers<[1], [0], [0], [1], [0, 0, 1, 1], [], []>} : vector<8x16xf32>, vector<16x32xf32>, vector<8x32xf32> -> vector<8x32xf32>
    %cst_24 = arith.constant 5.65685415 : f32
    %37 = vector.broadcast %cst_24 : f32 to vector<8x32xf32>
    %38 = arith.mulf %36, %37 : vector<8x32xf32>
    %c0_25 = arith.constant 0 : index
    %c0_26 = arith.constant 0 : index
    %39 = vector.load %arg6[%c0_25, %c0_26] : memref<8x32xf32, #tpu.memory_space<vmem>>, vector<8x32xf32>
    %40 = arith.addf %38, %39 : vector<8x32xf32>
    %c0_27 = arith.constant 0 : index
    %c0_28 = arith.constant 0 : index
    %c0_29 = arith.constant 0 : index
    %c0_30 = arith.constant 0 : index
    %41 = vector.load %arg15[%c0_27, %c0_28, %c0_29, %c0_30] : memref<2x12x1x32xf32, #tpu.memory_space<vmem>>, vector<1x1x1x32xf32>
    %42 = vector.shape_cast %41 : vector<1x1x1x32xf32> to vector<1x32xf32>
    %c1_31 = arith.constant 1 : index
    %c0_32 = arith.constant 0 : index
    %c0_33 = arith.constant 0 : index
    %c0_34 = arith.constant 0 : index
    %43 = vector.load %arg15[%c1_31, %c0_32, %c0_33, %c0_34] : memref<2x12x1x32xf32, #tpu.memory_space<vmem>>, vector<1x1x1x32xf32>
    %44 = vector.shape_cast %43 : vector<1x1x1x32xf32> to vector<1x32xf32>
    %cst_35 = arith.constant dense<0.000000e+00> : vector<8xf32>
    %45 = vector.multi_reduction <add>, %26, %cst_35 [1] : vector<8x32xf32> to vector<8xf32>
    %46 = vector.shape_cast %45 : vector<8xf32> to vector<8x1xf32>
    %cst_36 = arith.constant 3.200000e+01 : f32
    %47 = vector.broadcast %cst_36 : f32 to vector<8x1xf32>
    %48 = arith.divf %46, %47 : vector<8x1xf32>
    %49 = vector.broadcast %48 : vector<8x1xf32> to vector<8x32xf32>
    %50 = arith.subf %26, %49 : vector<8x32xf32>
    %51 = arith.mulf %50, %50 : vector<8x32xf32>
    %cst_37 = arith.constant dense<0.000000e+00> : vector<8xf32>
    %52 = vector.multi_reduction <add>, %51, %cst_37 [1] : vector<8x32xf32> to vector<8xf32>
    %53 = vector.shape_cast %52 : vector<8xf32> to vector<8x1xf32>
    %cst_38 = arith.constant 3.200000e+01 : f32
    %54 = vector.broadcast %cst_38 : f32 to vector<8x1xf32>
    %55 = arith.divf %53, %54 : vector<8x1xf32>
    %56 = vector.broadcast %48 : vector<8x1xf32> to vector<8x32xf32>
    %57 = arith.subf %26, %56 : vector<8x32xf32>
    %58 = vector.broadcast %42 : vector<1x32xf32> to vector<8x32xf32>
    %59 = arith.mulf %58, %57 : vector<8x32xf32>
    %cst_39 = arith.constant 9.99999997E-7 : f32
    %60 = vector.broadcast %cst_39 : f32 to vector<8x1xf32>
    %61 = arith.addf %55, %60 : vector<8x1xf32>
    %62 = math.rsqrt %61 : vector<8x1xf32>
    %63 = vector.broadcast %62 : vector<8x1xf32> to vector<8x32xf32>
    %64 = arith.mulf %59, %63 : vector<8x32xf32>
    %65 = vector.broadcast %44 : vector<1x32xf32> to vector<8x32xf32>
    %66 = arith.addf %64, %65 : vector<8x32xf32>
    %c0_40 = arith.constant 0 : index
    %c0_41 = arith.constant 0 : index
    %c0_42 = arith.constant 0 : index
    %c0_43 = arith.constant 0 : index
    %67 = vector.load %arg7[%c0_40, %c0_41, %c0_42, %c0_43] : memref<3x2x32x96xf32, #tpu.memory_space<vmem>>, vector<1x1x32x96xf32>
    %68 = vector.shape_cast %67 : vector<1x1x32x96xf32> to vector<32x96xf32>
    %c0_44 = arith.constant 0 : index
    %c0_45 = arith.constant 0 : index
    %c0_46 = arith.constant 0 : index
    %c0_47 = arith.constant 0 : index
    %69 = vector.load %arg8[%c0_44, %c0_45, %c0_46, %c0_47] : memref<3x2x1x96xf32, #tpu.memory_space<vmem>>, vector<1x1x1x96xf32>
    %70 = vector.shape_cast %69 : vector<1x1x1x96xf32> to vector<1x96xf32>
    %cst_48 = arith.constant dense<0.000000e+00> : vector<8x96xf32>
    %71 = tpu.matmul %66, %68, %cst_48 {dimension_numbers = #tpu.dot_dimension_numbers<[1], [0], [0], [1], [0, 0, 1, 1], [], []>} : vector<8x32xf32>, vector<32x96xf32>, vector<8x96xf32> -> vector<8x96xf32>
    %72 = vector.broadcast %70 : vector<1x96xf32> to vector<8x96xf32>
    %73 = arith.addf %71, %72 : vector<8x96xf32>
    %74 = vector.extract_strided_slice %73 {offsets = [0, 0], sizes = [8, 32], strides = [1, 1]} : vector<8x96xf32> to vector<8x32xf32>
    %75 = vector.extract_strided_slice %73 {offsets = [0, 32], sizes = [8, 32], strides = [1, 1]} : vector<8x96xf32> to vector<8x32xf32>
    %76 = vector.extract_strided_slice %73 {offsets = [0, 64], sizes = [8, 32], strides = [1, 1]} : vector<8x96xf32> to vector<8x32xf32>
    %77 = vector.extract_strided_slice %74 {offsets = [0, 0], sizes = [8, 8], strides = [1, 1]} : vector<8x32xf32> to vector<8x8xf32>
    %78 = vector.extract_strided_slice %75 {offsets = [0, 0], sizes = [8, 8], strides = [1, 1]} : vector<8x32xf32> to vector<8x8xf32>
    %cst_49 = arith.constant dense<0.000000e+00> : vector<8x8xf32>
    %79 = tpu.matmul %77, %78, %cst_49 {dimension_numbers = #tpu.dot_dimension_numbers<[1], [1], [0], [0], [0, 0, 1, 0], [], []>} : vector<8x8xf32>, vector<8x8xf32>, vector<8x8xf32> -> vector<8x8xf32>
    %80 = vector.extract_strided_slice %74 {offsets = [0, 8], sizes = [8, 8], strides = [1, 1]} : vector<8x32xf32> to vector<8x8xf32>
    %81 = vector.extract_strided_slice %75 {offsets = [0, 8], sizes = [8, 8], strides = [1, 1]} : vector<8x32xf32> to vector<8x8xf32>
    %cst_50 = arith.constant dense<0.000000e+00> : vector<8x8xf32>
    %82 = tpu.matmul %80, %81, %cst_50 {dimension_numbers = #tpu.dot_dimension_numbers<[1], [1], [0], [0], [0, 0, 1, 0], [], []>} : vector<8x8xf32>, vector<8x8xf32>, vector<8x8xf32> -> vector<8x8xf32>
    %83 = vector.extract_strided_slice %74 {offsets = [0, 16], sizes = [8, 8], strides = [1, 1]} : vector<8x32xf32> to vector<8x8xf32>
    %84 = vector.extract_strided_slice %75 {offsets = [0, 16], sizes = [8, 8], strides = [1, 1]} : vector<8x32xf32> to vector<8x8xf32>
    %cst_51 = arith.constant dense<0.000000e+00> : vector<8x8xf32>
    %85 = tpu.matmul %83, %84, %cst_51 {dimension_numbers = #tpu.dot_dimension_numbers<[1], [1], [0], [0], [0, 0, 1, 0], [], []>} : vector<8x8xf32>, vector<8x8xf32>, vector<8x8xf32> -> vector<8x8xf32>
    %86 = vector.extract_strided_slice %74 {offsets = [0, 24], sizes = [8, 8], strides = [1, 1]} : vector<8x32xf32> to vector<8x8xf32>
    %87 = vector.extract_strided_slice %75 {offsets = [0, 24], sizes = [8, 8], strides = [1, 1]} : vector<8x32xf32> to vector<8x8xf32>
    %cst_52 = arith.constant dense<0.000000e+00> : vector<8x8xf32>
    %88 = tpu.matmul %86, %87, %cst_52 {dimension_numbers = #tpu.dot_dimension_numbers<[1], [1], [0], [0], [0, 0, 1, 0], [], []>} : vector<8x8xf32>, vector<8x8xf32>, vector<8x8xf32> -> vector<8x8xf32>
    %89 = tpu.concatenate %79, %82, %85, %88 in 0 : vector<8x8xf32>, vector<8x8xf32>, vector<8x8xf32>, vector<8x8xf32> -> vector<32x8xf32>
    %cst_53 = arith.constant 0.353553385 : f32
    %90 = vector.broadcast %cst_53 : f32 to vector<32x8xf32>
    %91 = arith.mulf %89, %90 : vector<32x8xf32>
    %92 = vector.broadcast %5 : vector<1x8xf32> to vector<32x8xf32>
    %93 = arith.addf %91, %92 : vector<32x8xf32>
    %cst_54 = arith.constant dense<0xFF800000> : vector<32xf32>
    %94 = vector.multi_reduction <maximumf>, %93, %cst_54 [1] : vector<32x8xf32> to vector<32xf32>
    %95 = vector.shape_cast %94 : vector<32xf32> to vector<32x1xf32>
    %96 = vector.broadcast %95 : vector<32x1xf32> to vector<32x8xf32>
    %97 = arith.subf %93, %96 : vector<32x8xf32>
    %98 = math.exp %97 : vector<32x8xf32>
    %cst_55 = arith.constant dense<0.000000e+00> : vector<32xf32>
    %99 = vector.multi_reduction <add>, %98, %cst_55 [1] : vector<32x8xf32> to vector<32xf32>
    %100 = vector.shape_cast %99 : vector<32xf32> to vector<32x1xf32>
    %101 = tpu.reciprocal %100 {approx = true} : vector<32x1xf32> -> vector<32x1xf32>
    %102 = vector.broadcast %101 : vector<32x1xf32> to vector<32x8xf32>
    %103 = arith.mulf %98, %102 : vector<32x8xf32>
    %104 = vector.extract_strided_slice %103 {offsets = [0, 0], sizes = [8, 8], strides = [1, 1]} : vector<32x8xf32> to vector<8x8xf32>
    %105 = vector.extract_strided_slice %76 {offsets = [0, 0], sizes = [8, 8], strides = [1, 1]} : vector<8x32xf32> to vector<8x8xf32>
    %cst_56 = arith.constant dense<0.000000e+00> : vector<8x8xf32>
    %106 = tpu.matmul %104, %105, %cst_56 {dimension_numbers = #tpu.dot_dimension_numbers<[1], [0], [0], [1], [0, 0, 1, 1], [], []>} : vector<8x8xf32>, vector<8x8xf32>, vector<8x8xf32> -> vector<8x8xf32>
    %107 = vector.extract_strided_slice %103 {offsets = [8, 0], sizes = [8, 8], strides = [1, 1]} : vector<32x8xf32> to vector<8x8xf32>
    %108 = vector.extract_strided_slice %76 {offsets = [0, 8], sizes = [8, 8], strides = [1, 1]} : vector<8x32xf32> to vector<8x8xf32>
    %cst_57 = arith.constant dense<0.000000e+00> : vector<8x8xf32>
    %109 = tpu.matmul %107, %108, %cst_57 {dimension_numbers = #tpu.dot_dimension_numbers<[1], [0], [0], [1], [0, 0, 1, 1], [], []>} : vector<8x8xf32>, vector<8x8xf32>, vector<8x8xf32> -> vector<8x8xf32>
    %110 = vector.extract_strided_slice %103 {offsets = [16, 0], sizes = [8, 8], strides = [1, 1]} : vector<32x8xf32> to vector<8x8xf32>
    %111 = vector.extract_strided_slice %76 {offsets = [0, 16], sizes = [8, 8], strides = [1, 1]} : vector<8x32xf32> to vector<8x8xf32>
    %cst_58 = arith.constant dense<0.000000e+00> : vector<8x8xf32>
    %112 = tpu.matmul %110, %111, %cst_58 {dimension_numbers = #tpu.dot_dimension_numbers<[1], [0], [0], [1], [0, 0, 1, 1], [], []>} : vector<8x8xf32>, vector<8x8xf32>, vector<8x8xf32> -> vector<8x8xf32>
    %113 = vector.extract_strided_slice %103 {offsets = [24, 0], sizes = [8, 8], strides = [1, 1]} : vector<32x8xf32> to vector<8x8xf32>
    %114 = vector.extract_strided_slice %76 {offsets = [0, 24], sizes = [8, 8], strides = [1, 1]} : vector<8x32xf32> to vector<8x8xf32>
    %cst_59 = arith.constant dense<0.000000e+00> : vector<8x8xf32>
    %115 = tpu.matmul %113, %114, %cst_59 {dimension_numbers = #tpu.dot_dimension_numbers<[1], [0], [0], [1], [0, 0, 1, 1], [], []>} : vector<8x8xf32>, vector<8x8xf32>, vector<8x8xf32> -> vector<8x8xf32>
    %116 = tpu.concatenate %106, %109, %112, %115 in 1 : vector<8x8xf32>, vector<8x8xf32>, vector<8x8xf32>, vector<8x8xf32> -> vector<8x32xf32>
    %c0_60 = arith.constant 0 : index
    %c0_61 = arith.constant 0 : index
    %c0_62 = arith.constant 0 : index
    %c0_63 = arith.constant 0 : index
    %117 = vector.load %arg9[%c0_60, %c0_61, %c0_62, %c0_63] : memref<3x2x32x32xf32, #tpu.memory_space<vmem>>, vector<1x1x32x32xf32>
    %118 = vector.shape_cast %117 : vector<1x1x32x32xf32> to vector<32x32xf32>
    %cst_64 = arith.constant dense<0.000000e+00> : vector<8x32xf32>
    %119 = tpu.matmul %116, %118, %cst_64 {dimension_numbers = #tpu.dot_dimension_numbers<[1], [0], [0], [1], [0, 0, 1, 1], [], []>} : vector<8x32xf32>, vector<32x32xf32>, vector<8x32xf32> -> vector<8x32xf32>
    %c0_65 = arith.constant 0 : index
    %c0_66 = arith.constant 0 : index
    %c0_67 = arith.constant 0 : index
    %c0_68 = arith.constant 0 : index
    %120 = vector.load %arg10[%c0_65, %c0_66, %c0_67, %c0_68] : memref<3x2x1x32xf32, #tpu.memory_space<vmem>>, vector<1x1x1x32xf32>
    %121 = vector.shape_cast %120 : vector<1x1x1x32xf32> to vector<1x32xf32>
    %122 = vector.broadcast %121 : vector<1x32xf32> to vector<8x32xf32>
    %123 = arith.addf %119, %122 : vector<8x32xf32>
    %124 = arith.addf %26, %123 : vector<8x32xf32>
    %c0_69 = arith.constant 0 : index
    %c1_70 = arith.constant 1 : index
    %c0_71 = arith.constant 0 : index
    %c0_72 = arith.constant 0 : index
    %125 = vector.load %arg15[%c0_69, %c1_70, %c0_71, %c0_72] : memref<2x12x1x32xf32, #tpu.memory_space<vmem>>, vector<1x1x1x32xf32>
    %126 = vector.shape_cast %125 : vector<1x1x1x32xf32> to vector<1x32xf32>
    %c1_73 = arith.constant 1 : index
    %c1_74 = arith.constant 1 : index
    %c0_75 = arith.constant 0 : index
    %c0_76 = arith.constant 0 : index
    %127 = vector.load %arg15[%c1_73, %c1_74, %c0_75, %c0_76] : memref<2x12x1x32xf32, #tpu.memory_space<vmem>>, vector<1x1x1x32xf32>
    %128 = vector.shape_cast %127 : vector<1x1x1x32xf32> to vector<1x32xf32>
    %cst_77 = arith.constant dense<0.000000e+00> : vector<8xf32>
    %129 = vector.multi_reduction <add>, %124, %cst_77 [1] : vector<8x32xf32> to vector<8xf32>
    %130 = vector.shape_cast %129 : vector<8xf32> to vector<8x1xf32>
    %cst_78 = arith.constant 3.200000e+01 : f32
    %131 = vector.broadcast %cst_78 : f32 to vector<8x1xf32>
    %132 = arith.divf %130, %131 : vector<8x1xf32>
    %133 = vector.broadcast %132 : vector<8x1xf32> to vector<8x32xf32>
    %134 = arith.subf %124, %133 : vector<8x32xf32>
    %135 = arith.mulf %134, %134 : vector<8x32xf32>
    %cst_79 = arith.constant dense<0.000000e+00> : vector<8xf32>
    %136 = vector.multi_reduction <add>, %135, %cst_79 [1] : vector<8x32xf32> to vector<8xf32>
    %137 = vector.shape_cast %136 : vector<8xf32> to vector<8x1xf32>
    %cst_80 = arith.constant 3.200000e+01 : f32
    %138 = vector.broadcast %cst_80 : f32 to vector<8x1xf32>
    %139 = arith.divf %137, %138 : vector<8x1xf32>
    %140 = vector.broadcast %132 : vector<8x1xf32> to vector<8x32xf32>
    %141 = arith.subf %124, %140 : vector<8x32xf32>
    %142 = vector.broadcast %126 : vector<1x32xf32> to vector<8x32xf32>
    %143 = arith.mulf %142, %141 : vector<8x32xf32>
    %cst_81 = arith.constant 9.99999997E-7 : f32
    %144 = vector.broadcast %cst_81 : f32 to vector<8x1xf32>
    %145 = arith.addf %139, %144 : vector<8x1xf32>
    %146 = math.rsqrt %145 : vector<8x1xf32>
    %147 = vector.broadcast %146 : vector<8x1xf32> to vector<8x32xf32>
    %148 = arith.mulf %143, %147 : vector<8x32xf32>
    %149 = vector.broadcast %128 : vector<1x32xf32> to vector<8x32xf32>
    %150 = arith.addf %148, %149 : vector<8x32xf32>
    %c0_82 = arith.constant 0 : index
    %c0_83 = arith.constant 0 : index
    %c0_84 = arith.constant 0 : index
    %c0_85 = arith.constant 0 : index
    %151 = vector.load %arg11[%c0_82, %c0_83, %c0_84, %c0_85] : memref<2x2x32x64xf32, #tpu.memory_space<vmem>>, vector<1x1x32x64xf32>
    %152 = vector.shape_cast %151 : vector<1x1x32x64xf32> to vector<32x64xf32>
    %cst_86 = arith.constant dense<0.000000e+00> : vector<8x64xf32>
    %153 = tpu.matmul %150, %152, %cst_86 {dimension_numbers = #tpu.dot_dimension_numbers<[1], [0], [0], [1], [0, 0, 1, 1], [], []>} : vector<8x32xf32>, vector<32x64xf32>, vector<8x64xf32> -> vector<8x64xf32>
    %c0_87 = arith.constant 0 : index
    %c0_88 = arith.constant 0 : index
    %c0_89 = arith.constant 0 : index
    %c0_90 = arith.constant 0 : index
    %154 = vector.load %arg12[%c0_87, %c0_88, %c0_89, %c0_90] : memref<2x2x1x64xf32, #tpu.memory_space<vmem>>, vector<1x1x1x64xf32>
    %155 = vector.shape_cast %154 : vector<1x1x1x64xf32> to vector<1x64xf32>
    %156 = vector.broadcast %155 : vector<1x64xf32> to vector<8x64xf32>
    %157 = arith.addf %153, %156 : vector<8x64xf32>
    %cst_91 = arith.constant 0.000000e+00 : f32
    %158 = vector.broadcast %cst_91 : f32 to vector<8x64xf32>
    %159 = arith.maximumf %157, %158 : vector<8x64xf32>
    %c0_92 = arith.constant 0 : index
    %c0_93 = arith.constant 0 : index
    %c0_94 = arith.constant 0 : index
    %c0_95 = arith.constant 0 : index
    %160 = vector.load %arg13[%c0_92, %c0_93, %c0_94, %c0_95] : memref<2x2x64x32xf32, #tpu.memory_space<vmem>>, vector<1x1x64x32xf32>
    %161 = vector.shape_cast %160 : vector<1x1x64x32xf32> to vector<64x32xf32>
    %cst_96 = arith.constant dense<0.000000e+00> : vector<8x32xf32>
    %162 = tpu.matmul %159, %161, %cst_96 {dimension_numbers = #tpu.dot_dimension_numbers<[1], [0], [0], [1], [0, 0, 1, 1], [], []>} : vector<8x64xf32>, vector<64x32xf32>, vector<8x32xf32> -> vector<8x32xf32>
    %c0_97 = arith.constant 0 : index
    %c0_98 = arith.constant 0 : index
    %c0_99 = arith.constant 0 : index
    %c0_100 = arith.constant 0 : index
    %163 = vector.load %arg14[%c0_97, %c0_98, %c0_99, %c0_100] : memref<2x2x1x32xf32, #tpu.memory_space<vmem>>, vector<1x1x1x32xf32>
    %164 = vector.shape_cast %163 : vector<1x1x1x32xf32> to vector<1x32xf32>
    %165 = vector.broadcast %164 : vector<1x32xf32> to vector<8x32xf32>
    %166 = arith.addf %162, %165 : vector<8x32xf32>
    %167 = arith.addf %124, %166 : vector<8x32xf32>
    %c0_101 = arith.constant 0 : index
    %c2 = arith.constant 2 : index
    %c0_102 = arith.constant 0 : index
    %c0_103 = arith.constant 0 : index
    %168 = vector.load %arg15[%c0_101, %c2, %c0_102, %c0_103] : memref<2x12x1x32xf32, #tpu.memory_space<vmem>>, vector<1x1x1x32xf32>
    %169 = vector.shape_cast %168 : vector<1x1x1x32xf32> to vector<1x32xf32>
    %c1_104 = arith.constant 1 : index
    %c2_105 = arith.constant 2 : index
    %c0_106 = arith.constant 0 : index
    %c0_107 = arith.constant 0 : index
    %170 = vector.load %arg15[%c1_104, %c2_105, %c0_106, %c0_107] : memref<2x12x1x32xf32, #tpu.memory_space<vmem>>, vector<1x1x1x32xf32>
    %171 = vector.shape_cast %170 : vector<1x1x1x32xf32> to vector<1x32xf32>
    %cst_108 = arith.constant dense<0.000000e+00> : vector<8xf32>
    %172 = vector.multi_reduction <add>, %167, %cst_108 [1] : vector<8x32xf32> to vector<8xf32>
    %173 = vector.shape_cast %172 : vector<8xf32> to vector<8x1xf32>
    %cst_109 = arith.constant 3.200000e+01 : f32
    %174 = vector.broadcast %cst_109 : f32 to vector<8x1xf32>
    %175 = arith.divf %173, %174 : vector<8x1xf32>
    %176 = vector.broadcast %175 : vector<8x1xf32> to vector<8x32xf32>
    %177 = arith.subf %167, %176 : vector<8x32xf32>
    %178 = arith.mulf %177, %177 : vector<8x32xf32>
    %cst_110 = arith.constant dense<0.000000e+00> : vector<8xf32>
    %179 = vector.multi_reduction <add>, %178, %cst_110 [1] : vector<8x32xf32> to vector<8xf32>
    %180 = vector.shape_cast %179 : vector<8xf32> to vector<8x1xf32>
    %cst_111 = arith.constant 3.200000e+01 : f32
    %181 = vector.broadcast %cst_111 : f32 to vector<8x1xf32>
    %182 = arith.divf %180, %181 : vector<8x1xf32>
    %183 = vector.broadcast %175 : vector<8x1xf32> to vector<8x32xf32>
    %184 = arith.subf %167, %183 : vector<8x32xf32>
    %185 = vector.broadcast %169 : vector<1x32xf32> to vector<8x32xf32>
    %186 = arith.mulf %185, %184 : vector<8x32xf32>
    %cst_112 = arith.constant 9.99999997E-7 : f32
    %187 = vector.broadcast %cst_112 : f32 to vector<8x1xf32>
    %188 = arith.addf %182, %187 : vector<8x1xf32>
    %189 = math.rsqrt %188 : vector<8x1xf32>
    %190 = vector.broadcast %189 : vector<8x1xf32> to vector<8x32xf32>
    %191 = arith.mulf %186, %190 : vector<8x32xf32>
    %192 = vector.broadcast %171 : vector<1x32xf32> to vector<8x32xf32>
    %193 = arith.addf %191, %192 : vector<8x32xf32>
    %c0_113 = arith.constant 0 : index
    %c1_114 = arith.constant 1 : index
    %c0_115 = arith.constant 0 : index
    %c0_116 = arith.constant 0 : index
    %194 = vector.load %arg7[%c0_113, %c1_114, %c0_115, %c0_116] : memref<3x2x32x96xf32, #tpu.memory_space<vmem>>, vector<1x1x32x96xf32>
    %195 = vector.shape_cast %194 : vector<1x1x32x96xf32> to vector<32x96xf32>
    %c0_117 = arith.constant 0 : index
    %c1_118 = arith.constant 1 : index
    %c0_119 = arith.constant 0 : index
    %c0_120 = arith.constant 0 : index
    %196 = vector.load %arg8[%c0_117, %c1_118, %c0_119, %c0_120] : memref<3x2x1x96xf32, #tpu.memory_space<vmem>>, vector<1x1x1x96xf32>
    %197 = vector.shape_cast %196 : vector<1x1x1x96xf32> to vector<1x96xf32>
    %cst_121 = arith.constant dense<0.000000e+00> : vector<8x96xf32>
    %198 = tpu.matmul %193, %195, %cst_121 {dimension_numbers = #tpu.dot_dimension_numbers<[1], [0], [0], [1], [0, 0, 1, 1], [], []>} : vector<8x32xf32>, vector<32x96xf32>, vector<8x96xf32> -> vector<8x96xf32>
    %199 = vector.broadcast %197 : vector<1x96xf32> to vector<8x96xf32>
    %200 = arith.addf %198, %199 : vector<8x96xf32>
    %201 = vector.extract_strided_slice %200 {offsets = [0, 0], sizes = [8, 32], strides = [1, 1]} : vector<8x96xf32> to vector<8x32xf32>
    %202 = vector.extract_strided_slice %200 {offsets = [0, 32], sizes = [8, 32], strides = [1, 1]} : vector<8x96xf32> to vector<8x32xf32>
    %203 = vector.extract_strided_slice %200 {offsets = [0, 64], sizes = [8, 32], strides = [1, 1]} : vector<8x96xf32> to vector<8x32xf32>
    %204 = vector.extract_strided_slice %201 {offsets = [0, 0], sizes = [8, 8], strides = [1, 1]} : vector<8x32xf32> to vector<8x8xf32>
    %205 = vector.extract_strided_slice %202 {offsets = [0, 0], sizes = [8, 8], strides = [1, 1]} : vector<8x32xf32> to vector<8x8xf32>
    %cst_122 = arith.constant dense<0.000000e+00> : vector<8x8xf32>
    %206 = tpu.matmul %204, %205, %cst_122 {dimension_numbers = #tpu.dot_dimension_numbers<[1], [1], [0], [0], [0, 0, 1, 0], [], []>} : vector<8x8xf32>, vector<8x8xf32>, vector<8x8xf32> -> vector<8x8xf32>
    %207 = vector.extract_strided_slice %201 {offsets = [0, 8], sizes = [8, 8], strides = [1, 1]} : vector<8x32xf32> to vector<8x8xf32>
    %208 = vector.extract_strided_slice %202 {offsets = [0, 8], sizes = [8, 8], strides = [1, 1]} : vector<8x32xf32> to vector<8x8xf32>
    %cst_123 = arith.constant dense<0.000000e+00> : vector<8x8xf32>
    %209 = tpu.matmul %207, %208, %cst_123 {dimension_numbers = #tpu.dot_dimension_numbers<[1], [1], [0], [0], [0, 0, 1, 0], [], []>} : vector<8x8xf32>, vector<8x8xf32>, vector<8x8xf32> -> vector<8x8xf32>
    %210 = vector.extract_strided_slice %201 {offsets = [0, 16], sizes = [8, 8], strides = [1, 1]} : vector<8x32xf32> to vector<8x8xf32>
    %211 = vector.extract_strided_slice %202 {offsets = [0, 16], sizes = [8, 8], strides = [1, 1]} : vector<8x32xf32> to vector<8x8xf32>
    %cst_124 = arith.constant dense<0.000000e+00> : vector<8x8xf32>
    %212 = tpu.matmul %210, %211, %cst_124 {dimension_numbers = #tpu.dot_dimension_numbers<[1], [1], [0], [0], [0, 0, 1, 0], [], []>} : vector<8x8xf32>, vector<8x8xf32>, vector<8x8xf32> -> vector<8x8xf32>
    %213 = vector.extract_strided_slice %201 {offsets = [0, 24], sizes = [8, 8], strides = [1, 1]} : vector<8x32xf32> to vector<8x8xf32>
    %214 = vector.extract_strided_slice %202 {offsets = [0, 24], sizes = [8, 8], strides = [1, 1]} : vector<8x32xf32> to vector<8x8xf32>
    %cst_125 = arith.constant dense<0.000000e+00> : vector<8x8xf32>
    %215 = tpu.matmul %213, %214, %cst_125 {dimension_numbers = #tpu.dot_dimension_numbers<[1], [1], [0], [0], [0, 0, 1, 0], [], []>} : vector<8x8xf32>, vector<8x8xf32>, vector<8x8xf32> -> vector<8x8xf32>
    %216 = tpu.concatenate %206, %209, %212, %215 in 0 : vector<8x8xf32>, vector<8x8xf32>, vector<8x8xf32>, vector<8x8xf32> -> vector<32x8xf32>
    %cst_126 = arith.constant 0.353553385 : f32
    %217 = vector.broadcast %cst_126 : f32 to vector<32x8xf32>
    %218 = arith.mulf %216, %217 : vector<32x8xf32>
    %219 = vector.broadcast %5 : vector<1x8xf32> to vector<32x8xf32>
    %220 = arith.addf %218, %219 : vector<32x8xf32>
    %cst_127 = arith.constant dense<0xFF800000> : vector<32xf32>
    %221 = vector.multi_reduction <maximumf>, %220, %cst_127 [1] : vector<32x8xf32> to vector<32xf32>
    %222 = vector.shape_cast %221 : vector<32xf32> to vector<32x1xf32>
    %223 = vector.broadcast %222 : vector<32x1xf32> to vector<32x8xf32>
    %224 = arith.subf %220, %223 : vector<32x8xf32>
    %225 = math.exp %224 : vector<32x8xf32>
    %cst_128 = arith.constant dense<0.000000e+00> : vector<32xf32>
    %226 = vector.multi_reduction <add>, %225, %cst_128 [1] : vector<32x8xf32> to vector<32xf32>
    %227 = vector.shape_cast %226 : vector<32xf32> to vector<32x1xf32>
    %228 = tpu.reciprocal %227 {approx = true} : vector<32x1xf32> -> vector<32x1xf32>
    %229 = vector.broadcast %228 : vector<32x1xf32> to vector<32x8xf32>
    %230 = arith.mulf %225, %229 : vector<32x8xf32>
    %231 = vector.extract_strided_slice %230 {offsets = [0, 0], sizes = [8, 8], strides = [1, 1]} : vector<32x8xf32> to vector<8x8xf32>
    %232 = vector.extract_strided_slice %203 {offsets = [0, 0], sizes = [8, 8], strides = [1, 1]} : vector<8x32xf32> to vector<8x8xf32>
    %cst_129 = arith.constant dense<0.000000e+00> : vector<8x8xf32>
    %233 = tpu.matmul %231, %232, %cst_129 {dimension_numbers = #tpu.dot_dimension_numbers<[1], [0], [0], [1], [0, 0, 1, 1], [], []>} : vector<8x8xf32>, vector<8x8xf32>, vector<8x8xf32> -> vector<8x8xf32>
    %234 = vector.extract_strided_slice %230 {offsets = [8, 0], sizes = [8, 8], strides = [1, 1]} : vector<32x8xf32> to vector<8x8xf32>
    %235 = vector.extract_strided_slice %203 {offsets = [0, 8], sizes = [8, 8], strides = [1, 1]} : vector<8x32xf32> to vector<8x8xf32>
    %cst_130 = arith.constant dense<0.000000e+00> : vector<8x8xf32>
    %236 = tpu.matmul %234, %235, %cst_130 {dimension_numbers = #tpu.dot_dimension_numbers<[1], [0], [0], [1], [0, 0, 1, 1], [], []>} : vector<8x8xf32>, vector<8x8xf32>, vector<8x8xf32> -> vector<8x8xf32>
    %237 = vector.extract_strided_slice %230 {offsets = [16, 0], sizes = [8, 8], strides = [1, 1]} : vector<32x8xf32> to vector<8x8xf32>
    %238 = vector.extract_strided_slice %203 {offsets = [0, 16], sizes = [8, 8], strides = [1, 1]} : vector<8x32xf32> to vector<8x8xf32>
    %cst_131 = arith.constant dense<0.000000e+00> : vector<8x8xf32>
    %239 = tpu.matmul %237, %238, %cst_131 {dimension_numbers = #tpu.dot_dimension_numbers<[1], [0], [0], [1], [0, 0, 1, 1], [], []>} : vector<8x8xf32>, vector<8x8xf32>, vector<8x8xf32> -> vector<8x8xf32>
    %240 = vector.extract_strided_slice %230 {offsets = [24, 0], sizes = [8, 8], strides = [1, 1]} : vector<32x8xf32> to vector<8x8xf32>
    %241 = vector.extract_strided_slice %203 {offsets = [0, 24], sizes = [8, 8], strides = [1, 1]} : vector<8x32xf32> to vector<8x8xf32>
    %cst_132 = arith.constant dense<0.000000e+00> : vector<8x8xf32>
    %242 = tpu.matmul %240, %241, %cst_132 {dimension_numbers = #tpu.dot_dimension_numbers<[1], [0], [0], [1], [0, 0, 1, 1], [], []>} : vector<8x8xf32>, vector<8x8xf32>, vector<8x8xf32> -> vector<8x8xf32>
    %243 = tpu.concatenate %233, %236, %239, %242 in 1 : vector<8x8xf32>, vector<8x8xf32>, vector<8x8xf32>, vector<8x8xf32> -> vector<8x32xf32>
    %c0_133 = arith.constant 0 : index
    %c1_134 = arith.constant 1 : index
    %c0_135 = arith.constant 0 : index
    %c0_136 = arith.constant 0 : index
    %244 = vector.load %arg9[%c0_133, %c1_134, %c0_135, %c0_136] : memref<3x2x32x32xf32, #tpu.memory_space<vmem>>, vector<1x1x32x32xf32>
    %245 = vector.shape_cast %244 : vector<1x1x32x32xf32> to vector<32x32xf32>
    %cst_137 = arith.constant dense<0.000000e+00> : vector<8x32xf32>
    %246 = tpu.matmul %243, %245, %cst_137 {dimension_numbers = #tpu.dot_dimension_numbers<[1], [0], [0], [1], [0, 0, 1, 1], [], []>} : vector<8x32xf32>, vector<32x32xf32>, vector<8x32xf32> -> vector<8x32xf32>
    %c0_138 = arith.constant 0 : index
    %c1_139 = arith.constant 1 : index
    %c0_140 = arith.constant 0 : index
    %c0_141 = arith.constant 0 : index
    %247 = vector.load %arg10[%c0_138, %c1_139, %c0_140, %c0_141] : memref<3x2x1x32xf32, #tpu.memory_space<vmem>>, vector<1x1x1x32xf32>
    %248 = vector.shape_cast %247 : vector<1x1x1x32xf32> to vector<1x32xf32>
    %249 = vector.broadcast %248 : vector<1x32xf32> to vector<8x32xf32>
    %250 = arith.addf %246, %249 : vector<8x32xf32>
    %251 = arith.addf %167, %250 : vector<8x32xf32>
    %c0_142 = arith.constant 0 : index
    %c3 = arith.constant 3 : index
    %c0_143 = arith.constant 0 : index
    %c0_144 = arith.constant 0 : index
    %252 = vector.load %arg15[%c0_142, %c3, %c0_143, %c0_144] : memref<2x12x1x32xf32, #tpu.memory_space<vmem>>, vector<1x1x1x32xf32>
    %253 = vector.shape_cast %252 : vector<1x1x1x32xf32> to vector<1x32xf32>
    %c1_145 = arith.constant 1 : index
    %c3_146 = arith.constant 3 : index
    %c0_147 = arith.constant 0 : index
    %c0_148 = arith.constant 0 : index
    %254 = vector.load %arg15[%c1_145, %c3_146, %c0_147, %c0_148] : memref<2x12x1x32xf32, #tpu.memory_space<vmem>>, vector<1x1x1x32xf32>
    %255 = vector.shape_cast %254 : vector<1x1x1x32xf32> to vector<1x32xf32>
    %cst_149 = arith.constant dense<0.000000e+00> : vector<8xf32>
    %256 = vector.multi_reduction <add>, %251, %cst_149 [1] : vector<8x32xf32> to vector<8xf32>
    %257 = vector.shape_cast %256 : vector<8xf32> to vector<8x1xf32>
    %cst_150 = arith.constant 3.200000e+01 : f32
    %258 = vector.broadcast %cst_150 : f32 to vector<8x1xf32>
    %259 = arith.divf %257, %258 : vector<8x1xf32>
    %260 = vector.broadcast %259 : vector<8x1xf32> to vector<8x32xf32>
    %261 = arith.subf %251, %260 : vector<8x32xf32>
    %262 = arith.mulf %261, %261 : vector<8x32xf32>
    %cst_151 = arith.constant dense<0.000000e+00> : vector<8xf32>
    %263 = vector.multi_reduction <add>, %262, %cst_151 [1] : vector<8x32xf32> to vector<8xf32>
    %264 = vector.shape_cast %263 : vector<8xf32> to vector<8x1xf32>
    %cst_152 = arith.constant 3.200000e+01 : f32
    %265 = vector.broadcast %cst_152 : f32 to vector<8x1xf32>
    %266 = arith.divf %264, %265 : vector<8x1xf32>
    %267 = vector.broadcast %259 : vector<8x1xf32> to vector<8x32xf32>
    %268 = arith.subf %251, %267 : vector<8x32xf32>
    %269 = vector.broadcast %253 : vector<1x32xf32> to vector<8x32xf32>
    %270 = arith.mulf %269, %268 : vector<8x32xf32>
    %cst_153 = arith.constant 9.99999997E-7 : f32
    %271 = vector.broadcast %cst_153 : f32 to vector<8x1xf32>
    %272 = arith.addf %266, %271 : vector<8x1xf32>
    %273 = math.rsqrt %272 : vector<8x1xf32>
    %274 = vector.broadcast %273 : vector<8x1xf32> to vector<8x32xf32>
    %275 = arith.mulf %270, %274 : vector<8x32xf32>
    %276 = vector.broadcast %255 : vector<1x32xf32> to vector<8x32xf32>
    %277 = arith.addf %275, %276 : vector<8x32xf32>
    %c0_154 = arith.constant 0 : index
    %c1_155 = arith.constant 1 : index
    %c0_156 = arith.constant 0 : index
    %c0_157 = arith.constant 0 : index
    %278 = vector.load %arg11[%c0_154, %c1_155, %c0_156, %c0_157] : memref<2x2x32x64xf32, #tpu.memory_space<vmem>>, vector<1x1x32x64xf32>
    %279 = vector.shape_cast %278 : vector<1x1x32x64xf32> to vector<32x64xf32>
    %cst_158 = arith.constant dense<0.000000e+00> : vector<8x64xf32>
    %280 = tpu.matmul %277, %279, %cst_158 {dimension_numbers = #tpu.dot_dimension_numbers<[1], [0], [0], [1], [0, 0, 1, 1], [], []>} : vector<8x32xf32>, vector<32x64xf32>, vector<8x64xf32> -> vector<8x64xf32>
    %c0_159 = arith.constant 0 : index
    %c1_160 = arith.constant 1 : index
    %c0_161 = arith.constant 0 : index
    %c0_162 = arith.constant 0 : index
    %281 = vector.load %arg12[%c0_159, %c1_160, %c0_161, %c0_162] : memref<2x2x1x64xf32, #tpu.memory_space<vmem>>, vector<1x1x1x64xf32>
    %282 = vector.shape_cast %281 : vector<1x1x1x64xf32> to vector<1x64xf32>
    %283 = vector.broadcast %282 : vector<1x64xf32> to vector<8x64xf32>
    %284 = arith.addf %280, %283 : vector<8x64xf32>
    %cst_163 = arith.constant 0.000000e+00 : f32
    %285 = vector.broadcast %cst_163 : f32 to vector<8x64xf32>
    %286 = arith.maximumf %284, %285 : vector<8x64xf32>
    %c0_164 = arith.constant 0 : index
    %c1_165 = arith.constant 1 : index
    %c0_166 = arith.constant 0 : index
    %c0_167 = arith.constant 0 : index
    %287 = vector.load %arg13[%c0_164, %c1_165, %c0_166, %c0_167] : memref<2x2x64x32xf32, #tpu.memory_space<vmem>>, vector<1x1x64x32xf32>
    %288 = vector.shape_cast %287 : vector<1x1x64x32xf32> to vector<64x32xf32>
    %cst_168 = arith.constant dense<0.000000e+00> : vector<8x32xf32>
    %289 = tpu.matmul %286, %288, %cst_168 {dimension_numbers = #tpu.dot_dimension_numbers<[1], [0], [0], [1], [0, 0, 1, 1], [], []>} : vector<8x64xf32>, vector<64x32xf32>, vector<8x32xf32> -> vector<8x32xf32>
    %c0_169 = arith.constant 0 : index
    %c1_170 = arith.constant 1 : index
    %c0_171 = arith.constant 0 : index
    %c0_172 = arith.constant 0 : index
    %290 = vector.load %arg14[%c0_169, %c1_170, %c0_171, %c0_172] : memref<2x2x1x32xf32, #tpu.memory_space<vmem>>, vector<1x1x1x32xf32>
    %291 = vector.shape_cast %290 : vector<1x1x1x32xf32> to vector<1x32xf32>
    %292 = vector.broadcast %291 : vector<1x32xf32> to vector<8x32xf32>
    %293 = arith.addf %289, %292 : vector<8x32xf32>
    %294 = arith.addf %251, %293 : vector<8x32xf32>
    %c0_173 = arith.constant 0 : index
    %c4 = arith.constant 4 : index
    %c0_174 = arith.constant 0 : index
    %c0_175 = arith.constant 0 : index
    %295 = vector.load %arg15[%c0_173, %c4, %c0_174, %c0_175] : memref<2x12x1x32xf32, #tpu.memory_space<vmem>>, vector<1x1x1x32xf32>
    %296 = vector.shape_cast %295 : vector<1x1x1x32xf32> to vector<1x32xf32>
    %c1_176 = arith.constant 1 : index
    %c4_177 = arith.constant 4 : index
    %c0_178 = arith.constant 0 : index
    %c0_179 = arith.constant 0 : index
    %297 = vector.load %arg15[%c1_176, %c4_177, %c0_178, %c0_179] : memref<2x12x1x32xf32, #tpu.memory_space<vmem>>, vector<1x1x1x32xf32>
    %298 = vector.shape_cast %297 : vector<1x1x1x32xf32> to vector<1x32xf32>
    %cst_180 = arith.constant dense<0.000000e+00> : vector<8xf32>
    %299 = vector.multi_reduction <add>, %294, %cst_180 [1] : vector<8x32xf32> to vector<8xf32>
    %300 = vector.shape_cast %299 : vector<8xf32> to vector<8x1xf32>
    %cst_181 = arith.constant 3.200000e+01 : f32
    %301 = vector.broadcast %cst_181 : f32 to vector<8x1xf32>
    %302 = arith.divf %300, %301 : vector<8x1xf32>
    %303 = vector.broadcast %302 : vector<8x1xf32> to vector<8x32xf32>
    %304 = arith.subf %294, %303 : vector<8x32xf32>
    %305 = arith.mulf %304, %304 : vector<8x32xf32>
    %cst_182 = arith.constant dense<0.000000e+00> : vector<8xf32>
    %306 = vector.multi_reduction <add>, %305, %cst_182 [1] : vector<8x32xf32> to vector<8xf32>
    %307 = vector.shape_cast %306 : vector<8xf32> to vector<8x1xf32>
    %cst_183 = arith.constant 3.200000e+01 : f32
    %308 = vector.broadcast %cst_183 : f32 to vector<8x1xf32>
    %309 = arith.divf %307, %308 : vector<8x1xf32>
    %310 = vector.broadcast %302 : vector<8x1xf32> to vector<8x32xf32>
    %311 = arith.subf %294, %310 : vector<8x32xf32>
    %312 = vector.broadcast %296 : vector<1x32xf32> to vector<8x32xf32>
    %313 = arith.mulf %312, %311 : vector<8x32xf32>
    %cst_184 = arith.constant 9.99999997E-7 : f32
    %314 = vector.broadcast %cst_184 : f32 to vector<8x1xf32>
    %315 = arith.addf %309, %314 : vector<8x1xf32>
    %316 = math.rsqrt %315 : vector<8x1xf32>
    %317 = vector.broadcast %316 : vector<8x1xf32> to vector<8x32xf32>
    %318 = arith.mulf %313, %317 : vector<8x32xf32>
    %319 = vector.broadcast %298 : vector<1x32xf32> to vector<8x32xf32>
    %320 = arith.addf %318, %319 : vector<8x32xf32>
    %c0_185 = arith.constant 0 : index
    %c5 = arith.constant 5 : index
    %c0_186 = arith.constant 0 : index
    %c0_187 = arith.constant 0 : index
    %321 = vector.load %arg15[%c0_185, %c5, %c0_186, %c0_187] : memref<2x12x1x32xf32, #tpu.memory_space<vmem>>, vector<1x1x1x32xf32>
    %322 = vector.shape_cast %321 : vector<1x1x1x32xf32> to vector<1x32xf32>
    %c1_188 = arith.constant 1 : index
    %c5_189 = arith.constant 5 : index
    %c0_190 = arith.constant 0 : index
    %c0_191 = arith.constant 0 : index
    %323 = vector.load %arg15[%c1_188, %c5_189, %c0_190, %c0_191] : memref<2x12x1x32xf32, #tpu.memory_space<vmem>>, vector<1x1x1x32xf32>
    %324 = vector.shape_cast %323 : vector<1x1x1x32xf32> to vector<1x32xf32>
    %cst_192 = arith.constant dense<0.000000e+00> : vector<8xf32>
    %325 = vector.multi_reduction <add>, %40, %cst_192 [1] : vector<8x32xf32> to vector<8xf32>
    %326 = vector.shape_cast %325 : vector<8xf32> to vector<8x1xf32>
    %cst_193 = arith.constant 3.200000e+01 : f32
    %327 = vector.broadcast %cst_193 : f32 to vector<8x1xf32>
    %328 = arith.divf %326, %327 : vector<8x1xf32>
    %329 = vector.broadcast %328 : vector<8x1xf32> to vector<8x32xf32>
    %330 = arith.subf %40, %329 : vector<8x32xf32>
    %331 = arith.mulf %330, %330 : vector<8x32xf32>
    %cst_194 = arith.constant dense<0.000000e+00> : vector<8xf32>
    %332 = vector.multi_reduction <add>, %331, %cst_194 [1] : vector<8x32xf32> to vector<8xf32>
    %333 = vector.shape_cast %332 : vector<8xf32> to vector<8x1xf32>
    %cst_195 = arith.constant 3.200000e+01 : f32
    %334 = vector.broadcast %cst_195 : f32 to vector<8x1xf32>
    %335 = arith.divf %333, %334 : vector<8x1xf32>
    %336 = vector.broadcast %328 : vector<8x1xf32> to vector<8x32xf32>
    %337 = arith.subf %40, %336 : vector<8x32xf32>
    %338 = vector.broadcast %322 : vector<1x32xf32> to vector<8x32xf32>
    %339 = arith.mulf %338, %337 : vector<8x32xf32>
    %cst_196 = arith.constant 9.99999997E-7 : f32
    %340 = vector.broadcast %cst_196 : f32 to vector<8x1xf32>
    %341 = arith.addf %335, %340 : vector<8x1xf32>
    %342 = math.rsqrt %341 : vector<8x1xf32>
    %343 = vector.broadcast %342 : vector<8x1xf32> to vector<8x32xf32>
    %344 = arith.mulf %339, %343 : vector<8x32xf32>
    %345 = vector.broadcast %324 : vector<1x32xf32> to vector<8x32xf32>
    %346 = arith.addf %344, %345 : vector<8x32xf32>
    %c1_197 = arith.constant 1 : index
    %c0_198 = arith.constant 0 : index
    %c0_199 = arith.constant 0 : index
    %c0_200 = arith.constant 0 : index
    %347 = vector.load %arg7[%c1_197, %c0_198, %c0_199, %c0_200] : memref<3x2x32x96xf32, #tpu.memory_space<vmem>>, vector<1x1x32x96xf32>
    %348 = vector.shape_cast %347 : vector<1x1x32x96xf32> to vector<32x96xf32>
    %c1_201 = arith.constant 1 : index
    %c0_202 = arith.constant 0 : index
    %c0_203 = arith.constant 0 : index
    %c0_204 = arith.constant 0 : index
    %349 = vector.load %arg8[%c1_201, %c0_202, %c0_203, %c0_204] : memref<3x2x1x96xf32, #tpu.memory_space<vmem>>, vector<1x1x1x96xf32>
    %350 = vector.shape_cast %349 : vector<1x1x1x96xf32> to vector<1x96xf32>
    %cst_205 = arith.constant dense<0.000000e+00> : vector<8x96xf32>
    %351 = tpu.matmul %346, %348, %cst_205 {dimension_numbers = #tpu.dot_dimension_numbers<[1], [0], [0], [1], [0, 0, 1, 1], [], []>} : vector<8x32xf32>, vector<32x96xf32>, vector<8x96xf32> -> vector<8x96xf32>
    %352 = vector.broadcast %350 : vector<1x96xf32> to vector<8x96xf32>
    %353 = arith.addf %351, %352 : vector<8x96xf32>
    %354 = vector.extract_strided_slice %353 {offsets = [0, 0], sizes = [8, 32], strides = [1, 1]} : vector<8x96xf32> to vector<8x32xf32>
    %355 = vector.extract_strided_slice %353 {offsets = [0, 32], sizes = [8, 32], strides = [1, 1]} : vector<8x96xf32> to vector<8x32xf32>
    %356 = vector.extract_strided_slice %353 {offsets = [0, 64], sizes = [8, 32], strides = [1, 1]} : vector<8x96xf32> to vector<8x32xf32>
    %357 = vector.extract_strided_slice %354 {offsets = [0, 0], sizes = [8, 8], strides = [1, 1]} : vector<8x32xf32> to vector<8x8xf32>
    %358 = vector.extract_strided_slice %355 {offsets = [0, 0], sizes = [8, 8], strides = [1, 1]} : vector<8x32xf32> to vector<8x8xf32>
    %cst_206 = arith.constant dense<0.000000e+00> : vector<8x8xf32>
    %359 = tpu.matmul %357, %358, %cst_206 {dimension_numbers = #tpu.dot_dimension_numbers<[1], [1], [0], [0], [0, 0, 1, 0], [], []>} : vector<8x8xf32>, vector<8x8xf32>, vector<8x8xf32> -> vector<8x8xf32>
    %360 = vector.extract_strided_slice %354 {offsets = [0, 8], sizes = [8, 8], strides = [1, 1]} : vector<8x32xf32> to vector<8x8xf32>
    %361 = vector.extract_strided_slice %355 {offsets = [0, 8], sizes = [8, 8], strides = [1, 1]} : vector<8x32xf32> to vector<8x8xf32>
    %cst_207 = arith.constant dense<0.000000e+00> : vector<8x8xf32>
    %362 = tpu.matmul %360, %361, %cst_207 {dimension_numbers = #tpu.dot_dimension_numbers<[1], [1], [0], [0], [0, 0, 1, 0], [], []>} : vector<8x8xf32>, vector<8x8xf32>, vector<8x8xf32> -> vector<8x8xf32>
    %363 = vector.extract_strided_slice %354 {offsets = [0, 16], sizes = [8, 8], strides = [1, 1]} : vector<8x32xf32> to vector<8x8xf32>
    %364 = vector.extract_strided_slice %355 {offsets = [0, 16], sizes = [8, 8], strides = [1, 1]} : vector<8x32xf32> to vector<8x8xf32>
    %cst_208 = arith.constant dense<0.000000e+00> : vector<8x8xf32>
    %365 = tpu.matmul %363, %364, %cst_208 {dimension_numbers = #tpu.dot_dimension_numbers<[1], [1], [0], [0], [0, 0, 1, 0], [], []>} : vector<8x8xf32>, vector<8x8xf32>, vector<8x8xf32> -> vector<8x8xf32>
    %366 = vector.extract_strided_slice %354 {offsets = [0, 24], sizes = [8, 8], strides = [1, 1]} : vector<8x32xf32> to vector<8x8xf32>
    %367 = vector.extract_strided_slice %355 {offsets = [0, 24], sizes = [8, 8], strides = [1, 1]} : vector<8x32xf32> to vector<8x8xf32>
    %cst_209 = arith.constant dense<0.000000e+00> : vector<8x8xf32>
    %368 = tpu.matmul %366, %367, %cst_209 {dimension_numbers = #tpu.dot_dimension_numbers<[1], [1], [0], [0], [0, 0, 1, 0], [], []>} : vector<8x8xf32>, vector<8x8xf32>, vector<8x8xf32> -> vector<8x8xf32>
    %369 = tpu.concatenate %359, %362, %365, %368 in 0 : vector<8x8xf32>, vector<8x8xf32>, vector<8x8xf32>, vector<8x8xf32> -> vector<32x8xf32>
    %cst_210 = arith.constant 0.353553385 : f32
    %370 = vector.broadcast %cst_210 : f32 to vector<32x8xf32>
    %371 = arith.mulf %369, %370 : vector<32x8xf32>
    %372 = arith.addf %371, %12 : vector<32x8xf32>
    %cst_211 = arith.constant dense<0xFF800000> : vector<32xf32>
    %373 = vector.multi_reduction <maximumf>, %372, %cst_211 [1] : vector<32x8xf32> to vector<32xf32>
    %374 = vector.shape_cast %373 : vector<32xf32> to vector<32x1xf32>
    %375 = vector.broadcast %374 : vector<32x1xf32> to vector<32x8xf32>
    %376 = arith.subf %372, %375 : vector<32x8xf32>
    %377 = math.exp %376 : vector<32x8xf32>
    %cst_212 = arith.constant dense<0.000000e+00> : vector<32xf32>
    %378 = vector.multi_reduction <add>, %377, %cst_212 [1] : vector<32x8xf32> to vector<32xf32>
    %379 = vector.shape_cast %378 : vector<32xf32> to vector<32x1xf32>
    %380 = tpu.reciprocal %379 {approx = true} : vector<32x1xf32> -> vector<32x1xf32>
    %381 = vector.broadcast %380 : vector<32x1xf32> to vector<32x8xf32>
    %382 = arith.mulf %377, %381 : vector<32x8xf32>
    %383 = vector.extract_strided_slice %382 {offsets = [0, 0], sizes = [8, 8], strides = [1, 1]} : vector<32x8xf32> to vector<8x8xf32>
    %384 = vector.extract_strided_slice %356 {offsets = [0, 0], sizes = [8, 8], strides = [1, 1]} : vector<8x32xf32> to vector<8x8xf32>
    %cst_213 = arith.constant dense<0.000000e+00> : vector<8x8xf32>
    %385 = tpu.matmul %383, %384, %cst_213 {dimension_numbers = #tpu.dot_dimension_numbers<[1], [0], [0], [1], [0, 0, 1, 1], [], []>} : vector<8x8xf32>, vector<8x8xf32>, vector<8x8xf32> -> vector<8x8xf32>
    %386 = vector.extract_strided_slice %382 {offsets = [8, 0], sizes = [8, 8], strides = [1, 1]} : vector<32x8xf32> to vector<8x8xf32>
    %387 = vector.extract_strided_slice %356 {offsets = [0, 8], sizes = [8, 8], strides = [1, 1]} : vector<8x32xf32> to vector<8x8xf32>
    %cst_214 = arith.constant dense<0.000000e+00> : vector<8x8xf32>
    %388 = tpu.matmul %386, %387, %cst_214 {dimension_numbers = #tpu.dot_dimension_numbers<[1], [0], [0], [1], [0, 0, 1, 1], [], []>} : vector<8x8xf32>, vector<8x8xf32>, vector<8x8xf32> -> vector<8x8xf32>
    %389 = vector.extract_strided_slice %382 {offsets = [16, 0], sizes = [8, 8], strides = [1, 1]} : vector<32x8xf32> to vector<8x8xf32>
    %390 = vector.extract_strided_slice %356 {offsets = [0, 16], sizes = [8, 8], strides = [1, 1]} : vector<8x32xf32> to vector<8x8xf32>
    %cst_215 = arith.constant dense<0.000000e+00> : vector<8x8xf32>
    %391 = tpu.matmul %389, %390, %cst_215 {dimension_numbers = #tpu.dot_dimension_numbers<[1], [0], [0], [1], [0, 0, 1, 1], [], []>} : vector<8x8xf32>, vector<8x8xf32>, vector<8x8xf32> -> vector<8x8xf32>
    %392 = vector.extract_strided_slice %382 {offsets = [24, 0], sizes = [8, 8], strides = [1, 1]} : vector<32x8xf32> to vector<8x8xf32>
    %393 = vector.extract_strided_slice %356 {offsets = [0, 24], sizes = [8, 8], strides = [1, 1]} : vector<8x32xf32> to vector<8x8xf32>
    %cst_216 = arith.constant dense<0.000000e+00> : vector<8x8xf32>
    %394 = tpu.matmul %392, %393, %cst_216 {dimension_numbers = #tpu.dot_dimension_numbers<[1], [0], [0], [1], [0, 0, 1, 1], [], []>} : vector<8x8xf32>, vector<8x8xf32>, vector<8x8xf32> -> vector<8x8xf32>
    %395 = tpu.concatenate %385, %388, %391, %394 in 1 : vector<8x8xf32>, vector<8x8xf32>, vector<8x8xf32>, vector<8x8xf32> -> vector<8x32xf32>
    %c1_217 = arith.constant 1 : index
    %c0_218 = arith.constant 0 : index
    %c0_219 = arith.constant 0 : index
    %c0_220 = arith.constant 0 : index
    %396 = vector.load %arg9[%c1_217, %c0_218, %c0_219, %c0_220] : memref<3x2x32x32xf32, #tpu.memory_space<vmem>>, vector<1x1x32x32xf32>
    %397 = vector.shape_cast %396 : vector<1x1x32x32xf32> to vector<32x32xf32>
    %cst_221 = arith.constant dense<0.000000e+00> : vector<8x32xf32>
    %398 = tpu.matmul %395, %397, %cst_221 {dimension_numbers = #tpu.dot_dimension_numbers<[1], [0], [0], [1], [0, 0, 1, 1], [], []>} : vector<8x32xf32>, vector<32x32xf32>, vector<8x32xf32> -> vector<8x32xf32>
    %c1_222 = arith.constant 1 : index
    %c0_223 = arith.constant 0 : index
    %c0_224 = arith.constant 0 : index
    %c0_225 = arith.constant 0 : index
    %399 = vector.load %arg10[%c1_222, %c0_223, %c0_224, %c0_225] : memref<3x2x1x32xf32, #tpu.memory_space<vmem>>, vector<1x1x1x32xf32>
    %400 = vector.shape_cast %399 : vector<1x1x1x32xf32> to vector<1x32xf32>
    %401 = vector.broadcast %400 : vector<1x32xf32> to vector<8x32xf32>
    %402 = arith.addf %398, %401 : vector<8x32xf32>
    %403 = arith.addf %40, %402 : vector<8x32xf32>
    %c0_226 = arith.constant 0 : index
    %c6 = arith.constant 6 : index
    %c0_227 = arith.constant 0 : index
    %c0_228 = arith.constant 0 : index
    %404 = vector.load %arg15[%c0_226, %c6, %c0_227, %c0_228] : memref<2x12x1x32xf32, #tpu.memory_space<vmem>>, vector<1x1x1x32xf32>
    %405 = vector.shape_cast %404 : vector<1x1x1x32xf32> to vector<1x32xf32>
    %c1_229 = arith.constant 1 : index
    %c6_230 = arith.constant 6 : index
    %c0_231 = arith.constant 0 : index
    %c0_232 = arith.constant 0 : index
    %406 = vector.load %arg15[%c1_229, %c6_230, %c0_231, %c0_232] : memref<2x12x1x32xf32, #tpu.memory_space<vmem>>, vector<1x1x1x32xf32>
    %407 = vector.shape_cast %406 : vector<1x1x1x32xf32> to vector<1x32xf32>
    %cst_233 = arith.constant dense<0.000000e+00> : vector<8xf32>
    %408 = vector.multi_reduction <add>, %403, %cst_233 [1] : vector<8x32xf32> to vector<8xf32>
    %409 = vector.shape_cast %408 : vector<8xf32> to vector<8x1xf32>
    %cst_234 = arith.constant 3.200000e+01 : f32
    %410 = vector.broadcast %cst_234 : f32 to vector<8x1xf32>
    %411 = arith.divf %409, %410 : vector<8x1xf32>
    %412 = vector.broadcast %411 : vector<8x1xf32> to vector<8x32xf32>
    %413 = arith.subf %403, %412 : vector<8x32xf32>
    %414 = arith.mulf %413, %413 : vector<8x32xf32>
    %cst_235 = arith.constant dense<0.000000e+00> : vector<8xf32>
    %415 = vector.multi_reduction <add>, %414, %cst_235 [1] : vector<8x32xf32> to vector<8xf32>
    %416 = vector.shape_cast %415 : vector<8xf32> to vector<8x1xf32>
    %cst_236 = arith.constant 3.200000e+01 : f32
    %417 = vector.broadcast %cst_236 : f32 to vector<8x1xf32>
    %418 = arith.divf %416, %417 : vector<8x1xf32>
    %419 = vector.broadcast %411 : vector<8x1xf32> to vector<8x32xf32>
    %420 = arith.subf %403, %419 : vector<8x32xf32>
    %421 = vector.broadcast %405 : vector<1x32xf32> to vector<8x32xf32>
    %422 = arith.mulf %421, %420 : vector<8x32xf32>
    %cst_237 = arith.constant 9.99999997E-7 : f32
    %423 = vector.broadcast %cst_237 : f32 to vector<8x1xf32>
    %424 = arith.addf %418, %423 : vector<8x1xf32>
    %425 = math.rsqrt %424 : vector<8x1xf32>
    %426 = vector.broadcast %425 : vector<8x1xf32> to vector<8x32xf32>
    %427 = arith.mulf %422, %426 : vector<8x32xf32>
    %428 = vector.broadcast %407 : vector<1x32xf32> to vector<8x32xf32>
    %429 = arith.addf %427, %428 : vector<8x32xf32>
    %c2_238 = arith.constant 2 : index
    %c0_239 = arith.constant 0 : index
    %c0_240 = arith.constant 0 : index
    %c0_241 = arith.constant 0 : index
    %430 = vector.load %arg7[%c2_238, %c0_239, %c0_240, %c0_241] : memref<3x2x32x96xf32, #tpu.memory_space<vmem>>, vector<1x1x32x96xf32>
    %431 = vector.shape_cast %430 : vector<1x1x32x96xf32> to vector<32x96xf32>
    %c2_242 = arith.constant 2 : index
    %c0_243 = arith.constant 0 : index
    %c0_244 = arith.constant 0 : index
    %c0_245 = arith.constant 0 : index
    %432 = vector.load %arg8[%c2_242, %c0_243, %c0_244, %c0_245] : memref<3x2x1x96xf32, #tpu.memory_space<vmem>>, vector<1x1x1x96xf32>
    %433 = vector.shape_cast %432 : vector<1x1x1x96xf32> to vector<1x96xf32>
    %434 = vector.extract_strided_slice %431 {offsets = [0, 0], sizes = [32, 32], strides = [1, 1]} : vector<32x96xf32> to vector<32x32xf32>
    %cst_246 = arith.constant dense<0.000000e+00> : vector<8x32xf32>
    %435 = tpu.matmul %429, %434, %cst_246 {dimension_numbers = #tpu.dot_dimension_numbers<[1], [0], [0], [1], [0, 0, 1, 1], [], []>} : vector<8x32xf32>, vector<32x32xf32>, vector<8x32xf32> -> vector<8x32xf32>
    %436 = vector.extract_strided_slice %433 {offsets = [0, 0], sizes = [1, 32], strides = [1, 1]} : vector<1x96xf32> to vector<1x32xf32>
    %437 = vector.broadcast %436 : vector<1x32xf32> to vector<8x32xf32>
    %438 = arith.addf %435, %437 : vector<8x32xf32>
    %439 = vector.extract_strided_slice %431 {offsets = [0, 32], sizes = [32, 64], strides = [1, 1]} : vector<32x96xf32> to vector<32x64xf32>
    %cst_247 = arith.constant dense<0.000000e+00> : vector<8x64xf32>
    %440 = tpu.matmul %320, %439, %cst_247 {dimension_numbers = #tpu.dot_dimension_numbers<[1], [0], [0], [1], [0, 0, 1, 1], [], []>} : vector<8x32xf32>, vector<32x64xf32>, vector<8x64xf32> -> vector<8x64xf32>
    %441 = vector.extract_strided_slice %433 {offsets = [0, 32], sizes = [1, 64], strides = [1, 1]} : vector<1x96xf32> to vector<1x64xf32>
    %442 = vector.broadcast %441 : vector<1x64xf32> to vector<8x64xf32>
    %443 = arith.addf %440, %442 : vector<8x64xf32>
    %444 = vector.extract_strided_slice %443 {offsets = [0, 0], sizes = [8, 32], strides = [1, 1]} : vector<8x64xf32> to vector<8x32xf32>
    %445 = vector.extract_strided_slice %443 {offsets = [0, 32], sizes = [8, 32], strides = [1, 1]} : vector<8x64xf32> to vector<8x32xf32>
    %446 = vector.extract_strided_slice %438 {offsets = [0, 0], sizes = [8, 8], strides = [1, 1]} : vector<8x32xf32> to vector<8x8xf32>
    %447 = vector.extract_strided_slice %444 {offsets = [0, 0], sizes = [8, 8], strides = [1, 1]} : vector<8x32xf32> to vector<8x8xf32>
    %cst_248 = arith.constant dense<0.000000e+00> : vector<8x8xf32>
    %448 = tpu.matmul %446, %447, %cst_248 {dimension_numbers = #tpu.dot_dimension_numbers<[1], [1], [0], [0], [0, 0, 1, 0], [], []>} : vector<8x8xf32>, vector<8x8xf32>, vector<8x8xf32> -> vector<8x8xf32>
    %449 = vector.extract_strided_slice %438 {offsets = [0, 8], sizes = [8, 8], strides = [1, 1]} : vector<8x32xf32> to vector<8x8xf32>
    %450 = vector.extract_strided_slice %444 {offsets = [0, 8], sizes = [8, 8], strides = [1, 1]} : vector<8x32xf32> to vector<8x8xf32>
    %cst_249 = arith.constant dense<0.000000e+00> : vector<8x8xf32>
    %451 = tpu.matmul %449, %450, %cst_249 {dimension_numbers = #tpu.dot_dimension_numbers<[1], [1], [0], [0], [0, 0, 1, 0], [], []>} : vector<8x8xf32>, vector<8x8xf32>, vector<8x8xf32> -> vector<8x8xf32>
    %452 = vector.extract_strided_slice %438 {offsets = [0, 16], sizes = [8, 8], strides = [1, 1]} : vector<8x32xf32> to vector<8x8xf32>
    %453 = vector.extract_strided_slice %444 {offsets = [0, 16], sizes = [8, 8], strides = [1, 1]} : vector<8x32xf32> to vector<8x8xf32>
    %cst_250 = arith.constant dense<0.000000e+00> : vector<8x8xf32>
    %454 = tpu.matmul %452, %453, %cst_250 {dimension_numbers = #tpu.dot_dimension_numbers<[1], [1], [0], [0], [0, 0, 1, 0], [], []>} : vector<8x8xf32>, vector<8x8xf32>, vector<8x8xf32> -> vector<8x8xf32>
    %455 = vector.extract_strided_slice %438 {offsets = [0, 24], sizes = [8, 8], strides = [1, 1]} : vector<8x32xf32> to vector<8x8xf32>
    %456 = vector.extract_strided_slice %444 {offsets = [0, 24], sizes = [8, 8], strides = [1, 1]} : vector<8x32xf32> to vector<8x8xf32>
    %cst_251 = arith.constant dense<0.000000e+00> : vector<8x8xf32>
    %457 = tpu.matmul %455, %456, %cst_251 {dimension_numbers = #tpu.dot_dimension_numbers<[1], [1], [0], [0], [0, 0, 1, 0], [], []>} : vector<8x8xf32>, vector<8x8xf32>, vector<8x8xf32> -> vector<8x8xf32>
    %458 = tpu.concatenate %448, %451, %454, %457 in 0 : vector<8x8xf32>, vector<8x8xf32>, vector<8x8xf32>, vector<8x8xf32> -> vector<32x8xf32>
    %cst_252 = arith.constant 0.353553385 : f32
    %459 = vector.broadcast %cst_252 : f32 to vector<32x8xf32>
    %460 = arith.mulf %458, %459 : vector<32x8xf32>
    %461 = vector.broadcast %5 : vector<1x8xf32> to vector<32x8xf32>
    %462 = arith.addf %460, %461 : vector<32x8xf32>
    %cst_253 = arith.constant dense<0xFF800000> : vector<32xf32>
    %463 = vector.multi_reduction <maximumf>, %462, %cst_253 [1] : vector<32x8xf32> to vector<32xf32>
    %464 = vector.shape_cast %463 : vector<32xf32> to vector<32x1xf32>
    %465 = vector.broadcast %464 : vector<32x1xf32> to vector<32x8xf32>
    %466 = arith.subf %462, %465 : vector<32x8xf32>
    %467 = math.exp %466 : vector<32x8xf32>
    %cst_254 = arith.constant dense<0.000000e+00> : vector<32xf32>
    %468 = vector.multi_reduction <add>, %467, %cst_254 [1] : vector<32x8xf32> to vector<32xf32>
    %469 = vector.shape_cast %468 : vector<32xf32> to vector<32x1xf32>
    %470 = tpu.reciprocal %469 {approx = true} : vector<32x1xf32> -> vector<32x1xf32>
    %471 = vector.broadcast %470 : vector<32x1xf32> to vector<32x8xf32>
    %472 = arith.mulf %467, %471 : vector<32x8xf32>
    %473 = vector.extract_strided_slice %472 {offsets = [0, 0], sizes = [8, 8], strides = [1, 1]} : vector<32x8xf32> to vector<8x8xf32>
    %474 = vector.extract_strided_slice %445 {offsets = [0, 0], sizes = [8, 8], strides = [1, 1]} : vector<8x32xf32> to vector<8x8xf32>
    %cst_255 = arith.constant dense<0.000000e+00> : vector<8x8xf32>
    %475 = tpu.matmul %473, %474, %cst_255 {dimension_numbers = #tpu.dot_dimension_numbers<[1], [0], [0], [1], [0, 0, 1, 1], [], []>} : vector<8x8xf32>, vector<8x8xf32>, vector<8x8xf32> -> vector<8x8xf32>
    %476 = vector.extract_strided_slice %472 {offsets = [8, 0], sizes = [8, 8], strides = [1, 1]} : vector<32x8xf32> to vector<8x8xf32>
    %477 = vector.extract_strided_slice %445 {offsets = [0, 8], sizes = [8, 8], strides = [1, 1]} : vector<8x32xf32> to vector<8x8xf32>
    %cst_256 = arith.constant dense<0.000000e+00> : vector<8x8xf32>
    %478 = tpu.matmul %476, %477, %cst_256 {dimension_numbers = #tpu.dot_dimension_numbers<[1], [0], [0], [1], [0, 0, 1, 1], [], []>} : vector<8x8xf32>, vector<8x8xf32>, vector<8x8xf32> -> vector<8x8xf32>
    %479 = vector.extract_strided_slice %472 {offsets = [16, 0], sizes = [8, 8], strides = [1, 1]} : vector<32x8xf32> to vector<8x8xf32>
    %480 = vector.extract_strided_slice %445 {offsets = [0, 16], sizes = [8, 8], strides = [1, 1]} : vector<8x32xf32> to vector<8x8xf32>
    %cst_257 = arith.constant dense<0.000000e+00> : vector<8x8xf32>
    %481 = tpu.matmul %479, %480, %cst_257 {dimension_numbers = #tpu.dot_dimension_numbers<[1], [0], [0], [1], [0, 0, 1, 1], [], []>} : vector<8x8xf32>, vector<8x8xf32>, vector<8x8xf32> -> vector<8x8xf32>
    %482 = vector.extract_strided_slice %472 {offsets = [24, 0], sizes = [8, 8], strides = [1, 1]} : vector<32x8xf32> to vector<8x8xf32>
    %483 = vector.extract_strided_slice %445 {offsets = [0, 24], sizes = [8, 8], strides = [1, 1]} : vector<8x32xf32> to vector<8x8xf32>
    %cst_258 = arith.constant dense<0.000000e+00> : vector<8x8xf32>
    %484 = tpu.matmul %482, %483, %cst_258 {dimension_numbers = #tpu.dot_dimension_numbers<[1], [0], [0], [1], [0, 0, 1, 1], [], []>} : vector<8x8xf32>, vector<8x8xf32>, vector<8x8xf32> -> vector<8x8xf32>
    %485 = tpu.concatenate %475, %478, %481, %484 in 1 : vector<8x8xf32>, vector<8x8xf32>, vector<8x8xf32>, vector<8x8xf32> -> vector<8x32xf32>
    %c2_259 = arith.constant 2 : index
    %c0_260 = arith.constant 0 : index
    %c0_261 = arith.constant 0 : index
    %c0_262 = arith.constant 0 : index
    %486 = vector.load %arg9[%c2_259, %c0_260, %c0_261, %c0_262] : memref<3x2x32x32xf32, #tpu.memory_space<vmem>>, vector<1x1x32x32xf32>
    %487 = vector.shape_cast %486 : vector<1x1x32x32xf32> to vector<32x32xf32>
    %cst_263 = arith.constant dense<0.000000e+00> : vector<8x32xf32>
    %488 = tpu.matmul %485, %487, %cst_263 {dimension_numbers = #tpu.dot_dimension_numbers<[1], [0], [0], [1], [0, 0, 1, 1], [], []>} : vector<8x32xf32>, vector<32x32xf32>, vector<8x32xf32> -> vector<8x32xf32>
    %c2_264 = arith.constant 2 : index
    %c0_265 = arith.constant 0 : index
    %c0_266 = arith.constant 0 : index
    %c0_267 = arith.constant 0 : index
    %489 = vector.load %arg10[%c2_264, %c0_265, %c0_266, %c0_267] : memref<3x2x1x32xf32, #tpu.memory_space<vmem>>, vector<1x1x1x32xf32>
    %490 = vector.shape_cast %489 : vector<1x1x1x32xf32> to vector<1x32xf32>
    %491 = vector.broadcast %490 : vector<1x32xf32> to vector<8x32xf32>
    %492 = arith.addf %488, %491 : vector<8x32xf32>
    %493 = arith.addf %403, %492 : vector<8x32xf32>
    %c0_268 = arith.constant 0 : index
    %c7 = arith.constant 7 : index
    %c0_269 = arith.constant 0 : index
    %c0_270 = arith.constant 0 : index
    %494 = vector.load %arg15[%c0_268, %c7, %c0_269, %c0_270] : memref<2x12x1x32xf32, #tpu.memory_space<vmem>>, vector<1x1x1x32xf32>
    %495 = vector.shape_cast %494 : vector<1x1x1x32xf32> to vector<1x32xf32>
    %c1_271 = arith.constant 1 : index
    %c7_272 = arith.constant 7 : index
    %c0_273 = arith.constant 0 : index
    %c0_274 = arith.constant 0 : index
    %496 = vector.load %arg15[%c1_271, %c7_272, %c0_273, %c0_274] : memref<2x12x1x32xf32, #tpu.memory_space<vmem>>, vector<1x1x1x32xf32>
    %497 = vector.shape_cast %496 : vector<1x1x1x32xf32> to vector<1x32xf32>
    %cst_275 = arith.constant dense<0.000000e+00> : vector<8xf32>
    %498 = vector.multi_reduction <add>, %493, %cst_275 [1] : vector<8x32xf32> to vector<8xf32>
    %499 = vector.shape_cast %498 : vector<8xf32> to vector<8x1xf32>
    %cst_276 = arith.constant 3.200000e+01 : f32
    %500 = vector.broadcast %cst_276 : f32 to vector<8x1xf32>
    %501 = arith.divf %499, %500 : vector<8x1xf32>
    %502 = vector.broadcast %501 : vector<8x1xf32> to vector<8x32xf32>
    %503 = arith.subf %493, %502 : vector<8x32xf32>
    %504 = arith.mulf %503, %503 : vector<8x32xf32>
    %cst_277 = arith.constant dense<0.000000e+00> : vector<8xf32>
    %505 = vector.multi_reduction <add>, %504, %cst_277 [1] : vector<8x32xf32> to vector<8xf32>
    %506 = vector.shape_cast %505 : vector<8xf32> to vector<8x1xf32>
    %cst_278 = arith.constant 3.200000e+01 : f32
    %507 = vector.broadcast %cst_278 : f32 to vector<8x1xf32>
    %508 = arith.divf %506, %507 : vector<8x1xf32>
    %509 = vector.broadcast %501 : vector<8x1xf32> to vector<8x32xf32>
    %510 = arith.subf %493, %509 : vector<8x32xf32>
    %511 = vector.broadcast %495 : vector<1x32xf32> to vector<8x32xf32>
    %512 = arith.mulf %511, %510 : vector<8x32xf32>
    %cst_279 = arith.constant 9.99999997E-7 : f32
    %513 = vector.broadcast %cst_279 : f32 to vector<8x1xf32>
    %514 = arith.addf %508, %513 : vector<8x1xf32>
    %515 = math.rsqrt %514 : vector<8x1xf32>
    %516 = vector.broadcast %515 : vector<8x1xf32> to vector<8x32xf32>
    %517 = arith.mulf %512, %516 : vector<8x32xf32>
    %518 = vector.broadcast %497 : vector<1x32xf32> to vector<8x32xf32>
    %519 = arith.addf %517, %518 : vector<8x32xf32>
    %c1_280 = arith.constant 1 : index
    %c0_281 = arith.constant 0 : index
    %c0_282 = arith.constant 0 : index
    %c0_283 = arith.constant 0 : index
    %520 = vector.load %arg11[%c1_280, %c0_281, %c0_282, %c0_283] : memref<2x2x32x64xf32, #tpu.memory_space<vmem>>, vector<1x1x32x64xf32>
    %521 = vector.shape_cast %520 : vector<1x1x32x64xf32> to vector<32x64xf32>
    %cst_284 = arith.constant dense<0.000000e+00> : vector<8x64xf32>
    %522 = tpu.matmul %519, %521, %cst_284 {dimension_numbers = #tpu.dot_dimension_numbers<[1], [0], [0], [1], [0, 0, 1, 1], [], []>} : vector<8x32xf32>, vector<32x64xf32>, vector<8x64xf32> -> vector<8x64xf32>
    %c1_285 = arith.constant 1 : index
    %c0_286 = arith.constant 0 : index
    %c0_287 = arith.constant 0 : index
    %c0_288 = arith.constant 0 : index
    %523 = vector.load %arg12[%c1_285, %c0_286, %c0_287, %c0_288] : memref<2x2x1x64xf32, #tpu.memory_space<vmem>>, vector<1x1x1x64xf32>
    %524 = vector.shape_cast %523 : vector<1x1x1x64xf32> to vector<1x64xf32>
    %525 = vector.broadcast %524 : vector<1x64xf32> to vector<8x64xf32>
    %526 = arith.addf %522, %525 : vector<8x64xf32>
    %cst_289 = arith.constant 0.000000e+00 : f32
    %527 = vector.broadcast %cst_289 : f32 to vector<8x64xf32>
    %528 = arith.maximumf %526, %527 : vector<8x64xf32>
    %c1_290 = arith.constant 1 : index
    %c0_291 = arith.constant 0 : index
    %c0_292 = arith.constant 0 : index
    %c0_293 = arith.constant 0 : index
    %529 = vector.load %arg13[%c1_290, %c0_291, %c0_292, %c0_293] : memref<2x2x64x32xf32, #tpu.memory_space<vmem>>, vector<1x1x64x32xf32>
    %530 = vector.shape_cast %529 : vector<1x1x64x32xf32> to vector<64x32xf32>
    %cst_294 = arith.constant dense<0.000000e+00> : vector<8x32xf32>
    %531 = tpu.matmul %528, %530, %cst_294 {dimension_numbers = #tpu.dot_dimension_numbers<[1], [0], [0], [1], [0, 0, 1, 1], [], []>} : vector<8x64xf32>, vector<64x32xf32>, vector<8x32xf32> -> vector<8x32xf32>
    %c1_295 = arith.constant 1 : index
    %c0_296 = arith.constant 0 : index
    %c0_297 = arith.constant 0 : index
    %c0_298 = arith.constant 0 : index
    %532 = vector.load %arg14[%c1_295, %c0_296, %c0_297, %c0_298] : memref<2x2x1x32xf32, #tpu.memory_space<vmem>>, vector<1x1x1x32xf32>
    %533 = vector.shape_cast %532 : vector<1x1x1x32xf32> to vector<1x32xf32>
    %534 = vector.broadcast %533 : vector<1x32xf32> to vector<8x32xf32>
    %535 = arith.addf %531, %534 : vector<8x32xf32>
    %536 = arith.addf %493, %535 : vector<8x32xf32>
    %c0_299 = arith.constant 0 : index
    %c8 = arith.constant 8 : index
    %c0_300 = arith.constant 0 : index
    %c0_301 = arith.constant 0 : index
    %537 = vector.load %arg15[%c0_299, %c8, %c0_300, %c0_301] : memref<2x12x1x32xf32, #tpu.memory_space<vmem>>, vector<1x1x1x32xf32>
    %538 = vector.shape_cast %537 : vector<1x1x1x32xf32> to vector<1x32xf32>
    %c1_302 = arith.constant 1 : index
    %c8_303 = arith.constant 8 : index
    %c0_304 = arith.constant 0 : index
    %c0_305 = arith.constant 0 : index
    %539 = vector.load %arg15[%c1_302, %c8_303, %c0_304, %c0_305] : memref<2x12x1x32xf32, #tpu.memory_space<vmem>>, vector<1x1x1x32xf32>
    %540 = vector.shape_cast %539 : vector<1x1x1x32xf32> to vector<1x32xf32>
    %cst_306 = arith.constant dense<0.000000e+00> : vector<8xf32>
    %541 = vector.multi_reduction <add>, %536, %cst_306 [1] : vector<8x32xf32> to vector<8xf32>
    %542 = vector.shape_cast %541 : vector<8xf32> to vector<8x1xf32>
    %cst_307 = arith.constant 3.200000e+01 : f32
    %543 = vector.broadcast %cst_307 : f32 to vector<8x1xf32>
    %544 = arith.divf %542, %543 : vector<8x1xf32>
    %545 = vector.broadcast %544 : vector<8x1xf32> to vector<8x32xf32>
    %546 = arith.subf %536, %545 : vector<8x32xf32>
    %547 = arith.mulf %546, %546 : vector<8x32xf32>
    %cst_308 = arith.constant dense<0.000000e+00> : vector<8xf32>
    %548 = vector.multi_reduction <add>, %547, %cst_308 [1] : vector<8x32xf32> to vector<8xf32>
    %549 = vector.shape_cast %548 : vector<8xf32> to vector<8x1xf32>
    %cst_309 = arith.constant 3.200000e+01 : f32
    %550 = vector.broadcast %cst_309 : f32 to vector<8x1xf32>
    %551 = arith.divf %549, %550 : vector<8x1xf32>
    %552 = vector.broadcast %544 : vector<8x1xf32> to vector<8x32xf32>
    %553 = arith.subf %536, %552 : vector<8x32xf32>
    %554 = vector.broadcast %538 : vector<1x32xf32> to vector<8x32xf32>
    %555 = arith.mulf %554, %553 : vector<8x32xf32>
    %cst_310 = arith.constant 9.99999997E-7 : f32
    %556 = vector.broadcast %cst_310 : f32 to vector<8x1xf32>
    %557 = arith.addf %551, %556 : vector<8x1xf32>
    %558 = math.rsqrt %557 : vector<8x1xf32>
    %559 = vector.broadcast %558 : vector<8x1xf32> to vector<8x32xf32>
    %560 = arith.mulf %555, %559 : vector<8x32xf32>
    %561 = vector.broadcast %540 : vector<1x32xf32> to vector<8x32xf32>
    %562 = arith.addf %560, %561 : vector<8x32xf32>
    %c1_311 = arith.constant 1 : index
    %c1_312 = arith.constant 1 : index
    %c0_313 = arith.constant 0 : index
    %c0_314 = arith.constant 0 : index
    %563 = vector.load %arg7[%c1_311, %c1_312, %c0_313, %c0_314] : memref<3x2x32x96xf32, #tpu.memory_space<vmem>>, vector<1x1x32x96xf32>
    %564 = vector.shape_cast %563 : vector<1x1x32x96xf32> to vector<32x96xf32>
    %c1_315 = arith.constant 1 : index
    %c1_316 = arith.constant 1 : index
    %c0_317 = arith.constant 0 : index
    %c0_318 = arith.constant 0 : index
    %565 = vector.load %arg8[%c1_315, %c1_316, %c0_317, %c0_318] : memref<3x2x1x96xf32, #tpu.memory_space<vmem>>, vector<1x1x1x96xf32>
    %566 = vector.shape_cast %565 : vector<1x1x1x96xf32> to vector<1x96xf32>
    %cst_319 = arith.constant dense<0.000000e+00> : vector<8x96xf32>
    %567 = tpu.matmul %562, %564, %cst_319 {dimension_numbers = #tpu.dot_dimension_numbers<[1], [0], [0], [1], [0, 0, 1, 1], [], []>} : vector<8x32xf32>, vector<32x96xf32>, vector<8x96xf32> -> vector<8x96xf32>
    %568 = vector.broadcast %566 : vector<1x96xf32> to vector<8x96xf32>
    %569 = arith.addf %567, %568 : vector<8x96xf32>
    %570 = vector.extract_strided_slice %569 {offsets = [0, 0], sizes = [8, 32], strides = [1, 1]} : vector<8x96xf32> to vector<8x32xf32>
    %571 = vector.extract_strided_slice %569 {offsets = [0, 32], sizes = [8, 32], strides = [1, 1]} : vector<8x96xf32> to vector<8x32xf32>
    %572 = vector.extract_strided_slice %569 {offsets = [0, 64], sizes = [8, 32], strides = [1, 1]} : vector<8x96xf32> to vector<8x32xf32>
    %573 = vector.extract_strided_slice %570 {offsets = [0, 0], sizes = [8, 8], strides = [1, 1]} : vector<8x32xf32> to vector<8x8xf32>
    %574 = vector.extract_strided_slice %571 {offsets = [0, 0], sizes = [8, 8], strides = [1, 1]} : vector<8x32xf32> to vector<8x8xf32>
    %cst_320 = arith.constant dense<0.000000e+00> : vector<8x8xf32>
    %575 = tpu.matmul %573, %574, %cst_320 {dimension_numbers = #tpu.dot_dimension_numbers<[1], [1], [0], [0], [0, 0, 1, 0], [], []>} : vector<8x8xf32>, vector<8x8xf32>, vector<8x8xf32> -> vector<8x8xf32>
    %576 = vector.extract_strided_slice %570 {offsets = [0, 8], sizes = [8, 8], strides = [1, 1]} : vector<8x32xf32> to vector<8x8xf32>
    %577 = vector.extract_strided_slice %571 {offsets = [0, 8], sizes = [8, 8], strides = [1, 1]} : vector<8x32xf32> to vector<8x8xf32>
    %cst_321 = arith.constant dense<0.000000e+00> : vector<8x8xf32>
    %578 = tpu.matmul %576, %577, %cst_321 {dimension_numbers = #tpu.dot_dimension_numbers<[1], [1], [0], [0], [0, 0, 1, 0], [], []>} : vector<8x8xf32>, vector<8x8xf32>, vector<8x8xf32> -> vector<8x8xf32>
    %579 = vector.extract_strided_slice %570 {offsets = [0, 16], sizes = [8, 8], strides = [1, 1]} : vector<8x32xf32> to vector<8x8xf32>
    %580 = vector.extract_strided_slice %571 {offsets = [0, 16], sizes = [8, 8], strides = [1, 1]} : vector<8x32xf32> to vector<8x8xf32>
    %cst_322 = arith.constant dense<0.000000e+00> : vector<8x8xf32>
    %581 = tpu.matmul %579, %580, %cst_322 {dimension_numbers = #tpu.dot_dimension_numbers<[1], [1], [0], [0], [0, 0, 1, 0], [], []>} : vector<8x8xf32>, vector<8x8xf32>, vector<8x8xf32> -> vector<8x8xf32>
    %582 = vector.extract_strided_slice %570 {offsets = [0, 24], sizes = [8, 8], strides = [1, 1]} : vector<8x32xf32> to vector<8x8xf32>
    %583 = vector.extract_strided_slice %571 {offsets = [0, 24], sizes = [8, 8], strides = [1, 1]} : vector<8x32xf32> to vector<8x8xf32>
    %cst_323 = arith.constant dense<0.000000e+00> : vector<8x8xf32>
    %584 = tpu.matmul %582, %583, %cst_323 {dimension_numbers = #tpu.dot_dimension_numbers<[1], [1], [0], [0], [0, 0, 1, 0], [], []>} : vector<8x8xf32>, vector<8x8xf32>, vector<8x8xf32> -> vector<8x8xf32>
    %585 = tpu.concatenate %575, %578, %581, %584 in 0 : vector<8x8xf32>, vector<8x8xf32>, vector<8x8xf32>, vector<8x8xf32> -> vector<32x8xf32>
    %cst_324 = arith.constant 0.353553385 : f32
    %586 = vector.broadcast %cst_324 : f32 to vector<32x8xf32>
    %587 = arith.mulf %585, %586 : vector<32x8xf32>
    %588 = arith.addf %587, %12 : vector<32x8xf32>
    %cst_325 = arith.constant dense<0xFF800000> : vector<32xf32>
    %589 = vector.multi_reduction <maximumf>, %588, %cst_325 [1] : vector<32x8xf32> to vector<32xf32>
    %590 = vector.shape_cast %589 : vector<32xf32> to vector<32x1xf32>
    %591 = vector.broadcast %590 : vector<32x1xf32> to vector<32x8xf32>
    %592 = arith.subf %588, %591 : vector<32x8xf32>
    %593 = math.exp %592 : vector<32x8xf32>
    %cst_326 = arith.constant dense<0.000000e+00> : vector<32xf32>
    %594 = vector.multi_reduction <add>, %593, %cst_326 [1] : vector<32x8xf32> to vector<32xf32>
    %595 = vector.shape_cast %594 : vector<32xf32> to vector<32x1xf32>
    %596 = tpu.reciprocal %595 {approx = true} : vector<32x1xf32> -> vector<32x1xf32>
    %597 = vector.broadcast %596 : vector<32x1xf32> to vector<32x8xf32>
    %598 = arith.mulf %593, %597 : vector<32x8xf32>
    %599 = vector.extract_strided_slice %598 {offsets = [0, 0], sizes = [8, 8], strides = [1, 1]} : vector<32x8xf32> to vector<8x8xf32>
    %600 = vector.extract_strided_slice %572 {offsets = [0, 0], sizes = [8, 8], strides = [1, 1]} : vector<8x32xf32> to vector<8x8xf32>
    %cst_327 = arith.constant dense<0.000000e+00> : vector<8x8xf32>
    %601 = tpu.matmul %599, %600, %cst_327 {dimension_numbers = #tpu.dot_dimension_numbers<[1], [0], [0], [1], [0, 0, 1, 1], [], []>} : vector<8x8xf32>, vector<8x8xf32>, vector<8x8xf32> -> vector<8x8xf32>
    %602 = vector.extract_strided_slice %598 {offsets = [8, 0], sizes = [8, 8], strides = [1, 1]} : vector<32x8xf32> to vector<8x8xf32>
    %603 = vector.extract_strided_slice %572 {offsets = [0, 8], sizes = [8, 8], strides = [1, 1]} : vector<8x32xf32> to vector<8x8xf32>
    %cst_328 = arith.constant dense<0.000000e+00> : vector<8x8xf32>
    %604 = tpu.matmul %602, %603, %cst_328 {dimension_numbers = #tpu.dot_dimension_numbers<[1], [0], [0], [1], [0, 0, 1, 1], [], []>} : vector<8x8xf32>, vector<8x8xf32>, vector<8x8xf32> -> vector<8x8xf32>
    %605 = vector.extract_strided_slice %598 {offsets = [16, 0], sizes = [8, 8], strides = [1, 1]} : vector<32x8xf32> to vector<8x8xf32>
    %606 = vector.extract_strided_slice %572 {offsets = [0, 16], sizes = [8, 8], strides = [1, 1]} : vector<8x32xf32> to vector<8x8xf32>
    %cst_329 = arith.constant dense<0.000000e+00> : vector<8x8xf32>
    %607 = tpu.matmul %605, %606, %cst_329 {dimension_numbers = #tpu.dot_dimension_numbers<[1], [0], [0], [1], [0, 0, 1, 1], [], []>} : vector<8x8xf32>, vector<8x8xf32>, vector<8x8xf32> -> vector<8x8xf32>
    %608 = vector.extract_strided_slice %598 {offsets = [24, 0], sizes = [8, 8], strides = [1, 1]} : vector<32x8xf32> to vector<8x8xf32>
    %609 = vector.extract_strided_slice %572 {offsets = [0, 24], sizes = [8, 8], strides = [1, 1]} : vector<8x32xf32> to vector<8x8xf32>
    %cst_330 = arith.constant dense<0.000000e+00> : vector<8x8xf32>
    %610 = tpu.matmul %608, %609, %cst_330 {dimension_numbers = #tpu.dot_dimension_numbers<[1], [0], [0], [1], [0, 0, 1, 1], [], []>} : vector<8x8xf32>, vector<8x8xf32>, vector<8x8xf32> -> vector<8x8xf32>
    %611 = tpu.concatenate %601, %604, %607, %610 in 1 : vector<8x8xf32>, vector<8x8xf32>, vector<8x8xf32>, vector<8x8xf32> -> vector<8x32xf32>
    %c1_331 = arith.constant 1 : index
    %c1_332 = arith.constant 1 : index
    %c0_333 = arith.constant 0 : index
    %c0_334 = arith.constant 0 : index
    %612 = vector.load %arg9[%c1_331, %c1_332, %c0_333, %c0_334] : memref<3x2x32x32xf32, #tpu.memory_space<vmem>>, vector<1x1x32x32xf32>
    %613 = vector.shape_cast %612 : vector<1x1x32x32xf32> to vector<32x32xf32>
    %cst_335 = arith.constant dense<0.000000e+00> : vector<8x32xf32>
    %614 = tpu.matmul %611, %613, %cst_335 {dimension_numbers = #tpu.dot_dimension_numbers<[1], [0], [0], [1], [0, 0, 1, 1], [], []>} : vector<8x32xf32>, vector<32x32xf32>, vector<8x32xf32> -> vector<8x32xf32>
    %c1_336 = arith.constant 1 : index
    %c1_337 = arith.constant 1 : index
    %c0_338 = arith.constant 0 : index
    %c0_339 = arith.constant 0 : index
    %615 = vector.load %arg10[%c1_336, %c1_337, %c0_338, %c0_339] : memref<3x2x1x32xf32, #tpu.memory_space<vmem>>, vector<1x1x1x32xf32>
    %616 = vector.shape_cast %615 : vector<1x1x1x32xf32> to vector<1x32xf32>
    %617 = vector.broadcast %616 : vector<1x32xf32> to vector<8x32xf32>
    %618 = arith.addf %614, %617 : vector<8x32xf32>
    %619 = arith.addf %536, %618 : vector<8x32xf32>
    %c0_340 = arith.constant 0 : index
    %c9 = arith.constant 9 : index
    %c0_341 = arith.constant 0 : index
    %c0_342 = arith.constant 0 : index
    %620 = vector.load %arg15[%c0_340, %c9, %c0_341, %c0_342] : memref<2x12x1x32xf32, #tpu.memory_space<vmem>>, vector<1x1x1x32xf32>
    %621 = vector.shape_cast %620 : vector<1x1x1x32xf32> to vector<1x32xf32>
    %c1_343 = arith.constant 1 : index
    %c9_344 = arith.constant 9 : index
    %c0_345 = arith.constant 0 : index
    %c0_346 = arith.constant 0 : index
    %622 = vector.load %arg15[%c1_343, %c9_344, %c0_345, %c0_346] : memref<2x12x1x32xf32, #tpu.memory_space<vmem>>, vector<1x1x1x32xf32>
    %623 = vector.shape_cast %622 : vector<1x1x1x32xf32> to vector<1x32xf32>
    %cst_347 = arith.constant dense<0.000000e+00> : vector<8xf32>
    %624 = vector.multi_reduction <add>, %619, %cst_347 [1] : vector<8x32xf32> to vector<8xf32>
    %625 = vector.shape_cast %624 : vector<8xf32> to vector<8x1xf32>
    %cst_348 = arith.constant 3.200000e+01 : f32
    %626 = vector.broadcast %cst_348 : f32 to vector<8x1xf32>
    %627 = arith.divf %625, %626 : vector<8x1xf32>
    %628 = vector.broadcast %627 : vector<8x1xf32> to vector<8x32xf32>
    %629 = arith.subf %619, %628 : vector<8x32xf32>
    %630 = arith.mulf %629, %629 : vector<8x32xf32>
    %cst_349 = arith.constant dense<0.000000e+00> : vector<8xf32>
    %631 = vector.multi_reduction <add>, %630, %cst_349 [1] : vector<8x32xf32> to vector<8xf32>
    %632 = vector.shape_cast %631 : vector<8xf32> to vector<8x1xf32>
    %cst_350 = arith.constant 3.200000e+01 : f32
    %633 = vector.broadcast %cst_350 : f32 to vector<8x1xf32>
    %634 = arith.divf %632, %633 : vector<8x1xf32>
    %635 = vector.broadcast %627 : vector<8x1xf32> to vector<8x32xf32>
    %636 = arith.subf %619, %635 : vector<8x32xf32>
    %637 = vector.broadcast %621 : vector<1x32xf32> to vector<8x32xf32>
    %638 = arith.mulf %637, %636 : vector<8x32xf32>
    %cst_351 = arith.constant 9.99999997E-7 : f32
    %639 = vector.broadcast %cst_351 : f32 to vector<8x1xf32>
    %640 = arith.addf %634, %639 : vector<8x1xf32>
    %641 = math.rsqrt %640 : vector<8x1xf32>
    %642 = vector.broadcast %641 : vector<8x1xf32> to vector<8x32xf32>
    %643 = arith.mulf %638, %642 : vector<8x32xf32>
    %644 = vector.broadcast %623 : vector<1x32xf32> to vector<8x32xf32>
    %645 = arith.addf %643, %644 : vector<8x32xf32>
    %c2_352 = arith.constant 2 : index
    %c1_353 = arith.constant 1 : index
    %c0_354 = arith.constant 0 : index
    %c0_355 = arith.constant 0 : index
    %646 = vector.load %arg7[%c2_352, %c1_353, %c0_354, %c0_355] : memref<3x2x32x96xf32, #tpu.memory_space<vmem>>, vector<1x1x32x96xf32>
    %647 = vector.shape_cast %646 : vector<1x1x32x96xf32> to vector<32x96xf32>
    %c2_356 = arith.constant 2 : index
    %c1_357 = arith.constant 1 : index
    %c0_358 = arith.constant 0 : index
    %c0_359 = arith.constant 0 : index
    %648 = vector.load %arg8[%c2_356, %c1_357, %c0_358, %c0_359] : memref<3x2x1x96xf32, #tpu.memory_space<vmem>>, vector<1x1x1x96xf32>
    %649 = vector.shape_cast %648 : vector<1x1x1x96xf32> to vector<1x96xf32>
    %650 = vector.extract_strided_slice %647 {offsets = [0, 0], sizes = [32, 32], strides = [1, 1]} : vector<32x96xf32> to vector<32x32xf32>
    %cst_360 = arith.constant dense<0.000000e+00> : vector<8x32xf32>
    %651 = tpu.matmul %645, %650, %cst_360 {dimension_numbers = #tpu.dot_dimension_numbers<[1], [0], [0], [1], [0, 0, 1, 1], [], []>} : vector<8x32xf32>, vector<32x32xf32>, vector<8x32xf32> -> vector<8x32xf32>
    %652 = vector.extract_strided_slice %649 {offsets = [0, 0], sizes = [1, 32], strides = [1, 1]} : vector<1x96xf32> to vector<1x32xf32>
    %653 = vector.broadcast %652 : vector<1x32xf32> to vector<8x32xf32>
    %654 = arith.addf %651, %653 : vector<8x32xf32>
    %655 = vector.extract_strided_slice %647 {offsets = [0, 32], sizes = [32, 64], strides = [1, 1]} : vector<32x96xf32> to vector<32x64xf32>
    %cst_361 = arith.constant dense<0.000000e+00> : vector<8x64xf32>
    %656 = tpu.matmul %320, %655, %cst_361 {dimension_numbers = #tpu.dot_dimension_numbers<[1], [0], [0], [1], [0, 0, 1, 1], [], []>} : vector<8x32xf32>, vector<32x64xf32>, vector<8x64xf32> -> vector<8x64xf32>
    %657 = vector.extract_strided_slice %649 {offsets = [0, 32], sizes = [1, 64], strides = [1, 1]} : vector<1x96xf32> to vector<1x64xf32>
    %658 = vector.broadcast %657 : vector<1x64xf32> to vector<8x64xf32>
    %659 = arith.addf %656, %658 : vector<8x64xf32>
    %660 = vector.extract_strided_slice %659 {offsets = [0, 0], sizes = [8, 32], strides = [1, 1]} : vector<8x64xf32> to vector<8x32xf32>
    %661 = vector.extract_strided_slice %659 {offsets = [0, 32], sizes = [8, 32], strides = [1, 1]} : vector<8x64xf32> to vector<8x32xf32>
    %662 = vector.extract_strided_slice %654 {offsets = [0, 0], sizes = [8, 8], strides = [1, 1]} : vector<8x32xf32> to vector<8x8xf32>
    %663 = vector.extract_strided_slice %660 {offsets = [0, 0], sizes = [8, 8], strides = [1, 1]} : vector<8x32xf32> to vector<8x8xf32>
    %cst_362 = arith.constant dense<0.000000e+00> : vector<8x8xf32>
    %664 = tpu.matmul %662, %663, %cst_362 {dimension_numbers = #tpu.dot_dimension_numbers<[1], [1], [0], [0], [0, 0, 1, 0], [], []>} : vector<8x8xf32>, vector<8x8xf32>, vector<8x8xf32> -> vector<8x8xf32>
    %665 = vector.extract_strided_slice %654 {offsets = [0, 8], sizes = [8, 8], strides = [1, 1]} : vector<8x32xf32> to vector<8x8xf32>
    %666 = vector.extract_strided_slice %660 {offsets = [0, 8], sizes = [8, 8], strides = [1, 1]} : vector<8x32xf32> to vector<8x8xf32>
    %cst_363 = arith.constant dense<0.000000e+00> : vector<8x8xf32>
    %667 = tpu.matmul %665, %666, %cst_363 {dimension_numbers = #tpu.dot_dimension_numbers<[1], [1], [0], [0], [0, 0, 1, 0], [], []>} : vector<8x8xf32>, vector<8x8xf32>, vector<8x8xf32> -> vector<8x8xf32>
    %668 = vector.extract_strided_slice %654 {offsets = [0, 16], sizes = [8, 8], strides = [1, 1]} : vector<8x32xf32> to vector<8x8xf32>
    %669 = vector.extract_strided_slice %660 {offsets = [0, 16], sizes = [8, 8], strides = [1, 1]} : vector<8x32xf32> to vector<8x8xf32>
    %cst_364 = arith.constant dense<0.000000e+00> : vector<8x8xf32>
    %670 = tpu.matmul %668, %669, %cst_364 {dimension_numbers = #tpu.dot_dimension_numbers<[1], [1], [0], [0], [0, 0, 1, 0], [], []>} : vector<8x8xf32>, vector<8x8xf32>, vector<8x8xf32> -> vector<8x8xf32>
    %671 = vector.extract_strided_slice %654 {offsets = [0, 24], sizes = [8, 8], strides = [1, 1]} : vector<8x32xf32> to vector<8x8xf32>
    %672 = vector.extract_strided_slice %660 {offsets = [0, 24], sizes = [8, 8], strides = [1, 1]} : vector<8x32xf32> to vector<8x8xf32>
    %cst_365 = arith.constant dense<0.000000e+00> : vector<8x8xf32>
    %673 = tpu.matmul %671, %672, %cst_365 {dimension_numbers = #tpu.dot_dimension_numbers<[1], [1], [0], [0], [0, 0, 1, 0], [], []>} : vector<8x8xf32>, vector<8x8xf32>, vector<8x8xf32> -> vector<8x8xf32>
    %674 = tpu.concatenate %664, %667, %670, %673 in 0 : vector<8x8xf32>, vector<8x8xf32>, vector<8x8xf32>, vector<8x8xf32> -> vector<32x8xf32>
    %cst_366 = arith.constant 0.353553385 : f32
    %675 = vector.broadcast %cst_366 : f32 to vector<32x8xf32>
    %676 = arith.mulf %674, %675 : vector<32x8xf32>
    %677 = vector.broadcast %5 : vector<1x8xf32> to vector<32x8xf32>
    %678 = arith.addf %676, %677 : vector<32x8xf32>
    %cst_367 = arith.constant dense<0xFF800000> : vector<32xf32>
    %679 = vector.multi_reduction <maximumf>, %678, %cst_367 [1] : vector<32x8xf32> to vector<32xf32>
    %680 = vector.shape_cast %679 : vector<32xf32> to vector<32x1xf32>
    %681 = vector.broadcast %680 : vector<32x1xf32> to vector<32x8xf32>
    %682 = arith.subf %678, %681 : vector<32x8xf32>
    %683 = math.exp %682 : vector<32x8xf32>
    %cst_368 = arith.constant dense<0.000000e+00> : vector<32xf32>
    %684 = vector.multi_reduction <add>, %683, %cst_368 [1] : vector<32x8xf32> to vector<32xf32>
    %685 = vector.shape_cast %684 : vector<32xf32> to vector<32x1xf32>
    %686 = tpu.reciprocal %685 {approx = true} : vector<32x1xf32> -> vector<32x1xf32>
    %687 = vector.broadcast %686 : vector<32x1xf32> to vector<32x8xf32>
    %688 = arith.mulf %683, %687 : vector<32x8xf32>
    %689 = vector.extract_strided_slice %688 {offsets = [0, 0], sizes = [8, 8], strides = [1, 1]} : vector<32x8xf32> to vector<8x8xf32>
    %690 = vector.extract_strided_slice %661 {offsets = [0, 0], sizes = [8, 8], strides = [1, 1]} : vector<8x32xf32> to vector<8x8xf32>
    %cst_369 = arith.constant dense<0.000000e+00> : vector<8x8xf32>
    %691 = tpu.matmul %689, %690, %cst_369 {dimension_numbers = #tpu.dot_dimension_numbers<[1], [0], [0], [1], [0, 0, 1, 1], [], []>} : vector<8x8xf32>, vector<8x8xf32>, vector<8x8xf32> -> vector<8x8xf32>
    %692 = vector.extract_strided_slice %688 {offsets = [8, 0], sizes = [8, 8], strides = [1, 1]} : vector<32x8xf32> to vector<8x8xf32>
    %693 = vector.extract_strided_slice %661 {offsets = [0, 8], sizes = [8, 8], strides = [1, 1]} : vector<8x32xf32> to vector<8x8xf32>
    %cst_370 = arith.constant dense<0.000000e+00> : vector<8x8xf32>
    %694 = tpu.matmul %692, %693, %cst_370 {dimension_numbers = #tpu.dot_dimension_numbers<[1], [0], [0], [1], [0, 0, 1, 1], [], []>} : vector<8x8xf32>, vector<8x8xf32>, vector<8x8xf32> -> vector<8x8xf32>
    %695 = vector.extract_strided_slice %688 {offsets = [16, 0], sizes = [8, 8], strides = [1, 1]} : vector<32x8xf32> to vector<8x8xf32>
    %696 = vector.extract_strided_slice %661 {offsets = [0, 16], sizes = [8, 8], strides = [1, 1]} : vector<8x32xf32> to vector<8x8xf32>
    %cst_371 = arith.constant dense<0.000000e+00> : vector<8x8xf32>
    %697 = tpu.matmul %695, %696, %cst_371 {dimension_numbers = #tpu.dot_dimension_numbers<[1], [0], [0], [1], [0, 0, 1, 1], [], []>} : vector<8x8xf32>, vector<8x8xf32>, vector<8x8xf32> -> vector<8x8xf32>
    %698 = vector.extract_strided_slice %688 {offsets = [24, 0], sizes = [8, 8], strides = [1, 1]} : vector<32x8xf32> to vector<8x8xf32>
    %699 = vector.extract_strided_slice %661 {offsets = [0, 24], sizes = [8, 8], strides = [1, 1]} : vector<8x32xf32> to vector<8x8xf32>
    %cst_372 = arith.constant dense<0.000000e+00> : vector<8x8xf32>
    %700 = tpu.matmul %698, %699, %cst_372 {dimension_numbers = #tpu.dot_dimension_numbers<[1], [0], [0], [1], [0, 0, 1, 1], [], []>} : vector<8x8xf32>, vector<8x8xf32>, vector<8x8xf32> -> vector<8x8xf32>
    %701 = tpu.concatenate %691, %694, %697, %700 in 1 : vector<8x8xf32>, vector<8x8xf32>, vector<8x8xf32>, vector<8x8xf32> -> vector<8x32xf32>
    %c2_373 = arith.constant 2 : index
    %c1_374 = arith.constant 1 : index
    %c0_375 = arith.constant 0 : index
    %c0_376 = arith.constant 0 : index
    %702 = vector.load %arg9[%c2_373, %c1_374, %c0_375, %c0_376] : memref<3x2x32x32xf32, #tpu.memory_space<vmem>>, vector<1x1x32x32xf32>
    %703 = vector.shape_cast %702 : vector<1x1x32x32xf32> to vector<32x32xf32>
    %cst_377 = arith.constant dense<0.000000e+00> : vector<8x32xf32>
    %704 = tpu.matmul %701, %703, %cst_377 {dimension_numbers = #tpu.dot_dimension_numbers<[1], [0], [0], [1], [0, 0, 1, 1], [], []>} : vector<8x32xf32>, vector<32x32xf32>, vector<8x32xf32> -> vector<8x32xf32>
    %c2_378 = arith.constant 2 : index
    %c1_379 = arith.constant 1 : index
    %c0_380 = arith.constant 0 : index
    %c0_381 = arith.constant 0 : index
    %705 = vector.load %arg10[%c2_378, %c1_379, %c0_380, %c0_381] : memref<3x2x1x32xf32, #tpu.memory_space<vmem>>, vector<1x1x1x32xf32>
    %706 = vector.shape_cast %705 : vector<1x1x1x32xf32> to vector<1x32xf32>
    %707 = vector.broadcast %706 : vector<1x32xf32> to vector<8x32xf32>
    %708 = arith.addf %704, %707 : vector<8x32xf32>
    %709 = arith.addf %619, %708 : vector<8x32xf32>
    %c0_382 = arith.constant 0 : index
    %c10 = arith.constant 10 : index
    %c0_383 = arith.constant 0 : index
    %c0_384 = arith.constant 0 : index
    %710 = vector.load %arg15[%c0_382, %c10, %c0_383, %c0_384] : memref<2x12x1x32xf32, #tpu.memory_space<vmem>>, vector<1x1x1x32xf32>
    %711 = vector.shape_cast %710 : vector<1x1x1x32xf32> to vector<1x32xf32>
    %c1_385 = arith.constant 1 : index
    %c10_386 = arith.constant 10 : index
    %c0_387 = arith.constant 0 : index
    %c0_388 = arith.constant 0 : index
    %712 = vector.load %arg15[%c1_385, %c10_386, %c0_387, %c0_388] : memref<2x12x1x32xf32, #tpu.memory_space<vmem>>, vector<1x1x1x32xf32>
    %713 = vector.shape_cast %712 : vector<1x1x1x32xf32> to vector<1x32xf32>
    %cst_389 = arith.constant dense<0.000000e+00> : vector<8xf32>
    %714 = vector.multi_reduction <add>, %709, %cst_389 [1] : vector<8x32xf32> to vector<8xf32>
    %715 = vector.shape_cast %714 : vector<8xf32> to vector<8x1xf32>
    %cst_390 = arith.constant 3.200000e+01 : f32
    %716 = vector.broadcast %cst_390 : f32 to vector<8x1xf32>
    %717 = arith.divf %715, %716 : vector<8x1xf32>
    %718 = vector.broadcast %717 : vector<8x1xf32> to vector<8x32xf32>
    %719 = arith.subf %709, %718 : vector<8x32xf32>
    %720 = arith.mulf %719, %719 : vector<8x32xf32>
    %cst_391 = arith.constant dense<0.000000e+00> : vector<8xf32>
    %721 = vector.multi_reduction <add>, %720, %cst_391 [1] : vector<8x32xf32> to vector<8xf32>
    %722 = vector.shape_cast %721 : vector<8xf32> to vector<8x1xf32>
    %cst_392 = arith.constant 3.200000e+01 : f32
    %723 = vector.broadcast %cst_392 : f32 to vector<8x1xf32>
    %724 = arith.divf %722, %723 : vector<8x1xf32>
    %725 = vector.broadcast %717 : vector<8x1xf32> to vector<8x32xf32>
    %726 = arith.subf %709, %725 : vector<8x32xf32>
    %727 = vector.broadcast %711 : vector<1x32xf32> to vector<8x32xf32>
    %728 = arith.mulf %727, %726 : vector<8x32xf32>
    %cst_393 = arith.constant 9.99999997E-7 : f32
    %729 = vector.broadcast %cst_393 : f32 to vector<8x1xf32>
    %730 = arith.addf %724, %729 : vector<8x1xf32>
    %731 = math.rsqrt %730 : vector<8x1xf32>
    %732 = vector.broadcast %731 : vector<8x1xf32> to vector<8x32xf32>
    %733 = arith.mulf %728, %732 : vector<8x32xf32>
    %734 = vector.broadcast %713 : vector<1x32xf32> to vector<8x32xf32>
    %735 = arith.addf %733, %734 : vector<8x32xf32>
    %c1_394 = arith.constant 1 : index
    %c1_395 = arith.constant 1 : index
    %c0_396 = arith.constant 0 : index
    %c0_397 = arith.constant 0 : index
    %736 = vector.load %arg11[%c1_394, %c1_395, %c0_396, %c0_397] : memref<2x2x32x64xf32, #tpu.memory_space<vmem>>, vector<1x1x32x64xf32>
    %737 = vector.shape_cast %736 : vector<1x1x32x64xf32> to vector<32x64xf32>
    %cst_398 = arith.constant dense<0.000000e+00> : vector<8x64xf32>
    %738 = tpu.matmul %735, %737, %cst_398 {dimension_numbers = #tpu.dot_dimension_numbers<[1], [0], [0], [1], [0, 0, 1, 1], [], []>} : vector<8x32xf32>, vector<32x64xf32>, vector<8x64xf32> -> vector<8x64xf32>
    %c1_399 = arith.constant 1 : index
    %c1_400 = arith.constant 1 : index
    %c0_401 = arith.constant 0 : index
    %c0_402 = arith.constant 0 : index
    %739 = vector.load %arg12[%c1_399, %c1_400, %c0_401, %c0_402] : memref<2x2x1x64xf32, #tpu.memory_space<vmem>>, vector<1x1x1x64xf32>
    %740 = vector.shape_cast %739 : vector<1x1x1x64xf32> to vector<1x64xf32>
    %741 = vector.broadcast %740 : vector<1x64xf32> to vector<8x64xf32>
    %742 = arith.addf %738, %741 : vector<8x64xf32>
    %cst_403 = arith.constant 0.000000e+00 : f32
    %743 = vector.broadcast %cst_403 : f32 to vector<8x64xf32>
    %744 = arith.maximumf %742, %743 : vector<8x64xf32>
    %c1_404 = arith.constant 1 : index
    %c1_405 = arith.constant 1 : index
    %c0_406 = arith.constant 0 : index
    %c0_407 = arith.constant 0 : index
    %745 = vector.load %arg13[%c1_404, %c1_405, %c0_406, %c0_407] : memref<2x2x64x32xf32, #tpu.memory_space<vmem>>, vector<1x1x64x32xf32>
    %746 = vector.shape_cast %745 : vector<1x1x64x32xf32> to vector<64x32xf32>
    %cst_408 = arith.constant dense<0.000000e+00> : vector<8x32xf32>
    %747 = tpu.matmul %744, %746, %cst_408 {dimension_numbers = #tpu.dot_dimension_numbers<[1], [0], [0], [1], [0, 0, 1, 1], [], []>} : vector<8x64xf32>, vector<64x32xf32>, vector<8x32xf32> -> vector<8x32xf32>
    %c1_409 = arith.constant 1 : index
    %c1_410 = arith.constant 1 : index
    %c0_411 = arith.constant 0 : index
    %c0_412 = arith.constant 0 : index
    %748 = vector.load %arg14[%c1_409, %c1_410, %c0_411, %c0_412] : memref<2x2x1x32xf32, #tpu.memory_space<vmem>>, vector<1x1x1x32xf32>
    %749 = vector.shape_cast %748 : vector<1x1x1x32xf32> to vector<1x32xf32>
    %750 = vector.broadcast %749 : vector<1x32xf32> to vector<8x32xf32>
    %751 = arith.addf %747, %750 : vector<8x32xf32>
    %752 = arith.addf %709, %751 : vector<8x32xf32>
    %c0_413 = arith.constant 0 : index
    %c11 = arith.constant 11 : index
    %c0_414 = arith.constant 0 : index
    %c0_415 = arith.constant 0 : index
    %753 = vector.load %arg15[%c0_413, %c11, %c0_414, %c0_415] : memref<2x12x1x32xf32, #tpu.memory_space<vmem>>, vector<1x1x1x32xf32>
    %754 = vector.shape_cast %753 : vector<1x1x1x32xf32> to vector<1x32xf32>
    %c1_416 = arith.constant 1 : index
    %c11_417 = arith.constant 11 : index
    %c0_418 = arith.constant 0 : index
    %c0_419 = arith.constant 0 : index
    %755 = vector.load %arg15[%c1_416, %c11_417, %c0_418, %c0_419] : memref<2x12x1x32xf32, #tpu.memory_space<vmem>>, vector<1x1x1x32xf32>
    %756 = vector.shape_cast %755 : vector<1x1x1x32xf32> to vector<1x32xf32>
    %cst_420 = arith.constant dense<0.000000e+00> : vector<8xf32>
    %757 = vector.multi_reduction <add>, %752, %cst_420 [1] : vector<8x32xf32> to vector<8xf32>
    %758 = vector.shape_cast %757 : vector<8xf32> to vector<8x1xf32>
    %cst_421 = arith.constant 3.200000e+01 : f32
    %759 = vector.broadcast %cst_421 : f32 to vector<8x1xf32>
    %760 = arith.divf %758, %759 : vector<8x1xf32>
    %761 = vector.broadcast %760 : vector<8x1xf32> to vector<8x32xf32>
    %762 = arith.subf %752, %761 : vector<8x32xf32>
    %763 = arith.mulf %762, %762 : vector<8x32xf32>
    %cst_422 = arith.constant dense<0.000000e+00> : vector<8xf32>
    %764 = vector.multi_reduction <add>, %763, %cst_422 [1] : vector<8x32xf32> to vector<8xf32>
    %765 = vector.shape_cast %764 : vector<8xf32> to vector<8x1xf32>
    %cst_423 = arith.constant 3.200000e+01 : f32
    %766 = vector.broadcast %cst_423 : f32 to vector<8x1xf32>
    %767 = arith.divf %765, %766 : vector<8x1xf32>
    %768 = vector.broadcast %760 : vector<8x1xf32> to vector<8x32xf32>
    %769 = arith.subf %752, %768 : vector<8x32xf32>
    %770 = vector.broadcast %754 : vector<1x32xf32> to vector<8x32xf32>
    %771 = arith.mulf %770, %769 : vector<8x32xf32>
    %cst_424 = arith.constant 9.99999997E-7 : f32
    %772 = vector.broadcast %cst_424 : f32 to vector<8x1xf32>
    %773 = arith.addf %767, %772 : vector<8x1xf32>
    %774 = math.rsqrt %773 : vector<8x1xf32>
    %775 = vector.broadcast %774 : vector<8x1xf32> to vector<8x32xf32>
    %776 = arith.mulf %771, %775 : vector<8x32xf32>
    %777 = vector.broadcast %756 : vector<1x32xf32> to vector<8x32xf32>
    %778 = arith.addf %776, %777 : vector<8x32xf32>
    %c0_425 = arith.constant 0 : index
    %c0_426 = arith.constant 0 : index
    %c0_427 = arith.constant 0 : index
    %779 = vector.load %arg16[%c0_425, %c0_426, %c0_427] : memref<1x8x32xf32, #tpu.memory_space<vmem>>, vector<1x8x32xf32>
    %780 = vector.shape_cast %779 : vector<1x8x32xf32> to vector<8x32xf32>
    %781 = vector.shape_cast %778 : vector<8x32xf32> to vector<1x8x32xf32>
    tpu.vector_store %arg16[%c0_425, %c0_426, %c0_427], %781 {strides = array<i32>} : memref<1x8x32xf32, #tpu.memory_space<vmem>>, vector<1x8x32xf32>,
    return
  }
  func.func @transform_0(%arg0: i32) -> (i32, i32, i32) {
    %c0_i32 = arith.constant 0 : i32
    %c0_i32_0 = arith.constant 0 : i32
    %c0_i32_1 = arith.constant 0 : i32
    return %arg0, %c0_i32, %c0_i32_0 : i32, i32, i32
  }
  func.func @transform_1(%arg0: i32) -> (i32, i32, i32) {
    %c0_i32 = arith.constant 0 : i32
    %c0_i32_0 = arith.constant 0 : i32
    %c0_i32_1 = arith.constant 0 : i32
    return %arg0, %c0_i32, %c0_i32_0 : i32, i32, i32
  }
  func.func @transform_2(%arg0: i32) -> (i32, i32, i32) {
    %c0_i32 = arith.constant 0 : i32
    %c0_i32_0 = arith.constant 0 : i32
    %c0_i32_1 = arith.constant 0 : i32
    return %arg0, %c0_i32, %c0_i32_0 : i32, i32, i32
  }
  func.func @transform_3(%arg0: i32) -> (i32, i32, i32) {
    %c0_i32 = arith.constant 0 : i32
    %c0_i32_0 = arith.constant 0 : i32
    %c0_i32_1 = arith.constant 0 : i32
    return %arg0, %c0_i32, %c0_i32_0 : i32, i32, i32
  }
  func.func @transform_4(%arg0: i32) -> (i32, i32, i32) {
    %c0_i32 = arith.constant 0 : i32
    %c0_i32_0 = arith.constant 0 : i32
    %c0_i32_1 = arith.constant 0 : i32
    %c0_i32_2 = arith.constant 0 : i32
    return %c0_i32, %c0_i32_0, %c0_i32_1 : i32, i32, i32
  }
  func.func @transform_5(%arg0: i32) -> (i32, i32) {
    %c0_i32 = arith.constant 0 : i32
    %c0_i32_0 = arith.constant 0 : i32
    %c0_i32_1 = arith.constant 0 : i32
    return %c0_i32, %c0_i32_0 : i32, i32
  }
  func.func @transform_6(%arg0: i32) -> (i32, i32, i32, i32) {
    %c0_i32 = arith.constant 0 : i32
    %c0_i32_0 = arith.constant 0 : i32
    %c0_i32_1 = arith.constant 0 : i32
    %c0_i32_2 = arith.constant 0 : i32
    %c0_i32_3 = arith.constant 0 : i32
    return %c0_i32, %c0_i32_0, %c0_i32_1, %c0_i32_2 : i32, i32, i32, i32
  }
  func.func @transform_7(%arg0: i32) -> (i32, i32, i32, i32) {
    %c0_i32 = arith.constant 0 : i32
    %c0_i32_0 = arith.constant 0 : i32
    %c0_i32_1 = arith.constant 0 : i32
    %c0_i32_2 = arith.constant 0 : i32
    %c0_i32_3 = arith.constant 0 : i32
    return %c0_i32, %c0_i32_0, %c0_i32_1, %c0_i32_2 : i32, i32, i32, i32
  }
  func.func @transform_8(%arg0: i32) -> (i32, i32, i32, i32) {
    %c0_i32 = arith.constant 0 : i32
    %c0_i32_0 = arith.constant 0 : i32
    %c0_i32_1 = arith.constant 0 : i32
    %c0_i32_2 = arith.constant 0 : i32
    %c0_i32_3 = arith.constant 0 : i32
    return %c0_i32, %c0_i32_0, %c0_i32_1, %c0_i32_2 : i32, i32, i32, i32
  }
  func.func @transform_9(%arg0: i32) -> (i32, i32, i32, i32) {
    %c0_i32 = arith.constant 0 : i32
    %c0_i32_0 = arith.constant 0 : i32
    %c0_i32_1 = arith.constant 0 : i32
    %c0_i32_2 = arith.constant 0 : i32
    %c0_i32_3 = arith.constant 0 : i32
    return %c0_i32, %c0_i32_0, %c0_i32_1, %c0_i32_2 : i32, i32, i32, i32
  }
  func.func @transform_10(%arg0: i32) -> (i32, i32, i32, i32) {
    %c0_i32 = arith.constant 0 : i32
    %c0_i32_0 = arith.constant 0 : i32
    %c0_i32_1 = arith.constant 0 : i32
    %c0_i32_2 = arith.constant 0 : i32
    %c0_i32_3 = arith.constant 0 : i32
    return %c0_i32, %c0_i32_0, %c0_i32_1, %c0_i32_2 : i32, i32, i32, i32
  }
  func.func @transform_11(%arg0: i32) -> (i32, i32, i32, i32) {
    %c0_i32 = arith.constant 0 : i32
    %c0_i32_0 = arith.constant 0 : i32
    %c0_i32_1 = arith.constant 0 : i32
    %c0_i32_2 = arith.constant 0 : i32
    %c0_i32_3 = arith.constant 0 : i32
    return %c0_i32, %c0_i32_0, %c0_i32_1, %c0_i32_2 : i32, i32, i32, i32
  }
  func.func @transform_12(%arg0: i32) -> (i32, i32, i32, i32) {
    %c0_i32 = arith.constant 0 : i32
    %c0_i32_0 = arith.constant 0 : i32
    %c0_i32_1 = arith.constant 0 : i32
    %c0_i32_2 = arith.constant 0 : i32
    %c0_i32_3 = arith.constant 0 : i32
    return %c0_i32, %c0_i32_0, %c0_i32_1, %c0_i32_2 : i32, i32, i32, i32
  }
  func.func @transform_13(%arg0: i32) -> (i32, i32, i32, i32) {
    %c0_i32 = arith.constant 0 : i32
    %c0_i32_0 = arith.constant 0 : i32
    %c0_i32_1 = arith.constant 0 : i32
    %c0_i32_2 = arith.constant 0 : i32
    %c0_i32_3 = arith.constant 0 : i32
    return %c0_i32, %c0_i32_0, %c0_i32_1, %c0_i32_2 : i32, i32, i32, i32
  }
  func.func @transform_14(%arg0: i32) -> (i32, i32, i32, i32) {
    %c0_i32 = arith.constant 0 : i32
    %c0_i32_0 = arith.constant 0 : i32
    %c0_i32_1 = arith.constant 0 : i32
    %c0_i32_2 = arith.constant 0 : i32
    %c0_i32_3 = arith.constant 0 : i32
    return %c0_i32, %c0_i32_0, %c0_i32_1, %c0_i32_2 : i32, i32, i32, i32
  }
  func.func @transform_15(%arg0: i32) -> (i32, i32, i32) {
    %c0_i32 = arith.constant 0 : i32
    %c0_i32_0 = arith.constant 0 : i32
    %c0_i32_1 = arith.constant 0 : i32
    return %arg0, %c0_i32, %c0_i32_0 : i32, i32, i32
  }
}

</mosaic_0001>

<bundles_post_ra>
// kernel: encoder_decoder_forward.1
= control target key start
LH: loop header
LB: loop body
LE: loop exit
PB: predicated region body
PF: predicated region fallthrough
CT: control target
= control target key end

     0   :  { %s10302_s0 = inlined_call_operand.vmem [shape: s32[2,8,1], index: 0, kind: input, shape index: {}]   ;;  %s10303_s1 = inlined_call_operand.vmem [shape: s32[2,8,1], index: 1, kind: input, shape index: {}]   ;;  %s10304_s2 = inlined_call_operand.vmem [shape: f32[2,1,8], index: 2, kind: input, shape index: {}]   ;;  %s10305_s3 = inlined_call_operand.vmem [shape: f32[2,8,8], index: 3, kind: input, shape index: {}]   ;;  %s10306_s4 = inlined_call_operand.vmem [shape: f32[2,16,32], index: 4, kind: input, shape index: {}]   ;;  %s10307_s5 = inlined_call_operand.vmem [shape: f32[8,32], index: 5, kind: input, shape index: {}]   ;;  %s10308_s6 = inlined_call_operand.vmem [shape: f32[3,2,32,96], index: 6, kind: input, shape index: {}]   ;;  %s10309_s7 = inlined_call_operand.vmem [shape: f32[3,2,1,96], index: 7, kind: input, shape index: {}]   ;;  %s10310_s8 = inlined_call_operand.vmem [shape: f32[3,2,32,32], index: 8, kind: input, shape index: {}]   ;;  %s10311_s9 = inlined_call_operand.hbm [shape: f32[3,2,1,32], index: 9, kind: input, shape index: {}]   ;;  %s10312_s10 = inlined_call_operand.hbm [shape: f32[2,2,32,64], index: 10, kind: input, shape index: {}]   ;;  %s10313_s11 = inlined_call_operand.hbm [shape: f32[2,2,1,64], index: 11, kind: input, shape index: {}]   ;;  %s10314_s12 = inlined_call_operand.vmem [shape: f32[2,2,64,32], index: 12, kind: input, shape index: {}]   ;;  %s10315_s13 = inlined_call_operand.hbm [shape: f32[2,2,1,32], index: 13, kind: input, shape index: {}]   ;;  %s10316_s14 = inlined_call_operand.vmem [shape: f32[2,12,1,32], index: 14, kind: input, shape index: {}]   ;;  %s10317_s15 = inlined_call_operand.hbm [shape: f32[2,8,32], index: 15, kind: output, shape index: {}]  }
   0x1   :  { %10359 = sst [smem:[#allocation23_spill]] %s10302_s0 }
   0x2   :  { %10360 = sst [smem:[#allocation24_spill]] %s10303_s1 }
   0x3   :  { %10361 = sst [smem:[#allocation25_spill]] %s10304_s2 }
   0x4   :  { %10362 = sst [smem:[#allocation26_spill]] %s10305_s3 }
   0x5   :  { %10363 = sst [smem:[#allocation27_spill]] %s10306_s4 }
   0x6   :  { %10364 = sst [smem:[#allocation28_spill]] %s10307_s5 }
   0x7   :  { %10365 = sst [smem:[#allocation29_spill]] %s10311_s9 }
   0x8   :  { %10366 = sst [smem:[#allocation30_spill]] %s10312_s10 }
   0x9   :  { %10367 = sst [smem:[#allocation31_spill]] %s10317_s15 }
   0xa   :  { %20 = vsyncpa [#allocation3], 0 }
   0xb   :  { %21 = vsyncpa [#allocation6], 0 }
   0xc   :  { %22 = vsyncpa [#allocation9], 0 }
   0xd   :  { %23 = vsyncpa [#allocation4], 0 }
   0xe   :  { %25 = vsyncpa [#allocation4 + $0x1], 0  ;;  %s9034_s18 = smov 0   ;;  %s9036_s19 = smov 0  }
   0xf   :  { %s9038_s20 = smov 0   ;;  %s9040_s21 = smov 0  }
  0x10 LB: > { %10368 = sst [smem:[#allocation15_spill]] %s8913_s18  ;;  %s9055_s22 = sadd.s32 4294967295, %s8925_s21   ;;  %s8925_s21 = sphi %s9040_s21, %s10418_s21   ;;  %s8921_s20 = sphi %s9038_s20, %s10421_s20   ;;  %s8917_s19 = sphi %s9036_s19, %s10420_s19   ;;  %s8913_s18 = sphi %s9034_s18, %s10419_s18  }
  0x11   : > { %10369 = sst [smem:[#allocation16_spill]] %s8917_s19  ;;  %s7319_s23 = sadd.s32 4294967294, %s8925_s21  }
  0x12   : > { %10370 = sst [smem:[#allocation17_spill]] %s8921_s20  ;;  %s9059_s24 = sadd.s32 1, %s8925_s21  }
  0x13   : > { %10371 = sst [smem:[#allocation18_spill]] %s8925_s21  ;;  %s373_s25 = sadd.s32 1, %s8921_s20 }
  0x14   : > { %10372 = sst [smem:[#allocation19_spill]] %s9059_s24  ;;  %s370_s26 = ssub.s32 %s8925_s21, %s9059_s24 }
  0x15   : > { %p383_p0 = scmp.ne.s32.totalorder %s8921_s20, %s8917_s19  ;;  %p371_p1 = scmp.eq.s32.totalorder %s370_s26, 0 }
  0x16   : > { %p384_p2 = scmp.eq.s32.totalorder %s9055_s22, 1  ;;  %p389_p3 = scmp.ne.s32.totalorder %s8917_s19, %s8913_s18 }
  0x17   : > { %p390_p4 = scmp.eq.s32.totalorder %s7319_s23, 1  ;;  %p7320_p7 = scmp.ge.s32.totalorder %s8925_s21, 1 }
  0x18   : > { %s9070_s27 = scalar_select %p371_p1, %s8921_s20, %s373_s25  }
  0x19   : > { %p9072_p5 = por %p384_p2, %p383_p0  ;;  %p9076_p6 = por %p390_p4, %p389_p3 }
  0x1a   : > { %10373 = sst [smem:[#allocation20_spill]] %s9070_s27  ;;  %p397_p8 = scmp.lt.s32.totalorder %s8925_s21, 3 }
  0x1b   : > { %s10374_s28 = scalar_select %p9072_p5, 1, 0 }
  0x1c   : > { %s10376_s29 = scalar_select %p9076_p6, 1, 0 }
  0x1d   : > { %10375 = sst [smem:[#allocation21_spill]] %s10374_s28  ;;  %p10324_p9 = scmp.eq.s32.totalorder %s9055_s22, 0 }
  0x1e   : > { %10377 = sst [smem:[#allocation22_spill]] %s10376_s29  ;;  %p9083_p10 = pnand %p7320_p7, %p397_p8 }
  0x1f   : > { %s8927_s16 = smov [#allocation5]   ;;  %s8928_s25 = smov [#allocation2]  }
  0x20   : > { %s10378_s30 = scalar_select %p9083_p10, 1, 0 }
  0x21   : > { %s437_s17 = sshll.u32 %s8927_s16, 4  ;;  %p8513_p11 = pneg %p9083_p10  ;;  %s438_s17 = int_to_ptr.vmem [resolvable:$true] %s437_s17 }
  0x22   : > { %s424_s26 = sshll.u32 %s8928_s25, 4  ;;  %s10380_s10 = sld [smem:[#allocation30_spill]]  ;;  %s9095_s26 = int_to_ptr.vmem [resolvable:$true] %s424_s26 }
  0x23   : > { %p9091_p12 = pnand %p10324_p9, %p8513_p11 }
  0x25   : > { %p9105_p0 = pneg %p9091_p12 }
  0x28   : > { %s8739_s24 = scalar_lea.hbm %s10380_s10, 2048 }
  0x29   : > { %p8740_p13 = scmp.ne.s32.totalorder %s10380_s10, %s8739_s24  ;;  %p8746_p3 = scmp.lt.u32.totalorder %s8739_s24, %s10380_s10 }
  0x2b   : > { %p8742_p1 = pnand %p9105_p0, %p8740_p13 }
  0x2d   : > { %p8743_p2 = pneg %p8742_p1 }
  0x2f   : > { %p8748_p4 = pnand %p8746_p3, %p8743_p2 }
  0x31   : > { %8751 = shalt.err (!%p8748_p4)
}
  0x32   : > { %s8752_s20 = scalar_lea.vmem %s438_s17, 2048  ;;  %p8760_p9 = scmp.lt.s32.totalorder %s438_s17, %s438_s17 }
  0x33   : > { %p8753_p7 = scmp.ne.s32.totalorder %s438_s17, %s8752_s20  ;;  %p8761_p6 = scmp.lt.s32.totalorder %s8752_s20, %s8752_s20 }
  0x35   : > { %p8755_p8 = pnand %p8753_p7, %p9105_p0  ;;  %p8762_p5 = por %p8761_p6, %p8760_p9 }
  0x37   : > { %p8756_p11 = pneg %p8755_p8 }
  0x39   : > { %p8763_p10 = pnand %p8762_p5, %p8756_p11 }
  0x3b   : > { %8766 = shalt.err (!%p8763_p10)
}
  0x3c   : > { %s8929_s18 = smov 128   ;;  %s8930_s27 = smov 8  }
  0x3d   : > { %8519 = dma.hbm_to_vmem [thread:$0]  (!%p9091_p12), %s10380_s10, 2048, %s438_s17, [#allocation6], %s8929_s18, %s8929_s18, %s8930_s27  }
  0x3e   : > { %s10382_s9 = sld [smem:[#allocation29_spill]] }
  0x44   : > { %s8767_s15 = scalar_lea.hbm %s10382_s9, 96 }
  0x45   : > { %p8768_p13 = scmp.ne.s32.totalorder %s10382_s9, %s8767_s15  ;;  %p8774_p9 = scmp.lt.u32.totalorder %s8767_s15, %s10382_s9 }
  0x47   : > { %p8770_p5 = pnand %p8768_p13, %p9105_p0 }
  0x49   : > { %p8771_p6 = pneg %p8770_p5 }
  0x4b   : > { %p8776_p10 = pnand %p8774_p9, %p8771_p6 }
  0x4d   : > { %8779 = shalt.err (!%p8776_p10)
}
  0x4e   : > { %s8780_s17 = scalar_lea.vmem %s9095_s26, 96  ;;  %p8788_p4 = scmp.lt.s32.totalorder %s9095_s26, %s9095_s26 }
  0x4f   : > { %p8781_p1 = scmp.ne.s32.totalorder %s9095_s26, %s8780_s17  ;;  %p8789_p7 = scmp.lt.s32.totalorder %s8780_s17, %s8780_s17 }
  0x51   : > { %p8783_p2 = pnand %p8781_p1, %p9105_p0  ;;  %p8790_p8 = por %p8789_p7, %p8788_p4 }
  0x53   : > { %p8784_p3 = pneg %p8783_p2 }
  0x55   : > { %p8791_p11 = pnand %p8790_p8, %p8784_p3 }
  0x57   : > { %8794 = shalt.err (!%p8791_p11)
}
  0x58   : > { %s8931_s19 = smov 16   ;;  %s8932_s3 = smov 1  }
  0x59   : > { %8516 = dma.hbm_to_vmem [thread:$0]  (!%p9091_p12), %s10382_s9, 96, %s9095_s26, [#allocation3], %s8931_s19, %s8931_s19, %s8932_s3  }
  0x5a   : > { %s8933_s18 = smov [#allocation7]   ;;  %s8934_s21 = smov [#allocation8]  }
  0x5b   : > { %s450_s27 = sshll.u32 %s8933_s18, 4  ;;  %s466_s24 = sshll.u32 %s8934_s21, 4  ;;  %s451_s27 = int_to_ptr.vmem [resolvable:$true] %s450_s27  ;;  %s9147_s24 = int_to_ptr.vmem [resolvable:$true] %s466_s24 }
  0x5c   : > { %s8795_s20 = scalar_lea.hbm %s10313_s11, 64 }
  0x5d   : > { %p8796_p13 = scmp.ne.s32.totalorder %s10313_s11, %s8795_s20  ;;  %p8802_p9 = scmp.lt.u32.totalorder %s8795_s20, %s10313_s11 }
  0x5f   : > { %p8798_p5 = pnand %p8796_p13, %p9105_p0 }
  0x61   : > { %p8799_p6 = pneg %p8798_p5 }
  0x63   : > { %p8804_p10 = pnand %p8802_p9, %p8799_p6 }
  0x65   : > { %8807 = shalt.err (!%p8804_p10)
}
  0x66   : > { %s8808_s28 = scalar_lea.vmem %s451_s27, 64  ;;  %p8816_p4 = scmp.lt.s32.totalorder %s451_s27, %s451_s27 }
  0x67   : > { %p8809_p1 = scmp.ne.s32.totalorder %s451_s27, %s8808_s28  ;;  %p8817_p7 = scmp.lt.s32.totalorder %s8808_s28, %s8808_s28 }
  0x69   : > { %p8811_p2 = pnand %p8809_p1, %p9105_p0  ;;  %p8818_p8 = por %p8817_p7, %p8816_p4 }
  0x6b   : > { %p8812_p3 = pneg %p8811_p2 }
  0x6d   : > { %p8819_p11 = pnand %p8818_p8, %p8812_p3 }
  0x6f   : > { %8822 = shalt.err (!%p8819_p11)
}
  0x70   : > { %8522 = dma.hbm_to_vmem [thread:$0]  (!%p9091_p12), %s10313_s11, 64, %s451_s27, [#allocation6], %s8931_s19, %s8931_s19, %s8932_s3  }
  0x71   : > { %s8823_s25 = scalar_lea.hbm %s10315_s13, 64 }
  0x72   : > { %p8824_p13 = scmp.ne.s32.totalorder %s10315_s13, %s8823_s25  ;;  %p8830_p9 = scmp.lt.u32.totalorder %s8823_s25, %s10315_s13 }
  0x74   : > { %p8826_p5 = pnand %p8824_p13, %p9105_p0 }
  0x76   : > { %p8827_p6 = pneg %p8826_p5 }
  0x78   : > { %p8832_p10 = pnand %p8830_p9, %p8827_p6 }
  0x7a   : > { %8835 = shalt.err (!%p8832_p10)
}
  0x7b   : > { %s8836_s27 = scalar_lea.vmem %s9147_s24, 64  ;;  %p8844_p4 = scmp.lt.s32.totalorder %s9147_s24, %s9147_s24 }
  0x7c   : > { %p8837_p1 = scmp.ne.s32.totalorder %s9147_s24, %s8836_s27  ;;  %p8845_p7 = scmp.lt.s32.totalorder %s8836_s27, %s8836_s27 }
  0x7e   : > { %p8839_p2 = pnand %p8837_p1, %p9105_p0  ;;  %p8846_p8 = por %p8845_p7, %p8844_p4 }
  0x80   : > { %p8840_p3 = pneg %p8839_p2 }
  0x82   : > { %p8847_p11 = pnand %p8846_p8, %p8840_p3 }
  0x84   : > { %8850 = shalt.err (!%p8847_p11)
}
  0x85   : > { %8525 = dma.hbm_to_vmem [thread:$0]  (!%p9091_p12), %s10315_s13, 64, %s9147_s24, [#allocation9], %s8931_s19, %s8931_s19, %s8932_s3  }
  0x86   : > { %p10383_p13 = scmp.ne.s32.totalorder %s10378_s30, 0 }
  0x87   : > { %p10384_p0 = scmp.eq.s32.totalorder (!%p10383_p13), %s9055_s22, 0 }
  0x88   : > { %512 = sbr.rel (%p10383_p13) target bundleno = 13422 (0x346e), region = 80 }
  0x8f   : > { %8896 = dma.done.wait (%p10384_p0), [#allocation3], 96   ;;  %p10385_p5 = pmov %p10384_p0 }
  0x90   : > { %p10386_p6 = pmov %p10384_p0 }
  0x91   : > { %8898 = vsyncadd (%p10385_p5), [#allocation3], 4294967200 }
  0x92   : > { %8900 = dma.done.wait (%p10386_p6), [#allocation6], 2112   ;;  %p10387_p9 = pmov %p10384_p0 }
  0x93   : > { %p10388_p10 = pmov %p10384_p0 }
  0x94   : > { %8902 = vsyncadd (%p10387_p9), [#allocation6], 4294965184 }
  0x95   : > { %8904 = dma.done.wait (%p10388_p10), [#allocation9], 64   ;;  %p10389_p12 = pmov %p10384_p0 }
  0x96   : > { %p582_p1 = scmp.lt.s32.totalorder %s9055_s22, 1  ;;  %v8935_v0 = vmov 0   ;;  %v8936_v1 = vmov 0.0|0.0   ;;  %v606_v2 = vlaneseq  ;;  %s10390_s2 = sld [smem:[#allocation25_spill]]  ;;  %vm8937_vm0 = vmmov 0   ;;  %v808_v34 = vld [vmem:[%s10308_s6] sm:$0xff] }
  0x97   : > { %8906 = vsyncadd (%p10389_p12), [#allocation9], 4294967232  ;;  %8597 = vset.pattern.permute.xlu0 %v8935_v0  ;;  %8333 = vmatprep.subr.bf16.mxu0 %v8936_v1  ;;  %s10391_s0 = sld [smem:[#allocation23_spill]]  ;;  %s10392_s4 = sld [smem:[#allocation27_spill]]  ;;  %v8938_v11 = vmov 0.0   ;;  %vm614_vm1 = vcmask 130048  }
  0x98   : > { %s583_s30 = scalar_select %p582_p1, %s9055_s22, 1  ;;  %8598 = vset.pattern.permute.xlu1 %v8935_v0  ;;  %8336 = vmatprep.subr.bf16.mxu1 %v8936_v1  ;;  %v1210_v3 = vshrl.u32 %v606_v2, 7  ;;  %v607_v14 = vand.u32 127, %v606_v2  ;;  %vm779_vm3 = vcmask 261120   ;;  %v809_v35 = vld [vmem:[%s10308_s6 + $0x8] sm:$0xff]  ;;  %v810_v39 = vld [vmem:[%s10308_s6 + $0x10] sm:$0xff] }
  0x99   : > { %7809 = vmatprep.mubr.msk.f32.mxu0 %vm8937_vm0, %v8938_v11  ;;  %7816 = vmatprep.mubr.msk.f32.mxu1 %vm8937_vm0, %v8938_v11  ;;  %s10393_s5 = sld [smem:[#allocation28_spill]]  ;;  %s10394_s1 = sld [smem:[#allocation24_spill]]  ;;  %v8340_v38 = vpack.c.bf16 %v809_v35, %v808_v34  ;;  %v811_v40 = vld [vmem:[%s10308_s6 + $0x18] sm:$0xff]  ;;  %v7344_v43 = vld [vmem:[%s10316_s14] ss:$0 sm:$0xff]  ;;  %vm895_vm5 = vcmask 64512  }
  0x9a   : > { %s9214_s23 = sshll.u32 %s583_s30, 3  ;;  %v1211_v7 = vsub.s32 0, %v1210_v3  ;;  %v8343_v42 = vpack.c.bf16 %v811_v40, %v810_v39  ;;  %v7345_v46 = vld [vmem:[%s10316_s14 + $0xc] ss:$0 sm:$0xff]  ;;  %v7346_v51 = vld [vmem:[%s10309_s7] ss:$0 sm:$0xff] }
  0x9b   : > { %s10353_s19 = smov 72   ;;  %s10357_s24 = smov 88   ;;  %vm1580_vm6 = vcmask 195584   ;;  %vm1798_vm7 = vcmask 523264  }
  0x9c   : > { %s592_s3 = scalar_lea.vmem %s10390_s2, %s583_s30  ;;  %s10351_s18 = smov 120  }
  0x9d   : > { %s585_s21 = scalar_lea.vmem %s10391_s0, %s9214_s23  ;;  %v597_v5 = vld [vmem:[%s592_s3] sm:$0x1]  ;;  %v604_v9 = vld [vmem:[%s10392_s4 + $0x8] sm:$0xff]  ;;  %v7339_v29 = vld [vmem:[%s10392_s4 + $0x10] sm:$0xff]  ;;  %s10355_s3 = smov 96  }
  0x9e   : > { %v605_v4 = vld [vmem:[%s585_s21] sm:$0xff]  ;;  %v7335_v6 = vadd.f32 -1.0, %v597_v5  ;;  %v7340_v30 = vld [vmem:[%s10392_s4 + $0x18] sm:$0xff]  ;;  %s10347_s21 = smov 80   ;;  %s10345_s29 = smov 112  }
  0x9f   : > { %609 = vperm.xlu0 %8597, %v605_v4   ;;  %v603_v8 = vld [vmem:[%s10392_s4] sm:$0xff]  ;;  %s589_s10 = scalar_lea.vmem %s10394_s1, %s9214_s23  ;;  %v8337_v31 = vpack.c.bf16 %v7340_v30, %v7339_v29  ;;  %s10349_s25 = smov 104  }
  0xa0   : > { %v8334_v10 = vpack.c.bf16 %v604_v9, %v603_v8  ;;  %v599_v12 = vmul.f32 1e+09, %v7335_v6  ;;  %v9243_v18 = vld [vmem:[%s10393_s5] sm:$0xff]  ;;  %s10335_s20 = smov 64   ;;  %s10343_s17 = smov 56  }
  0xa1   : > { %v694_v28 = vld [vmem:[%s589_s10] sm:$0xff]  ;;  %8338 = vmatpush3.bf16.msra.mxu1 %v8337_v31  ;;  %s10333_s15 = smov 48   ;;  %s10331_s26 = smov 40  }
  0xa2   : > { %8335 = vmatpush3.bf16.msra.mxu0 %v8334_v10  ;;  %v9233_v13 = vrot.slane %v599_v12, %v1211_v7  ;;  %8339 = vmatprep.subr.bf16.mxu1 %v8936_v1  ;;  %s10341_s27 = smov 8   ;;  %s10337_s28 = smov 16  }
  0xa3   : > { %7840 = vmatprep.subr.mxu0 %v8938_v11  ;;  %s10395_s30 = smov 56   ;;  %s10396_s16 = smov 64  }
  0xa4   : > { %s10399_s10 = smov 8   ;;  %s10404_s0 = smov 72  }
  0xa5   : > { %s10412_s2 = sld [smem:[#allocation31_spill]] }
 0x11e   : > { %v610_v15 = vpop.permute.xlu0 %609 }
 0x11f   : > { %vm611_vm2 = vcmp.eq.s32.totalorder %v610_v15, %v607_v14 }
 0x120   : > { %v7337_v16 = vsel %vm611_vm2, 1.0, %v8938_v11 }
 0x121   : > { %7810 = vmatmul.mubr.msk.f32.vlgmr.msra.gmra.mrb[0].mxu0 %vm614_vm1, %v7337_v16 }
 0x122   : > { %7842 = vmatprep.mubr.msk.f32.mxu0 %vm8937_vm0, %v8938_v11 }
 0x1f4   : > { %v684_v17 = vpop.f32.mrb[0].mxu0 }
 0x1f5   : > { %v688_v19 = vmul.f32 5.656854, %v684_v17  ;;  %v7811_v20 = vpop.f32.mrb[1].mxu0 }
 0x1f7   : > { %v9246_v21 = vadd.f32 %v9243_v18, %v688_v19 }
 0x1f9   : > { %v780_v22 = vsel %vm779_vm3, %v9246_v21, 0.0 }
 0x1fa   : > { %781 = vadd.xlane.f32.xlu0 %v780_v22 }
 0x287   : > { %v782_v23 = vpop.xlane.xlu0 %781 }
 0x288   : > { %v784_v24 = vmul.f32 0.03125, %v782_v23 }
 0x28a   : > { %v785_v25 = vsub.f32 %v9246_v21, %v784_v24 }
 0x28c   : > { %v786_v26 = vmul.f32 %v785_v25, %v785_v25  ;;  %v797_v44 = vmul.f32 %v7344_v43, %v785_v25 }
 0x28e   : > { %v787_v27 = vsel %vm779_vm3, %v786_v26, 0.0 }
 0x28f   : > { %788 = vadd.xlane.f32.xlu1 %v787_v27 }
 0x2a0   : > { %696 = vperm.xlu1 %8598, %v694_v28  }
 0x31c   : > { %v789_v32 = vpop.xlane.xlu1 %788 }
 0x31d   : > { %v790_v33 = vmul.f32 0.03125, %v789_v32 }
 0x31f   : > { %v798_v36 = vadd.f32 1e-06, %v790_v33 }
 0x320   : > { %v697_v37 = vpop.permute.xlu1 %696 }
 0x321   : > { %8619 = vrsqrt.f32 %v798_v36  ;;  %vm698_vm4 = vcmp.eq.s32.totalorder %v697_v37, %v607_v14 }
 0x322   : > { %v7341_v41 = vsel %vm698_vm4, 1.0, %v8938_v11 }
 0x323   : > { %7817 = vmatmul.mubr.msk.f32.vlgmr.msra.gmra.mrb[0].mxu1 %vm614_vm1, %v7341_v41 }
 0x324   : > { %8341 = vmatpush3.bf16.msra.mxu1 %v8340_v38  ;;  %7827 = vmatprep.mubr.msk.f32.mxu1 %vm8937_vm0, %v8938_v11 }
 0x325   : > { %8342 = vmatprep.subr.bf16.mxu1 %v8936_v1 }
 0x328   : > { %8344 = vmatpush3.bf16.msra.mxu1 %v8343_v42 }
 0x329   : > { %7830 = vmatprep.subr.mxu1 %v8938_v11 }
 0x32b   : > { %v8620_v45 = vpop.eup %8619 }
 0x32c   : > { %v800_v47 = vmul.f32 %v8620_v45, %v797_v44 }
 0x32e   : > { %v807_v48 = vadd.f32 %v7345_v46, %v800_v47 }
 0x330   : > { %7828 = vmatmul.mubr.msk.f32.vlgmr.msra.gmra.mrb[2].mxu1 %vm779_vm3, %v807_v48 }
 0x331   : > { %7832 = vmatprep.mubr.msk.f32.mxu1 %vm8937_vm0, %v8938_v11 }
 0x3f6   : > { %v9290_v49 = vpop.f32.mrb[0].mxu1 }
 0x3f7   : > { %v7818_v50 = vpop.f32.mrb[1].mxu1 }
 0x403   : > { %v888_v52 = vpop.f32.mrb[2].mxu1 }
 0x404   : > { %v9295_v53 = vadd.f32 %v7346_v51, %v888_v52  ;;  %v7829_v54 = vpop.f32.mrb[3].mxu1 }
 0x406   : > { %1128 = vrot.lane.b32.xlu0 %v9295_v53, %s10353_s19  ;;  %893 = vrot.lane.b32.xlu1 %v9295_v53, %s10355_s3 }
 0x40a   : > { %972 = vrot.lane.b32.xlu1 %v9295_v53, %s10357_s24 }
 0x40e   : > { %970 = vrot.lane.b32.xlu1 %v9295_v53, %s10351_s18 }
 0x412   : > { %1050 = vrot.lane.b32.xlu1 %v9295_v53, %s10347_s21 }
 0x416   : > { %1048 = vrot.lane.b32.xlu1 %v9295_v53, %s10345_s29 }
 0x41a   : > { %1126 = vrot.lane.b32.xlu1 %v9295_v53, %s10349_s25 }
 0x478   : > { %v894_v55 = vpop.permute.xlu1 %893  ;;  %v1129_v58 = vpop.permute.xlu0 %1128 }
 0x479   : > { %7831 = vmatpush3.xpose.msk.msra.mxu1 %vm895_vm5, %v894_v55 }
 0x47a   : > { %7835 = vmatprep.subr.mxu1 %v8938_v11 }
 0x47c   : > { %7833 = vmatmul.mubr.msk.f32.vlgmr.msra.gmra.mrb[4].mxu1 %vm895_vm5, %v9295_v53  ;;  %v973_v56 = vpop.permute.xlu1 %972 }
 0x47d   : > { %7836 = vmatpush3.xpose.msk.msra.mxu1 %vm895_vm5, %v973_v56  ;;  %7837 = vmatprep.mubr.msk.f32.mxu1 %vm8937_vm0, %v8938_v11 }
 0x47e   : > { %7845 = vmatprep.subr.mxu1 %v8938_v11 }
 0x480   : > { %v971_v57 = vpop.permute.xlu1 %970 }
 0x481   : > { %7838 = vmatmul.mubr.msk.f32.vlgmr.msra.gmra.mrb[6].mxu1 %vm895_vm5, %v971_v57 }
 0x482   : > { %7846 = vmatpush3.xpose.msk.msra.mxu1 %vm895_vm5, %v1129_v58  ;;  %7847 = vmatprep.mubr.msk.f32.mxu1 %vm8937_vm0, %v8938_v11 }
 0x483   : > { %7855 = vmatprep.subr.mxu1 %v8938_v11 }
 0x484   : > { %v1051_v59 = vpop.permute.xlu1 %1050 }
 0x485   : > { %7841 = vmatpush3.xpose.msk.msra.mxu0 %vm895_vm5, %v1051_v59 }
 0x486   : > { %7850 = vmatprep.subr.mxu0 %v8938_v11 }
 0x488   : > { %v1049_v60 = vpop.permute.xlu1 %1048 }
 0x489   : > { %7843 = vmatmul.mubr.msk.f32.vlgmr.msra.gmra.mrb[2].mxu0 %vm895_vm5, %v1049_v60  ;;  %v1582_v60 = vld [vmem:[%s10310_s8] sm:$0xff] }
 0x48a   : > { %7852 = vmatprep.mubr.msk.f32.mxu0 %vm8937_vm0, %v8938_v11 }
 0x48c   : > { %v1127_v61 = vpop.permute.xlu1 %1126 }
 0x48d   : > { %7848 = vmatmul.mubr.msk.f32.vlgmr.msra.gmra.mrb[8].mxu1 %vm895_vm5, %v1127_v61  ;;  %v1583_v61 = vld [vmem:[%s10310_s8 + $0x8] sm:$0xff] }
 0x48e   : > { %7857 = vmatprep.mubr.msk.f32.mxu1 %vm8937_vm0, %v8938_v11 }
 0x54f   : > { %v966_v62 = vpop.f32.mrb[4].mxu1 }
 0x550   : > { %v1204_v63 = vmul.f32 0.35355338, %v966_v62  ;;  %v7834_v0 = vpop.f32.mrb[5].mxu1  ;;  %v8346_v62 = vpack.c.bf16 %v1583_v61, %v1582_v60 }
 0x552   : > { %v1214_v2 = vadd.f32 %v9233_v13, %v1204_v63 }
 0x554   : > { %v1044_v3 = vpop.f32.mrb[6].mxu1  ;;  %v1218_v4 = vsel %vm895_vm5, %v1214_v2, -inf }
 0x555   : > { %v1205_v5 = vmul.f32 0.35355338, %v1044_v3  ;;  %v7839_v6 = vpop.f32.mrb[7].mxu1  ;;  %1219 = vmax.xlane.f32.xlu1 %v1218_v4  ;;  %v1585_v3 = vld [vmem:[%s10310_s8 + $0x18] sm:$0xff] }
 0x557   : > { %v1215_v7 = vadd.f32 %v9233_v13, %v1205_v5 }
 0x559   : > { %v1221_v8 = vsel %vm895_vm5, %v1215_v7, -inf }
 0x55a   : > { %1222 = vmax.xlane.f32.xlu0 %v1221_v8 }
 0x55c   : > { %v1122_v9 = vpop.f32.mrb[2].mxu0 }
 0x55d   : > { %v1206_v10 = vmul.f32 0.35355338, %v1122_v9  ;;  %v7844_v12 = vpop.f32.mrb[3].mxu0 }
 0x55f   : > { %v1216_v14 = vadd.f32 %v9233_v13, %v1206_v10 }
 0x560   : > { %v1200_v15 = vpop.f32.mrb[8].mxu1 }
 0x561   : > { %v1207_v16 = vmul.f32 0.35355338, %v1200_v15  ;;  %v7849_v17 = vpop.f32.mrb[9].mxu1  ;;  %v1224_v19 = vsel %vm895_vm5, %v1216_v14, -inf }
 0x562   : > { %1225 = vmax.xlane.f32.xlu1 %v1224_v19 }
 0x563   : > { %v1217_v20 = vadd.f32 %v9233_v13, %v1207_v16 }
 0x565   : > { %v1227_v22 = vsel %vm895_vm5, %v1217_v20, -inf }
 0x566   : > { %1228 = vmax.xlane.f32.xlu1 %v1227_v22 }
 0x570   : > { %1262 = vrot.lane.b32.xlu0 %v9295_v53, %s10335_s20  ;;  %s10397_s20 = smov 48  }
 0x577   : > { %1338 = vrot.lane.b32.xlu1 %v9295_v53, %s10343_s17  ;;  %s10405_s17 = smov 120  }
 0x5e2   : > { %v1220_v23 = vpop.xlane.xlu1 %1219 }
 0x5e3   : > { %v1230_v24 = vsub.f32 %v1214_v2, %v1220_v23  ;;  %v1584_v2 = vld [vmem:[%s10310_s8 + $0x10] sm:$0xff] }
 0x5e4   : > { %v8349_v4 = vpack.c.bf16 %v1585_v3, %v1584_v2 }
 0x5e5   : > { %v1234_v25 = vmul.f32 1.442695, %v1230_v24 }
 0x5e7   : > { %8621 = vpow2.f32 %v1234_v25  ;;  %v1223_v26 = vpop.xlane.xlu0 %1222 }
 0x5e8   : > { %v1231_v27 = vsub.f32 %v1215_v7, %v1223_v26 }
 0x5ea   : > { %v1236_v28 = vmul.f32 1.442695, %v1231_v27 }
 0x5eb   : > { %v1263_v29 = vpop.permute.xlu0 %1262 }
 0x5ec   : > { %8623 = vpow2.f32 %v1236_v28  ;;  %7851 = vmatpush3.msra.mxu0 %v1263_v29 }
 0x5ed   : > { %7860 = vmatprep.subr.mxu0 %v8938_v11 }
 0x5ef   : > { %v1226_v30 = vpop.xlane.xlu1 %1225 }
 0x5f0   : > { %v1232_v31 = vsub.f32 %v1216_v14, %v1226_v30 }
 0x5f1   : > { %v8622_v32 = vpop.eup %8621 }
 0x5f2   : > { %v1238_v33 = vmul.f32 1.442695, %v1232_v31  ;;  %v1242_v34 = vsel %vm895_vm5, %v8622_v32, 0.0 }
 0x5f3   : > { %1243 = vadd.xlane.f32.xlu0 %v1242_v34  ;;  %v1229_v35 = vpop.xlane.xlu1 %1228 }
 0x5f4   : > { %8625 = vpow2.f32 %v1238_v33  ;;  %v1233_v36 = vsub.f32 %v1217_v20, %v1229_v35  ;;  %v7360_v20 = vld [vmem:[#allocation2] ss:$0 sm:$0xff]  ;;  %v1699_v33 = vld [vmem:[#allocation5 + $0x8] sm:$0xff] }
 0x5f5   : > { %v1701_v35 = vld [vmem:[#allocation5 + $0x18] sm:$0xff] }
 0x5f6   : > { %v8624_v37 = vpop.eup %8623  ;;  %v1240_v38 = vmul.f32 1.442695, %v1233_v36 }
 0x5f7   : > { %v1339_v39 = vpop.permute.xlu1 %1338  ;;  %v1245_v40 = vsel %vm895_vm5, %v8624_v37, 0.0 }
 0x5f8   : > { %8627 = vpow2.f32 %v1240_v38  ;;  %1246 = vadd.xlane.f32.xlu1 %v1245_v40  ;;  %7856 = vmatpush3.msra.mxu1 %v1339_v39  ;;  %v1784_v38 = vld [vmem:[%s10314_s12 + $0x8] sm:$0xff]  ;;  %v1785_v39 = vld [vmem:[%s10314_s12 + $0x10] sm:$0xff] }
 0x5f9   : > { %7865 = vmatprep.subr.mxu1 %v8938_v11 }
 0x5fe   : > { %v8626_v41 = vpop.eup %8625 }
 0x5ff   : > { %v1248_v42 = vsel %vm895_vm5, %v8626_v41, 0.0 }
 0x600   : > { %1249 = vadd.xlane.f32.xlu0 %v1248_v42 }
 0x602   : > { %v8628_v43 = vpop.eup %8627 }
 0x603   : > { %v1251_v44 = vsel %vm895_vm5, %v8628_v43, 0.0 }
 0x604   : > { %1252 = vadd.xlane.f32.xlu1 %v1251_v44  ;;  %v1788_v44 = vld [vmem:[%s10314_s12 + $0x28] sm:$0xff] }
 0x615   : > { %1414 = vrot.lane.b32.xlu1 %v9295_v53, %s10333_s15  ;;  %s10398_s15 = smov 40  }
 0x616   : > { %1490 = vrot.lane.b32.xlu0 %v9295_v53, %s10331_s26  ;;  %s10339_s26 = smov 24  }
 0x680   : > { %v1244_v45 = vpop.xlane.xlu0 %1243 }
 0x681   : > { %8629 = vrcp.f32 %v1244_v45 }
 0x685   : > { %v1247_v46 = vpop.xlane.xlu1 %1246 }
 0x686   : > { %8631 = vrcp.f32 %v1247_v46 }
 0x68b   : > { %v8630_v47 = vpop.eup %8629 }
 0x68c   : > { %v1258_v48 = vmul.f32 %v8630_v47, %v8622_v32  ;;  %v1698_v32 = vld [vmem:[#allocation5] sm:$0xff] }
 0x68d   : > { %v1250_v50 = vpop.xlane.xlu0 %1249  ;;  %v8352_v34 = vpack.c.bf16 %v1699_v33, %v1698_v32 }
 0x68e   : > { %8633 = vrcp.f32 %v1250_v50  ;;  %7853 = vmatmul.mubr.msk.f32.vlgmr.msra.gmra.mrb[4].mxu0 %vm895_vm5, %v1258_v48  ;;  %v7364_v50 = vld [vmem:[%s10316_s14 + $0x1] ss:$0 sm:$0xff] }
 0x68f   : > { %7862 = vmatprep.mubr.msk.f32.mxu0 %vm8937_vm0, %v8938_v11 }
 0x690   : > { %v8632_v51 = vpop.eup %8631 }
 0x691   : > { %v1491_v52 = vpop.permute.xlu0 %1490  ;;  %v1253_v54 = vpop.xlane.xlu1 %1252  ;;  %v1259_v55 = vmul.f32 %v8632_v51, %v8624_v37  ;;  %v1783_v37 = vld [vmem:[%s10314_s12] sm:$0xff] }
 0x692   : > { %8635 = vrcp.f32 %v1253_v54  ;;  %v8358_v40 = vpack.c.bf16 %v1784_v38, %v1783_v37  ;;  %v7365_v54 = vld [vmem:[%s10316_s14 + $0xd] ss:$0 sm:$0xff] }
 0x693   : > { %7858 = vmatmul.mubr.msk.f32.vlgmr.msra.gmra.mrb[10].mxu1 %vm895_vm5, %v1259_v55 }
 0x694   : > { %7866 = vmatpush3.msra.mxu1 %v1491_v52  ;;  %7867 = vmatprep.mubr.msk.f32.mxu1 %vm8937_vm0, %v8938_v11 }
 0x695   : > { %v1415_v53 = vpop.permute.xlu1 %1414  ;;  %8351 = vmatprep.subr.bf16.mxu1 %v8936_v1 }
 0x696   : > { %7861 = vmatpush3.msra.mxu0 %v1415_v53 }
 0x697   : > { %8345 = vmatprep.subr.bf16.mxu0 %v8936_v1 }
 0x698   : > { %v8634_v56 = vpop.eup %8633 }
 0x699   : > { %v1260_v57 = vmul.f32 %v8634_v56, %v8626_v41  ;;  %v1786_v41 = vld [vmem:[%s10314_s12 + $0x18] sm:$0xff]  ;;  %v1789_v56 = vld [vmem:[%s10314_s12 + $0x30] sm:$0xff] }
 0x69a   : > { %v8361_v42 = vpack.c.bf16 %v1786_v41, %v1785_v39 }
 0x69b   : > { %7863 = vmatmul.mubr.msk.f32.vlgmr.msra.gmra.mrb[6].mxu0 %vm895_vm5, %v1260_v57  ;;  %v1790_v57 = vld [vmem:[%s10314_s12 + $0x38] sm:$0xff] }
 0x69c   : > { %v8636_v58 = vpop.eup %8635  ;;  %7878 = vmatprep.mubr.msk.f32.mxu0 %vm8937_vm0, %v8938_v11  ;;  %8347 = vmatpush3.bf16.msra.mxu0 %v8346_v62 }
 0x69d   : > { %v1261_v59 = vmul.f32 %v8636_v58, %v8628_v43  ;;  %8348 = vmatprep.subr.bf16.mxu0 %v8936_v1  ;;  %v1787_v43 = vld [vmem:[%s10314_s12 + $0x20] sm:$0xff]  ;;  %v8367_v58 = vpack.c.bf16 %v1790_v57, %v1789_v56 }
 0x69e   : > { %v8364_v45 = vpack.c.bf16 %v1788_v44, %v1787_v43 }
 0x69f   : > { %7868 = vmatmul.mubr.msk.f32.vlgmr.msra.gmra.mrb[12].mxu1 %vm895_vm5, %v1261_v59  ;;  %v7366_v59 = vld [vmem:[#allocation7] ss:$0 sm:$0xff] }
 0x6a0   : > { %7889 = vmatprep.mubr.msk.f32.mxu1 %vm8937_vm0, %v8938_v11  ;;  %8350 = vmatpush3.bf16.msra.mxu0 %v8349_v4 }
 0x6a1   : > { %8357 = vmatprep.subr.bf16.mxu0 %v8936_v1  ;;  %8353 = vmatpush3.bf16.msra.mxu1 %v8352_v34 }
 0x6a2   : > { %8354 = vmatprep.subr.bf16.mxu1 %v8936_v1 }
 0x761   : > { %v1334_v63 = vpop.f32.mrb[4].mxu0 }
 0x762   : > { %v7854_v0 = vpop.f32.mrb[5].mxu0 }
 0x763   : > { %v7368_v0 = vld [vmem:[#allocation8] ss:$0 sm:$0xff] }
 0x766   : > { %v1410_v5 = vpop.f32.mrb[10].mxu1 }
 0x767   : > { %1567 = vrot.lane.b32.xlu1 %v1410_v5, %s10341_s27  ;;  %v7859_v6 = vpop.f32.mrb[11].mxu1  ;;  %s10400_s27 = smov 24  }
 0x76e   : > { %v1486_v7 = vpop.f32.mrb[6].mxu0 }
 0x76f   : > { %1571 = vrot.lane.b32.xlu0 %v1486_v7, %s10337_s28  ;;  %v7864_v8 = vpop.f32.mrb[7].mxu0 }
 0x772   : > { %v1562_v9 = vpop.f32.mrb[12].mxu1 }
 0x773   : > { %1575 = vrot.lane.b32.xlu1 %v1562_v9, %s10339_s26  ;;  %v7869_v10 = vpop.f32.mrb[13].mxu1  ;;  %s10406_s26 = smov 104  }
 0x7d9   : > { %v1568_v12 = vpop.permute.xlu1 %1567 }
 0x7da   : > { %v1578_v15 = vsel %vm895_vm5, %v1334_v63, %v1568_v12 }
 0x7e1   : > { %v1572_v14 = vpop.permute.xlu0 %1571 }
 0x7e2   : > { %v1579_v16 = vsel %vm614_vm1, %v1578_v15, %v1572_v14  ;;  %v7374_v14 = vld [vmem:[%s10308_s6 + $0x20] sm:$0xff]  ;;  %v7375_v15 = vld [vmem:[%s10308_s6 + $0x28] sm:$0xff] }
 0x7e5   : > { %v1576_v17 = vpop.permute.xlu1 %1575 }
 0x7e6   : > { %v1581_v19 = vsel %vm1580_vm6, %v1579_v16, %v1576_v17  ;;  %v8370_v16 = vpack.c.bf16 %v7375_v15, %v7374_v14  ;;  %v7376_v17 = vld [vmem:[%s10308_s6 + $0x30] sm:$0xff] }
 0x7e7   : > { %7879 = vmatmul.mubr.msk.f32.vlgmr.msra.gmra.mrb[8].mxu0 %vm779_vm3, %v1581_v19  ;;  %v7377_v19 = vld [vmem:[%s10308_s6 + $0x38] sm:$0xff] }
 0x7e8   : > { %7908 = vmatprep.mubr.msk.f32.mxu0 %vm8937_vm0, %v8938_v11  ;;  %8359 = vmatpush3.bf16.msra.mxu0 %v8358_v40 }
 0x7e9   : > { %8360 = vmatprep.subr.bf16.mxu0 %v8936_v1 }
 0x7ec   : > { %8362 = vmatpush3.bf16.msra.mxu0 %v8361_v42 }
 0x7ed   : > { %8363 = vmatprep.subr.bf16.mxu0 %v8936_v1 }
 0x7f0   : > { %8365 = vmatpush3.bf16.msra.mxu0 %v8364_v45 }
 0x7f1   : > { %8366 = vmatprep.subr.bf16.mxu0 %v8936_v1 }
 0x7f4   : > { %8368 = vmatpush3.bf16.msra.mxu0 %v8367_v58 }
 0x7f5   : > { %7932 = vmatprep.subr.mxu0 %v8938_v11 }
 0x8ba   : > { %v1662_v22 = vpop.f32.mrb[8].mxu0 }
 0x8bb   : > { %v1663_v23 = vadd.f32 %v7360_v20, %v1662_v22  ;;  %v7880_v24 = vpop.f32.mrb[9].mxu0  ;;  %v8373_v20 = vpack.c.bf16 %v7377_v19, %v7376_v17 }
 0x8bd   : > { %v9392_v25 = vadd.f32 %v1663_v23, %v9246_v21  ;;  %v1700_v21 = vld [vmem:[#allocation5 + $0x10] sm:$0xff] }
 0x8be   : > { %v8355_v36 = vpack.c.bf16 %v1701_v35, %v1700_v21 }
 0x8bf   : > { %v1671_v26 = vsel %vm779_vm3, %v9392_v25, 0.0 }
 0x8c0   : > { %1672 = vadd.xlane.f32.xlu0 %v1671_v26  ;;  %8356 = vmatpush3.bf16.msra.mxu1 %v8355_v36 }
 0x8c1   : > { %8369 = vmatprep.subr.bf16.mxu1 %v8936_v1 }
 0x94d   : > { %v1673_v27 = vpop.xlane.xlu0 %1672 }
 0x94e   : > { %v1674_v28 = vmul.f32 0.03125, %v1673_v27 }
 0x950   : > { %v1675_v29 = vsub.f32 %v9392_v25, %v1674_v28  ;;  %v7373_v28 = vld [vmem:[%s10316_s14 + $0xe] ss:$0 sm:$0xff] }
 0x952   : > { %v1676_v30 = vmul.f32 %v1675_v29, %v1675_v29  ;;  %v1687_v51 = vmul.f32 %v7364_v50, %v1675_v29 }
 0x954   : > { %v1677_v31 = vsel %vm779_vm3, %v1676_v30, 0.0 }
 0x955   : > { %1678 = vadd.xlane.f32.xlu1 %v1677_v31  ;;  %v7379_v31 = vld [vmem:[%s10309_s7 + $0x1] ss:$0 sm:$0xff] }
 0x9e2   : > { %v1679_v46 = vpop.xlane.xlu1 %1678 }
 0x9e3   : > { %v1680_v47 = vmul.f32 0.03125, %v1679_v46 }
 0x9e5   : > { %v1688_v48 = vadd.f32 1e-06, %v1680_v47 }
 0x9e7   : > { %8637 = vrsqrt.f32 %v1688_v48 }
 0x9f1   : > { %v8638_v52 = vpop.eup %8637 }
 0x9f2   : > { %v1690_v55 = vmul.f32 %v8638_v52, %v1687_v51 }
 0x9f4   : > { %v1697_v53 = vadd.f32 %v7365_v54, %v1690_v55 }
 0x9f6   : > { %7890 = vmatmul.mubr.msk.f32.vlgmr.msra.gmra.mrb[14].mxu1 %vm779_vm3, %v1697_v53 }
 0x9f7   : > { %7919 = vmatprep.mubr.msk.f32.mxu1 %vm8937_vm0, %v8938_v11  ;;  %8371 = vmatpush3.bf16.msra.mxu1 %v8370_v16 }
 0x9f8   : > { %8372 = vmatprep.subr.bf16.mxu1 %v8936_v1 }
 0x9fb   : > { %8374 = vmatpush3.bf16.msra.mxu1 %v8373_v20 }
 0x9fc   : > { %7922 = vmatprep.subr.mxu1 %v8938_v11 }
 0xac9   : > { %v1778_v60 = vpop.f32.mrb[14].mxu1 }
 0xaca   : > { %v1779_v61 = vadd.f32 %v7366_v59, %v1778_v60  ;;  %v7891_v62 = vpop.f32.mrb[15].mxu1 }
 0xacc   : > { %v1782_v63 = vmax.f32 %v1779_v61, 0.0 }
 0xace   : > { %7909 = vmatmul.mubr.msk.f32.vlgmr.msra.gmra.mrb[10].mxu0 %vm1798_vm7, %v1782_v63 }
 0xacf   : > { %7934 = vmatprep.mubr.msk.f32.mxu0 %vm8937_vm0, %v8938_v11 }
 0xba1   : > { %v1868_v2 = vpop.f32.mrb[10].mxu0 }
 0xba2   : > { %v1869_v3 = vadd.f32 %v7368_v0, %v1868_v2  ;;  %v7910_v4 = vpop.f32.mrb[11].mxu0 }
 0xba4   : > { %v9441_v5 = vadd.f32 %v1869_v3, %v9392_v25  ;;  %v7372_v25 = vld [vmem:[%s10316_s14 + $0x2] ss:$0 sm:$0xff] }
 0xba6   : > { %v1877_v6 = vsel %vm779_vm3, %v9441_v5, 0.0 }
 0xba7   : > { %1878 = vadd.xlane.f32.xlu0 %v1877_v6 }
 0xc34   : > { %v1879_v7 = vpop.xlane.xlu0 %1878 }
 0xc35   : > { %v1880_v8 = vmul.f32 0.03125, %v1879_v7 }
 0xc37   : > { %v1881_v9 = vsub.f32 %v9441_v5, %v1880_v8 }
 0xc39   : > { %v1882_v10 = vmul.f32 %v1881_v9, %v1881_v9  ;;  %v1893_v26 = vmul.f32 %v7372_v25, %v1881_v9 }
 0xc3b   : > { %v1883_v12 = vsel %vm779_vm3, %v1882_v10, 0.0 }
 0xc3c   : > { %1884 = vadd.xlane.f32.xlu0 %v1883_v12 }
 0xcc9   : > { %v1885_v22 = vpop.xlane.xlu0 %1884 }
 0xcca   : > { %v1886_v23 = vmul.f32 0.03125, %v1885_v22 }
 0xccc   : > { %v1894_v24 = vadd.f32 1e-06, %v1886_v23 }
 0xcce   : > { %8639 = vrsqrt.f32 %v1894_v24 }
 0xcd8   : > { %v8640_v27 = vpop.eup %8639 }
 0xcd9   : > { %v1896_v29 = vmul.f32 %v8640_v27, %v1893_v26 }
 0xcdb   : > { %v1903_v30 = vadd.f32 %v7373_v28, %v1896_v29 }
 0xcdd   : > { %7920 = vmatmul.mubr.msk.f32.vlgmr.msra.gmra.mrb[16].mxu1 %vm779_vm3, %v1903_v30 }
 0xcde   : > { %7924 = vmatprep.mubr.msk.f32.mxu1 %vm8937_vm0, %v8938_v11 }
 0xdb0   : > { %v1986_v32 = vpop.f32.mrb[16].mxu1 }
 0xdb1   : > { %v9473_v33 = vadd.f32 %v7379_v31, %v1986_v32  ;;  %v7921_v34 = vpop.f32.mrb[17].mxu1 }
 0xdb3   : > { %2069 = vrot.lane.b32.xlu0 %v9473_v33, %s10357_s24  ;;  %1991 = vrot.lane.b32.xlu1 %v9473_v33, %s10355_s3  ;;  %s10402_s24 = smov 88   ;;  %s10409_s3 = sld [smem:[#allocation26_spill]] }
 0xdb7   : > { %2225 = vrot.lane.b32.xlu0 %v9473_v33, %s10353_s19  ;;  %2067 = vrot.lane.b32.xlu1 %v9473_v33, %s10351_s18  ;;  %s10403_s18 = smov 96  }
 0xdb9   : > { %s596_s1 = scalar_lea.vmem %s10409_s3, %s9214_s23  ;;  %s7574_s3 = sshll.u32 %s9055_s22, 7 }
 0xdba   : > { %s10259_s4 = scalar_lea.hbm %s10412_s2, %s7574_s3  ;;  %s8953_s22 = smov [#allocation10]  }
 0xdbb   : > { %2223 = vrot.lane.b32.xlu0 %v9473_v33, %s10349_s25  ;;  %2147 = vrot.lane.b32.xlu1 %v9473_v33, %s10347_s21  ;;  %s10407_s21 = smov 80   ;;  %s10408_s25 = smov 112  }
 0xdbc   : > { %s8855_s23 = sshll.u32 %s8953_s22, 4  ;;  %s8856_s23 = int_to_ptr.vmem [resolvable:$false] %s8855_s23 }
 0xdbf   : > { %2145 = vrot.lane.b32.xlu1 %v9473_v33, %s10345_s29  ;;  %s10401_s29 = smov 16  }
 0xe25   : > { %v2070_v21 = vpop.permute.xlu0 %2069  ;;  %v1992_v35 = vpop.permute.xlu1 %1991 }
 0xe26   : > { %7923 = vmatpush3.xpose.msk.msra.mxu1 %vm895_vm5, %v1992_v35 }
 0xe27   : > { %7927 = vmatprep.subr.mxu1 %v8938_v11 }
 0xe29   : > { %7925 = vmatmul.mubr.msk.f32.vlgmr.msra.gmra.mrb[18].mxu1 %vm895_vm5, %v9473_v33  ;;  %v2068_v36 = vpop.permute.xlu1 %2067  ;;  %v2226_v37 = vpop.permute.xlu0 %2225 }
 0xe2a   : > { %7928 = vmatpush3.xpose.msk.msra.mxu1 %vm895_vm5, %v2070_v21  ;;  %7929 = vmatprep.mubr.msk.f32.mxu1 %vm8937_vm0, %v8938_v11 }
 0xe2b   : > { %7937 = vmatprep.subr.mxu1 %v8938_v11 }
 0xe2d   : > { %7930 = vmatmul.mubr.msk.f32.vlgmr.msra.gmra.mrb[20].mxu1 %vm895_vm5, %v2068_v36  ;;  %v2148_v38 = vpop.permute.xlu1 %2147  ;;  %v2224_v39 = vpop.permute.xlu0 %2223 }
 0xe2e   : > { %7933 = vmatpush3.xpose.msk.msra.mxu0 %vm895_vm5, %v2148_v38  ;;  %7938 = vmatpush3.xpose.msk.msra.mxu1 %vm895_vm5, %v2226_v37 }
 0xe2f   : > { %7939 = vmatprep.mubr.msk.f32.mxu1 %vm8937_vm0, %v8938_v11  ;;  %7947 = vmatprep.subr.mxu1 %v8938_v11 }
 0xe30   : > { %7942 = vmatprep.subr.mxu0 %v8938_v11 }
 0xe31   : > { %7940 = vmatmul.mubr.msk.f32.vlgmr.msra.gmra.mrb[22].mxu1 %vm895_vm5, %v2224_v39  ;;  %v2146_v40 = vpop.permute.xlu1 %2145  ;;  %v7393_v39 = vld [vmem:[%s10310_s8 + $0x20] sm:$0xff] }
 0xe32   : > { %7935 = vmatmul.mubr.msk.f32.vlgmr.msra.gmra.mrb[12].mxu0 %vm895_vm5, %v2146_v40  ;;  %7949 = vmatprep.mubr.msk.f32.mxu1 %vm8937_vm0, %v8938_v11  ;;  %v7394_v40 = vld [vmem:[%s10310_s8 + $0x28] sm:$0xff] }
 0xe33   : > { %7944 = vmatprep.mubr.msk.f32.mxu0 %vm8937_vm0, %v8938_v11 }
 0xefc   : > { %v2063_v41 = vpop.f32.mrb[18].mxu1 }
 0xefd   : > { %v2301_v42 = vmul.f32 0.35355338, %v2063_v41  ;;  %v7926_v43 = vpop.f32.mrb[19].mxu1  ;;  %v8376_v41 = vpack.c.bf16 %v7394_v40, %v7393_v39  ;;  %v7423_v40 = vld [vmem:[%s10308_s6 + $0x40] sm:$0xff] }
 0xefe   : > { %v7396_v43 = vld [vmem:[%s10310_s8 + $0x38] sm:$0xff] }
 0xeff   : > { %v2305_v44 = vadd.f32 %v2301_v42, %v9233_v13  ;;  %v7395_v42 = vld [vmem:[%s10310_s8 + $0x30] sm:$0xff] }
 0xf00   : > { %v2141_v45 = vpop.f32.mrb[20].mxu1 }
 0xf01   : > { %v2302_v46 = vmul.f32 0.35355338, %v2141_v45  ;;  %v7931_v47 = vpop.f32.mrb[21].mxu1  ;;  %v2309_v48 = vsel %vm895_vm5, %v2305_v44, -inf }
 0xf02   : > { %2310 = vmax.xlane.f32.xlu1 %v2309_v48 }
 0xf03   : > { %v2306_v50 = vadd.f32 %v2302_v46, %v9233_v13 }
 0xf04   : > { %v2297_v51 = vpop.f32.mrb[22].mxu1 }
 0xf05   : > { %v2304_v52 = vmul.f32 0.35355338, %v2297_v51  ;;  %v2219_v54 = vpop.f32.mrb[12].mxu0  ;;  %v7941_v55 = vpop.f32.mrb[23].mxu1  ;;  %v2312_v53 = vsel %vm895_vm5, %v2306_v50, -inf }
 0xf06   : > { %v2303_v56 = vmul.f32 0.35355338, %v2219_v54  ;;  %2313 = vmax.xlane.f32.xlu0 %v2312_v53  ;;  %v7936_v57 = vpop.f32.mrb[13].mxu0  ;;  %v774_v55 = vmul.f32 5.656854, %v9290_v49 }
 0xf07   : > { %v2308_v58 = vadd.f32 %v2304_v52, %v9233_v13 }
 0xf08   : > { %v2307_v59 = vadd.f32 %v2303_v56, %v9233_v13  ;;  %v9565_v53 = vadd.f32 %v774_v55, %v9243_v18  ;;  %v7397_v18 = vld [vmem:[#allocation2 + $0x1] ss:$0 sm:$0xff] }
 0xf09   : > { %v2318_v60 = vsel %vm895_vm5, %v2308_v58, -inf }
 0xf0a   : > { %2319 = vmax.xlane.f32.xlu1 %v2318_v60  ;;  %v2315_v61 = vsel %vm895_vm5, %v2307_v59, -inf  ;;  %v3003_v56 = vsel %vm779_vm3, %v9565_v53, 0.0 }
 0xf0b   : > { %2316 = vmax.xlane.f32.xlu0 %v2315_v61 }
 0xf1b   : > { %2429 = vrot.lane.b32.xlu1 %v9473_v33, %s10395_s30 }
 0xf21   : > { %2353 = vrot.lane.b32.xlu0 %v9473_v33, %s10396_s16 }
 0xf8f   : > { %v2311_v62 = vpop.xlane.xlu1 %2310 }
 0xf90   : > { %v2321_v63 = vsub.f32 %v2305_v44, %v2311_v62  ;;  %v8379_v44 = vpack.c.bf16 %v7396_v43, %v7395_v42  ;;  %v7402_v43 = vld [vmem:[%s10316_s14 + $0xf] ss:$0 sm:$0xff] }
 0xf92   : > { %v2325_v0 = vmul.f32 1.442695, %v2321_v63 }
 0xf93   : > { %v2314_v2 = vpop.xlane.xlu0 %2313 }
 0xf94   : > { %8641 = vpow2.f32 %v2325_v0  ;;  %v2322_v3 = vsub.f32 %v2306_v50, %v2314_v2 }
 0xf96   : > { %v2327_v4 = vmul.f32 1.442695, %v2322_v3 }
 0xf97   : > { %v2320_v6 = vpop.xlane.xlu1 %2319 }
 0xf98   : > { %8643 = vpow2.f32 %v2327_v4  ;;  %v2324_v7 = vsub.f32 %v2308_v58, %v2320_v6  ;;  %v2317_v8 = vpop.xlane.xlu0 %2316 }
 0xf99   : > { %v2323_v9 = vsub.f32 %v2307_v59, %v2317_v8 }
 0xf9a   : > { %v2331_v10 = vmul.f32 1.442695, %v2324_v7 }
 0xf9b   : > { %v2329_v12 = vmul.f32 1.442695, %v2323_v9  ;;  %v2430_v14 = vpop.permute.xlu1 %2429 }
 0xf9c   : > { %8645 = vpow2.f32 %v2331_v10  ;;  %7948 = vmatpush3.msra.mxu1 %v2430_v14  ;;  %v2354_v15 = vpop.permute.xlu0 %2353 }
 0xf9d   : > { %8647 = vpow2.f32 %v2329_v12  ;;  %7943 = vmatpush3.msra.mxu0 %v2354_v15  ;;  %7957 = vmatprep.subr.mxu1 %v8938_v11 }
 0xf9e   : > { %v8642_v16 = vpop.eup %8641  ;;  %7952 = vmatprep.subr.mxu0 %v8938_v11 }
 0xf9f   : > { %v2333_v17 = vsel %vm895_vm5, %v8642_v16, 0.0 }
 0xfa0   : > { %2334 = vadd.xlane.f32.xlu0 %v2333_v17  ;;  %v2792_v17 = vld [vmem:[#allocation5 + $0x28] sm:$0xff] }
 0xfa2   : > { %v8644_v19 = vpop.eup %8643 }
 0xfa3   : > { %v2336_v20 = vsel %vm895_vm5, %v8644_v19, 0.0 }
 0xfa4   : > { %2337 = vadd.xlane.f32.xlu1 %v2336_v20  ;;  %v2793_v20 = vld [vmem:[#allocation5 + $0x30] sm:$0xff] }
 0xfa6   : > { %v8646_v22 = vpop.eup %8645 }
 0xfa7   : > { %v8648_v23 = vpop.eup %8647  ;;  %v2342_v24 = vsel %vm895_vm5, %v8646_v22, 0.0 }
 0xfa8   : > { %2343 = vadd.xlane.f32.xlu1 %v2342_v24  ;;  %v2339_v25 = vsel %vm895_vm5, %v8648_v23, 0.0  ;;  %v7405_v24 = vld [vmem:[%s10314_s12 + $0x40] sm:$0xff] }
 0xfa9   : > { %2340 = vadd.xlane.f32.xlu0 %v2339_v25  ;;  %v7406_v25 = vld [vmem:[%s10314_s12 + $0x48] sm:$0xff] }
 0xfb9   : > { %2505 = vrot.lane.b32.xlu1 %v9473_v33, %s10397_s20 }
 0xfbf   : > { %2581 = vrot.lane.b32.xlu0 %v9473_v33, %s10398_s15 }
0x102d   : > { %v2335_v26 = vpop.xlane.xlu0 %2334 }
0x102e   : > { %8649 = vrcp.f32 %v2335_v26  ;;  %v7407_v26 = vld [vmem:[%s10314_s12 + $0x50] sm:$0xff] }
0x1031   : > { %v2338_v27 = vpop.xlane.xlu1 %2337 }
0x1032   : > { %8651 = vrcp.f32 %v2338_v27  ;;  %v8388_v27 = vpack.c.bf16 %v7406_v25, %v7405_v24 }
0x1035   : > { %v2344_v28 = vpop.xlane.xlu1 %2343 }
0x1036   : > { %8653 = vrcp.f32 %v2344_v28  ;;  %v2341_v29 = vpop.xlane.xlu0 %2340  ;;  %v7408_v28 = vld [vmem:[%s10314_s12 + $0x58] sm:$0xff] }
0x1037   : > { %8655 = vrcp.f32 %v2341_v29  ;;  %v8391_v29 = vpack.c.bf16 %v7408_v28, %v7407_v26 }
0x1038   : > { %v8650_v30 = vpop.eup %8649 }
0x1039   : > { %v2506_v31 = vpop.permute.xlu1 %2505  ;;  %v2349_v32 = vmul.f32 %v8650_v30, %v8642_v16  ;;  %v2791_v16 = vld [vmem:[#allocation5 + $0x20] sm:$0xff] }
0x103a   : > { %v2582_v33 = vpop.permute.xlu0 %2581  ;;  %v7409_v30 = vld [vmem:[%s10314_s12 + $0x60] sm:$0xff] }
0x103b   : > { %7945 = vmatmul.mubr.msk.f32.vlgmr.msra.gmra.mrb[14].mxu0 %vm895_vm5, %v2349_v32 }
0x103c   : > { %v8652_v34 = vpop.eup %8651  ;;  %7953 = vmatpush3.msra.mxu0 %v2506_v31  ;;  %7954 = vmatprep.mubr.msk.f32.mxu0 %vm8937_vm0, %v8938_v11  ;;  %v7410_v31 = vld [vmem:[%s10314_s12 + $0x68] sm:$0xff] }
0x103d   : > { %v2350_v21 = vmul.f32 %v8652_v34, %v8644_v19  ;;  %8375 = vmatprep.subr.bf16.mxu0 %v8936_v1  ;;  %v8382_v19 = vpack.c.bf16 %v2792_v17, %v2791_v16  ;;  %v8394_v32 = vpack.c.bf16 %v7410_v31, %v7409_v30  ;;  %v600_v17 = vld [vmem:[%s596_s1] sm:$0xff] }
0x103f   : > { %7950 = vmatmul.mubr.msk.f32.vlgmr.msra.gmra.mrb[24].mxu1 %vm895_vm5, %v2350_v21 }
0x1040   : > { %v8654_v35 = vpop.eup %8653  ;;  %7958 = vmatpush3.msra.mxu1 %v2582_v33  ;;  %7959 = vmatprep.mubr.msk.f32.mxu1 %vm8937_vm0, %v8938_v11 }
0x1041   : > { %v8656_v36 = vpop.eup %8655  ;;  %v2352_v37 = vmul.f32 %v8654_v35, %v8646_v22  ;;  %8381 = vmatprep.subr.bf16.mxu1 %v8936_v1  ;;  %v2794_v22 = vld [vmem:[#allocation5 + $0x38] sm:$0xff] }
0x1042   : > { %v2351_v38 = vmul.f32 %v8656_v36, %v8648_v23  ;;  %v8385_v23 = vpack.c.bf16 %v2794_v22, %v2793_v20 }
0x1043   : > { %7960 = vmatmul.mubr.msk.f32.vlgmr.msra.gmra.mrb[26].mxu1 %vm895_vm5, %v2352_v37 }
0x1044   : > { %7955 = vmatmul.mubr.msk.f32.vlgmr.msra.gmra.mrb[16].mxu0 %vm895_vm5, %v2351_v38  ;;  %7981 = vmatprep.mubr.msk.f32.mxu1 %vm8937_vm0, %v8938_v11  ;;  %v7401_v38 = vld [vmem:[%s10316_s14 + $0x3] ss:$0 sm:$0xff] }
0x1045   : > { %7970 = vmatprep.mubr.msk.f32.mxu0 %vm8937_vm0, %v8938_v11  ;;  %8377 = vmatpush3.bf16.msra.mxu0 %v8376_v41  ;;  %v7424_v41 = vld [vmem:[%s10308_s6 + $0x48] sm:$0xff] }
0x1046   : > { %8378 = vmatprep.subr.bf16.mxu0 %v8936_v1  ;;  %8383 = vmatpush3.bf16.msra.mxu1 %v8382_v19  ;;  %v7336_v19 = vadd.f32 -1.0, %v600_v17 }
0x1047   : > { %8384 = vmatprep.subr.bf16.mxu1 %v8936_v1 }
0x1048   : > { %v9695_v20 = vmul.f32 1e+09, %v7336_v19  ;;  %v7442_v19 = vld [vmem:[%s10310_s8 + $0x40] sm:$0xff] }
0x1049   : > { %8380 = vmatpush3.bf16.msra.mxu0 %v8379_v44 }
0x104a   : > { %8387 = vmatprep.subr.bf16.mxu0 %v8936_v1  ;;  %8386 = vmatpush3.bf16.msra.mxu1 %v8385_v23 }
0x104b   : > { %8399 = vmatprep.subr.bf16.mxu1 %v8936_v1 }
0x110e   : > { %v2425_v45 = vpop.f32.mrb[14].mxu0 }
0x110f   : > { %v7946_v46 = vpop.f32.mrb[15].mxu0 }
0x1110   : > { %v8400_v46 = vpack.c.bf16 %v7424_v41, %v7423_v40 }
0x1112   : > { %v2501_v47 = vpop.f32.mrb[24].mxu1 }
0x1113   : > { %2658 = vrot.lane.b32.xlu1 %v2501_v47, %s10399_s10  ;;  %v7951_v48 = vpop.f32.mrb[25].mxu1 }
0x1114   : > { %v7425_v48 = vld [vmem:[%s10308_s6 + $0x50] sm:$0xff] }
0x1116   : > { %v2653_v50 = vpop.f32.mrb[26].mxu1 }
0x1117   : > { %2666 = vrot.lane.b32.xlu1 %v2653_v50, %s10400_s27  ;;  %v2577_v51 = vpop.f32.mrb[16].mxu0  ;;  %v7961_v52 = vpop.f32.mrb[27].mxu1  ;;  %v7426_v50 = vld [vmem:[%s10308_s6 + $0x58] sm:$0xff] }
0x1118   : > { %2662 = vrot.lane.b32.xlu0 %v2577_v51, %s10401_s29  ;;  %v7956_v54 = vpop.f32.mrb[17].mxu0 }
0x1119   : > { %v8403_v54 = vpack.c.bf16 %v7426_v50, %v7425_v48 }
0x113b   : > { %3004 = vadd.xlane.f32.xlu1 %v3003_v56  ;;  %v7422_v56 = vld [vmem:[%s10316_s14 + $0x11] ss:$0 sm:$0xff] }
0x1185   : > { %v2659_v57 = vpop.permute.xlu1 %2658 }
0x1186   : > { %v2669_v58 = vsel %vm895_vm5, %v2425_v45, %v2659_v57  ;;  %v7421_v45 = vld [vmem:[%s10316_s14 + $0x5] ss:$0 sm:$0xff] }
0x1189   : > { %v2667_v60 = vpop.permute.xlu1 %2666 }
0x118a   : > { %v2663_v59 = vpop.permute.xlu0 %2662 }
0x118b   : > { %v2670_v61 = vsel %vm614_vm1, %v2669_v58, %v2663_v59  ;;  %v7411_v58 = vld [vmem:[%s10314_s12 + $0x70] sm:$0xff]  ;;  %v7412_v59 = vld [vmem:[%s10314_s12 + $0x78] sm:$0xff] }
0x118c   : > { %v2671_v62 = vsel %vm1580_vm6, %v2670_v61, %v2667_v60  ;;  %v8397_v60 = vpack.c.bf16 %v7412_v59, %v7411_v58  ;;  %v7403_v61 = vld [vmem:[#allocation7 + $0x1] ss:$0 sm:$0xff] }
0x118d   : > { %7971 = vmatmul.mubr.msk.f32.vlgmr.msra.gmra.mrb[18].mxu0 %vm779_vm3, %v2671_v62 }
0x118e   : > { %8000 = vmatprep.mubr.msk.f32.mxu0 %vm8937_vm0, %v8938_v11  ;;  %8389 = vmatpush3.bf16.msra.mxu0 %v8388_v27 }
0x118f   : > { %8390 = vmatprep.subr.bf16.mxu0 %v8936_v1 }
0x1192   : > { %8392 = vmatpush3.bf16.msra.mxu0 %v8391_v29 }
0x1193   : > { %8393 = vmatprep.subr.bf16.mxu0 %v8936_v1 }
0x1196   : > { %8395 = vmatpush3.bf16.msra.mxu0 %v8394_v32 }
0x1197   : > { %8396 = vmatprep.subr.bf16.mxu0 %v8936_v1 }
0x119a   : > { %8398 = vmatpush3.bf16.msra.mxu0 %v8397_v60 }
0x119b   : > { %8024 = vmatprep.subr.mxu0 %v8938_v11 }
0x11c8   : > { %v3005_v4 = vpop.xlane.xlu1 %3004 }
0x11c9   : > { %v3006_v6 = vmul.f32 0.03125, %v3005_v4 }
0x11cb   : > { %v3007_v9 = vsub.f32 %v9565_v53, %v3006_v6 }
0x11cd   : > { %v3008_v15 = vmul.f32 %v3007_v9, %v3007_v9  ;;  %v3019_v52 = vmul.f32 %v7421_v45, %v3007_v9 }
0x1260   : > { %v2754_v49 = vpop.f32.mrb[18].mxu0 }
0x1261   : > { %v2755_v63 = vadd.f32 %v7397_v18, %v2754_v49  ;;  %v7972_v0 = vpop.f32.mrb[19].mxu0 }
0x1262   : > { %v7428_v0 = vld [vmem:[%s10309_s7 + $0x2] ss:$0 sm:$0xff] }
0x1263   : > { %v9576_v2 = vadd.f32 %v2755_v63, %v9441_v5  ;;  %v3009_v5 = vsel %vm779_vm3, %v3008_v15, 0.0 }
0x1265   : > { %v2763_v3 = vsel %vm779_vm3, %v9576_v2, 0.0 }
0x1266   : > { %2764 = vadd.xlane.f32.xlu0 %v2763_v3 }
0x12f3   : > { %v2765_v7 = vpop.xlane.xlu0 %2764 }
0x12f4   : > { %v2766_v8 = vmul.f32 0.03125, %v2765_v7 }
0x12f6   : > { %v2767_v10 = vsub.f32 %v9576_v2, %v2766_v8 }
0x12f8   : > { %v2768_v12 = vmul.f32 %v2767_v10, %v2767_v10  ;;  %v2779_v39 = vmul.f32 %v7401_v38, %v2767_v10 }
0x12fa   : > { %v2769_v14 = vsel %vm779_vm3, %v2768_v12, 0.0 }
0x12fb   : > { %2770 = vadd.xlane.f32.xlu0 %v2769_v14 }
0x12ff   : > { %3010 = vadd.xlane.f32.xlu0 %v3009_v5 }
0x1388   : > { %v2771_v34 = vpop.xlane.xlu0 %2770 }
0x1389   : > { %v2772_v21 = vmul.f32 0.03125, %v2771_v34 }
0x138b   : > { %v2780_v33 = vadd.f32 1e-06, %v2772_v21 }
0x138c   : > { %v3011_v35 = vpop.xlane.xlu0 %3010 }
0x138d   : > { %8657 = vrsqrt.f32 %v2780_v33  ;;  %v3012_v36 = vmul.f32 0.03125, %v3011_v35 }
0x138f   : > { %v3020_v37 = vadd.f32 1e-06, %v3012_v36 }
0x1391   : > { %8659 = vrsqrt.f32 %v3020_v37 }
0x1397   : > { %v8658_v42 = vpop.eup %8657 }
0x1398   : > { %v2782_v44 = vmul.f32 %v8658_v42, %v2779_v39 }
0x139a   : > { %v2789_v47 = vadd.f32 %v7402_v43, %v2782_v44 }
0x139b   : > { %v8660_v51 = vpop.eup %8659 }
0x139c   : > { %7982 = vmatmul.mubr.msk.f32.vlgmr.msra.gmra.mrb[28].mxu1 %vm779_vm3, %v2789_v47  ;;  %v3022_v55 = vmul.f32 %v8660_v51, %v3019_v52 }
0x139d   : > { %8401 = vmatpush3.bf16.msra.mxu1 %v8400_v46  ;;  %8011 = vmatprep.mubr.msk.f32.mxu1 %vm8937_vm0, %v8938_v11 }
0x139e   : > { %8402 = vmatprep.subr.bf16.mxu1 %v8936_v1  ;;  %v3029_v57 = vadd.f32 %v7422_v56, %v3022_v55 }
0x13a1   : > { %8404 = vmatpush3.bf16.msra.mxu1 %v8403_v54 }
0x13a2   : > { %8014 = vmatprep.subr.mxu1 %v8938_v11 }
0x13a4   : > { %8012 = vmatmul.mubr.msk.f32.vlgmr.msra.gmra.mrb[30].mxu1 %vm779_vm3, %v3029_v57 }
0x13a5   : > { %8016 = vmatprep.mubr.msk.f32.mxu1 %vm8937_vm0, %v8938_v11 }
0x146f   : > { %v2872_v62 = vpop.f32.mrb[28].mxu1 }
0x1470   : > { %v2873_v18 = vadd.f32 %v7403_v61, %v2872_v62  ;;  %v7983_v49 = vpop.f32.mrb[29].mxu1 }
0x1472   : > { %v2876_v63 = vmax.f32 %v2873_v18, 0.0 }
0x1474   : > { %8001 = vmatmul.mubr.msk.f32.vlgmr.msra.gmra.mrb[20].mxu0 %vm1798_vm7, %v2876_v63 }
0x1475   : > { %8026 = vmatprep.mubr.msk.f32.mxu0 %vm8937_vm0, %v8938_v11 }
0x1477   : > { %v3112_v3 = vpop.f32.mrb[30].mxu1 }
0x1478   : > { %v9652_v4 = vadd.f32 %v7428_v0, %v3112_v3  ;;  %v8013_v6 = vpop.f32.mrb[31].mxu1 }
0x147a   : > { %3195 = vrot.lane.b32.xlu0 %v9652_v4, %s10402_s24  ;;  %3117 = vrot.lane.b32.xlu1 %v9652_v4, %s10403_s18 }
0x147e   : > { %3351 = vrot.lane.b32.xlu0 %v9652_v4, %s10404_s0  ;;  %3193 = vrot.lane.b32.xlu1 %v9652_v4, %s10405_s17 }
0x1482   : > { %3349 = vrot.lane.b32.xlu0 %v9652_v4, %s10406_s26  ;;  %3273 = vrot.lane.b32.xlu1 %v9652_v4, %s10407_s21 }
0x1486   : > { %3271 = vrot.lane.b32.xlu1 %v9652_v4, %s10408_s25 }
0x14ec   : > { %v3196_v7 = vpop.permute.xlu0 %3195  ;;  %v3118_v8 = vpop.permute.xlu1 %3117 }
0x14ed   : > { %8015 = vmatpush3.xpose.msk.msra.mxu1 %vm895_vm5, %v3118_v8 }
0x14ee   : > { %8019 = vmatprep.subr.mxu1 %v8938_v11 }
0x14f0   : > { %8017 = vmatmul.mubr.msk.f32.vlgmr.msra.gmra.mrb[32].mxu1 %vm895_vm5, %v9652_v4  ;;  %v3194_v9 = vpop.permute.xlu1 %3193  ;;  %v3352_v10 = vpop.permute.xlu0 %3351 }
0x14f1   : > { %8020 = vmatpush3.xpose.msk.msra.mxu1 %vm895_vm5, %v3196_v7  ;;  %8021 = vmatprep.mubr.msk.f32.mxu1 %vm8937_vm0, %v8938_v11 }
0x14f2   : > { %8029 = vmatprep.subr.mxu1 %v8938_v11 }
0x14f4   : > { %8022 = vmatmul.mubr.msk.f32.vlgmr.msra.gmra.mrb[34].mxu1 %vm895_vm5, %v3194_v9  ;;  %v3274_v12 = vpop.permute.xlu1 %3273  ;;  %v3350_v14 = vpop.permute.xlu0 %3349 }
0x14f5   : > { %8025 = vmatpush3.xpose.msk.msra.mxu0 %vm895_vm5, %v3274_v12  ;;  %8030 = vmatpush3.xpose.msk.msra.mxu1 %vm895_vm5, %v3352_v10 }
0x14f6   : > { %8031 = vmatprep.mubr.msk.f32.mxu1 %vm8937_vm0, %v8938_v11  ;;  %8039 = vmatprep.subr.mxu1 %v8938_v11 }
0x14f7   : > { %8034 = vmatprep.subr.mxu0 %v8938_v11 }
0x14f8   : > { %8032 = vmatmul.mubr.msk.f32.vlgmr.msra.gmra.mrb[36].mxu1 %vm895_vm5, %v3350_v14  ;;  %v3272_v15 = vpop.permute.xlu1 %3271 }
0x14f9   : > { %8027 = vmatmul.mubr.msk.f32.vlgmr.msra.gmra.mrb[22].mxu0 %vm895_vm5, %v3272_v15  ;;  %8041 = vmatprep.mubr.msk.f32.mxu1 %vm8937_vm0, %v8938_v11 }
0x14fa   : > { %8036 = vmatprep.mubr.msk.f32.mxu0 %vm8937_vm0, %v8938_v11 }
0x1547   : > { %v9689_v5 = vpop.f32.mrb[20].mxu0 }
0x1548   : > { %v8002_v16 = vpop.f32.mrb[21].mxu0 }
0x15c3   : > { %v3189_v22 = vpop.f32.mrb[32].mxu1 }
0x15c4   : > { %v3427_v23 = vmul.f32 0.35355338, %v3189_v22  ;;  %v8018_v24 = vpop.f32.mrb[33].mxu1  ;;  %v7443_v22 = vld [vmem:[%s10310_s8 + $0x48] sm:$0xff] }
0x15c5   : > { %v7444_v24 = vld [vmem:[%s10310_s8 + $0x50] sm:$0xff] }
0x15c6   : > { %v3431_v25 = vadd.f32 %v3427_v23, %v9695_v20  ;;  %v8406_v23 = vpack.c.bf16 %v7443_v22, %v7442_v19 }
0x15c7   : > { %v3267_v26 = vpop.f32.mrb[34].mxu1 }
0x15c8   : > { %v3428_v27 = vmul.f32 0.35355338, %v3267_v26  ;;  %v8023_v28 = vpop.f32.mrb[35].mxu1  ;;  %v3435_v29 = vsel %vm895_vm5, %v3431_v25, -inf }
0x15c9   : > { %3436 = vmax.xlane.f32.xlu1 %v3435_v29 }
0x15ca   : > { %v3432_v30 = vadd.f32 %v3428_v27, %v9695_v20 }
0x15cb   : > { %v3423_v31 = vpop.f32.mrb[36].mxu1 }
0x15cc   : > { %v3430_v32 = vmul.f32 0.35355338, %v3423_v31  ;;  %v3345_v34 = vpop.f32.mrb[22].mxu0  ;;  %v8033_v21 = vpop.f32.mrb[37].mxu1  ;;  %v3438_v33 = vsel %vm895_vm5, %v3432_v30, -inf }
0x15cd   : > { %v3429_v35 = vmul.f32 0.35355338, %v3345_v34  ;;  %3439 = vmax.xlane.f32.xlu0 %v3438_v33  ;;  %v8028_v36 = vpop.f32.mrb[23].mxu0  ;;  %v7413_v33 = vld [vmem:[#allocation8 + $0x1] ss:$0 sm:$0xff] }
0x15ce   : > { %v3434_v37 = vadd.f32 %v3430_v32, %v9695_v20 }
0x15cf   : > { %v3433_v38 = vadd.f32 %v3429_v35, %v9695_v20  ;;  %v2964_v35 = vadd.f32 %v7413_v33, %v9689_v5 }
0x15d0   : > { %v3444_v39 = vsel %vm895_vm5, %v3434_v37, -inf }
0x15d1   : > { %3445 = vmax.xlane.f32.xlu1 %v3444_v39  ;;  %v3441_v40 = vsel %vm895_vm5, %v3433_v38, -inf  ;;  %v2967_v36 = vadd.f32 %v2964_v35, %v9576_v2 }
0x15d2   : > { %3442 = vmax.xlane.f32.xlu0 %v3441_v40 }
0x15e2   : > { %3555 = vrot.lane.b32.xlu1 %v9652_v4, %s10395_s30 }
0x15e8   : > { %3479 = vrot.lane.b32.xlu0 %v9652_v4, %s10396_s16 }
0x1656   : > { %v3437_v41 = vpop.xlane.xlu1 %3436 }
0x1657   : > { %v3447_v42 = vsub.f32 %v3431_v25, %v3437_v41  ;;  %v7445_v25 = vld [vmem:[%s10310_s8 + $0x58] sm:$0xff] }
0x1658   : > { %v8409_v26 = vpack.c.bf16 %v7445_v25, %v7444_v24 }
0x1659   : > { %v3451_v43 = vmul.f32 1.442695, %v3447_v42 }
0x165a   : > { %v3440_v44 = vpop.xlane.xlu0 %3439 }
0x165b   : > { %8661 = vpow2.f32 %v3451_v43  ;;  %v3448_v45 = vsub.f32 %v3432_v30, %v3440_v44 }
0x165d   : > { %v3453_v46 = vmul.f32 1.442695, %v3448_v45 }
0x165e   : > { %v3446_v47 = vpop.xlane.xlu1 %3445 }
0x165f   : > { %8663 = vpow2.f32 %v3453_v46  ;;  %v3450_v48 = vsub.f32 %v3434_v37, %v3446_v47  ;;  %v3443_v50 = vpop.xlane.xlu0 %3442  ;;  %v2972_v37 = vsel %vm779_vm3, %v2967_v36, 0.0  ;;  %v7446_v47 = vld [vmem:[#allocation2 + $0x2] ss:$0 sm:$0xff] }
0x1660   : > { %v3449_v51 = vsub.f32 %v3433_v38, %v3443_v50 }
0x1661   : > { %v3457_v52 = vmul.f32 1.442695, %v3450_v48 }
0x1662   : > { %v3455_v54 = vmul.f32 1.442695, %v3449_v51  ;;  %v3556_v55 = vpop.permute.xlu1 %3555 }
0x1663   : > { %8665 = vpow2.f32 %v3457_v52  ;;  %8040 = vmatpush3.msra.mxu1 %v3556_v55  ;;  %v3480_v56 = vpop.permute.xlu0 %3479  ;;  %v7452_v55 = vld [vmem:[%s10308_s6 + $0x80] sm:$0xff] }
0x1664   : > { %8667 = vpow2.f32 %v3455_v54  ;;  %8035 = vmatpush3.msra.mxu0 %v3480_v56  ;;  %8049 = vmatprep.subr.mxu1 %v8938_v11  ;;  %v7453_v56 = vld [vmem:[%s10308_s6 + $0x88] sm:$0xff] }
0x1665   : > { %v8662_v57 = vpop.eup %8661  ;;  %8044 = vmatprep.subr.mxu0 %v8938_v11 }
0x1666   : > { %v3459_v58 = vsel %vm895_vm5, %v8662_v57, 0.0 }
0x1667   : > { %3460 = vadd.xlane.f32.xlu0 %v3459_v58  ;;  %v8599_v58 = vpack.i.bf16 %v7453_v56, %v7452_v55 }
0x1669   : > { %v8664_v59 = vpop.eup %8663 }
0x166a   : > { %v3462_v60 = vsel %vm895_vm5, %v8664_v59, 0.0 }
0x166b   : > { %3463 = vadd.xlane.f32.xlu1 %v3462_v60 }
0x166d   : > { %v8666_v61 = vpop.eup %8665 }
0x166e   : > { %v8668_v62 = vpop.eup %8667  ;;  %v3468_v18 = vsel %vm895_vm5, %v8666_v61, 0.0 }
0x166f   : > { %3469 = vadd.xlane.f32.xlu1 %v3468_v18  ;;  %v3465_v49 = vsel %vm895_vm5, %v8668_v62, 0.0 }
0x1670   : > { %3466 = vadd.xlane.f32.xlu0 %v3465_v49 }
0x1680   : > { %3631 = vrot.lane.b32.xlu1 %v9652_v4, %s10397_s20 }
0x1686   : > { %3707 = vrot.lane.b32.xlu0 %v9652_v4, %s10398_s15 }
0x16f4   : > { %v3461_v63 = vpop.xlane.xlu0 %3460 }
0x16f5   : > { %8669 = vrcp.f32 %v3461_v63 }
0x16f8   : > { %v3464_v0 = vpop.xlane.xlu1 %3463 }
0x16f9   : > { %8671 = vrcp.f32 %v3464_v0 }
0x16fc   : > { %v3470_v3 = vpop.xlane.xlu1 %3469 }
0x16fd   : > { %8673 = vrcp.f32 %v3470_v3  ;;  %v3467_v6 = vpop.xlane.xlu0 %3466 }
0x16fe   : > { %8675 = vrcp.f32 %v3467_v6 }
0x16ff   : > { %v8670_v7 = vpop.eup %8669 }
0x1700   : > { %v3475_v8 = vmul.f32 %v8670_v7, %v8662_v57  ;;  %v3632_v9 = vpop.permute.xlu1 %3631  ;;  %v7454_v57 = vld [vmem:[%s10308_s6 + $0x90] sm:$0xff] }
0x1701   : > { %v3708_v4 = vpop.permute.xlu0 %3707 }
0x1702   : > { %8037 = vmatmul.mubr.msk.f32.vlgmr.msra.gmra.mrb[24].mxu0 %vm895_vm5, %v3475_v8 }
0x1703   : > { %v8672_v10 = vpop.eup %8671  ;;  %8045 = vmatpush3.msra.mxu0 %v3632_v9  ;;  %8046 = vmatprep.mubr.msk.f32.mxu0 %vm8937_vm0, %v8938_v11  ;;  %v7457_v9 = vld [vmem:[%s10309_s7 + $0x4] ss:$0 sm:$0xff] }
0x1704   : > { %v3476_v12 = vmul.f32 %v8672_v10, %v8664_v59  ;;  %8405 = vmatprep.subr.bf16.mxu0 %v8936_v1  ;;  %v8412_v59 = vpack.c.bf16 %v7453_v56, %v7452_v55 }
0x1706   : > { %8042 = vmatmul.mubr.msk.f32.vlgmr.msra.gmra.mrb[38].mxu1 %vm895_vm5, %v3476_v12 }
0x1707   : > { %v8674_v14 = vpop.eup %8673  ;;  %8050 = vmatpush3.msra.mxu1 %v3708_v4  ;;  %8051 = vmatprep.mubr.msk.f32.mxu1 %vm8937_vm0, %v8938_v11 }
0x1708   : > { %v8676_v15 = vpop.eup %8675  ;;  %v3478_v16 = vmul.f32 %v8674_v14, %v8666_v61  ;;  %8411 = vmatprep.subr.bf16.mxu1 %v8936_v1 }
0x1709   : > { %v3477_v17 = vmul.f32 %v8676_v15, %v8668_v62  ;;  %v7417_v15 = vld [vmem:[%s10316_s14 + $0x4] ss:$0 sm:$0xff] }
0x170a   : > { %8052 = vmatmul.mubr.msk.f32.vlgmr.msra.gmra.mrb[40].mxu1 %vm895_vm5, %v3478_v16 }
0x170b   : > { %8047 = vmatmul.mubr.msk.f32.vlgmr.msra.gmra.mrb[26].mxu0 %vm895_vm5, %v3477_v17  ;;  %8073 = vmatprep.mubr.msk.f32.mxu1 %vm8937_vm0, %v8938_v11 }
0x170c   : > { %8062 = vmatprep.mubr.msk.f32.mxu0 %vm8937_vm0, %v8938_v11  ;;  %8407 = vmatpush3.bf16.msra.mxu0 %v8406_v23 }
0x170d   : > { %8408 = vmatprep.subr.bf16.mxu0 %v8936_v1  ;;  %8413 = vmatpush3.bf16.msra.mxu1 %v8412_v59 }
0x170e   : > { %8414 = vmatprep.subr.bf16.mxu1 %v8936_v1 }
0x1710   : > { %8410 = vmatpush3.bf16.msra.mxu0 %v8409_v26 }
0x1711   : > { %8417 = vmatprep.subr.bf16.mxu0 %v8936_v1 }
0x17d5   : > { %v3551_v27 = vpop.f32.mrb[24].mxu0 }
0x17d6   : > { %v8038_v28 = vpop.f32.mrb[25].mxu0 }
0x17d7   : > { %v7418_v28 = vld [vmem:[%s10316_s14 + $0x10] ss:$0 sm:$0xff] }
0x17d9   : > { %v3627_v29 = vpop.f32.mrb[38].mxu1 }
0x17da   : > { %3784 = vrot.lane.b32.xlu1 %v3627_v29, %s10399_s10  ;;  %v8043_v30 = vpop.f32.mrb[39].mxu1 }
0x17db   : > { %v7450_v30 = vld [vmem:[%s10316_s14 + $0x6] ss:$0 sm:$0xff] }
0x17dd   : > { %v3779_v31 = vpop.f32.mrb[40].mxu1 }
0x17de   : > { %3792 = vrot.lane.b32.xlu1 %v3779_v31, %s10400_s27  ;;  %v3703_v32 = vpop.f32.mrb[26].mxu0  ;;  %v8053_v34 = vpop.f32.mrb[41].mxu1 }
0x17df   : > { %3788 = vrot.lane.b32.xlu0 %v3703_v32, %s10401_s29  ;;  %v8048_v21 = vpop.f32.mrb[27].mxu0  ;;  %v7451_v34 = vld [vmem:[%s10316_s14 + $0x12] ss:$0 sm:$0xff] }
0x17fe   : > { %2973 = vadd.xlane.f32.xlu0 %v2972_v37 }
0x184c   : > { %v3785_v38 = vpop.permute.xlu1 %3784 }
0x184d   : > { %v3795_v39 = vsel %vm895_vm5, %v3551_v27, %v3785_v38 }
0x1850   : > { %v3793_v41 = vpop.permute.xlu1 %3792 }
0x1851   : > { %v3789_v40 = vpop.permute.xlu0 %3788 }
0x1852   : > { %v3796_v42 = vsel %vm614_vm1, %v3795_v39, %v3789_v40 }
0x1853   : > { %v3797_v43 = vsel %vm1580_vm6, %v3796_v42, %v3793_v41 }
0x1854   : > { %8063 = vmatmul.mubr.msk.f32.vlgmr.msra.gmra.mrb[28].mxu0 %vm779_vm3, %v3797_v43 }
0x1855   : > { %8084 = vmatprep.mubr.msk.f32.mxu0 %vm8937_vm0, %v8938_v11 }
0x188b   : > { %v2974_v5 = vpop.xlane.xlu0 %2973 }
0x188c   : > { %v2975_v44 = vmul.f32 0.03125, %v2974_v5 }
0x188e   : > { %v2976_v2 = vsub.f32 %v2967_v36, %v2975_v44 }
0x1890   : > { %v2977_v45 = vmul.f32 %v2976_v2, %v2976_v2  ;;  %v2988_v22 = vmul.f32 %v7417_v15, %v2976_v2 }
0x1892   : > { %v2978_v46 = vsel %vm779_vm3, %v2977_v45, 0.0 }
0x1893   : > { %2979 = vadd.xlane.f32.xlu0 %v2978_v46 }
0x1920   : > { %v2980_v10 = vpop.xlane.xlu0 %2979 }
0x1921   : > { %v2981_v12 = vmul.f32 0.03125, %v2980_v10 }
0x1923   : > { %v2989_v4 = vadd.f32 1e-06, %v2981_v12 }
0x1925   : > { %8677 = vrsqrt.f32 %v2989_v4 }
0x1927   : > { %v3880_v48 = vpop.f32.mrb[28].mxu0 }
0x1928   : > { %v3881_v50 = vadd.f32 %v7446_v47, %v3880_v48  ;;  %v8064_v51 = vpop.f32.mrb[29].mxu0 }
0x192a   : > { %v9761_v52 = vadd.f32 %v3881_v50, %v9565_v53  ;;  %v7455_v53 = vld [vmem:[%s10308_s6 + $0x98] sm:$0xff] }
0x192b   : > { %v8604_v60 = vpack.i.bf16 %v7455_v53, %v7454_v57  ;;  %v8415_v61 = vpack.c.bf16 %v7455_v53, %v7454_v57 }
0x192c   : > { %v3889_v54 = vsel %vm779_vm3, %v9761_v52, 0.0 }
0x192d   : > { %3890 = vadd.xlane.f32.xlu1 %v3889_v54  ;;  %8416 = vmatpush3.bf16.msra.mxu1 %v8415_v61 }
0x192e   : > { %8087 = vmatprep.subr.mxu1 %v8938_v11 }
0x192f   : > { %v8678_v17 = vpop.eup %8677 }
0x1930   : > { %v2991_v26 = vmul.f32 %v8678_v17, %v2988_v22 }
0x1932   : > { %v9794_v29 = vadd.f32 %v7418_v28, %v2991_v26 }
0x193e   : > { %8600 = vrot.lane.b32.xlu1 %v8599_v58, %s10403_s18 }
0x1942   : > { %4018 = vrot.lane.b32.xlu1 %v7457_v9, %s10403_s18 }
0x19ba   : > { %v3891_v62 = vpop.xlane.xlu1 %3890 }
0x19bb   : > { %v3892_v18 = vmul.f32 0.03125, %v3891_v62 }
0x19bd   : > { %v3893_v49 = vsub.f32 %v9761_v52, %v3892_v18 }
0x19be   : > { %v8601_v3 = vpop.permute.xlu1 %8600 }
0x19bf   : > { %v3894_v63 = vmul.f32 %v3893_v49, %v3893_v49  ;;  %v8603_v6 = vunpack.i.h.bf16 %v8601_v3  ;;  %v8602_v7 = vunpack.i.l.bf16 %v8601_v3  ;;  %v3905_v31 = vmul.f32 %v7450_v30, %v3893_v49 }
0x19c1   : > { %v3895_v0 = vsel %vm779_vm3, %v3894_v63, 0.0  ;;  %v8418_v8 = vpack.c.bf16 %v8603_v6, %v8602_v7 }
0x19c2   : > { %3896 = vadd.xlane.f32.xlu0 %v3895_v0  ;;  %v4019_v35 = vpop.permute.xlu1 %4018 }
0x19c3   : > { %8419 = vmatpush3.bf16.msra.mxu0 %v8418_v8 }
0x19c4   : > { %8420 = vmatprep.subr.bf16.mxu0 %v8936_v1 }
0x19d8   : > { %8605 = vrot.lane.b32.xlu0 %v8604_v60, %s10403_s18 }
0x1a4f   : > { %v3897_v14 = vpop.xlane.xlu0 %3896 }
0x1a50   : > { %v3898_v16 = vmul.f32 0.03125, %v3897_v14 }
0x1a52   : > { %v3906_v19 = vadd.f32 1e-06, %v3898_v16 }
0x1a53   : > { %v8606_v23 = vpop.permute.xlu0 %8605 }
0x1a54   : > { %8679 = vrsqrt.f32 %v3906_v19  ;;  %v8608_v24 = vunpack.i.h.bf16 %v8606_v23  ;;  %v8607_v25 = vunpack.i.l.bf16 %v8606_v23 }
0x1a56   : > { %v8421_v27 = vpack.c.bf16 %v8608_v24, %v8607_v25 }
0x1a58   : > { %8422 = vmatpush3.bf16.msra.mxu0 %v8421_v27 }
0x1a59   : > { %8097 = vmatprep.subr.mxu0 %v8938_v11 }
0x1a5b   : > { %8085 = vmatmul.mubr.msk.f32.vlgmr.msra.gmra.mrb[30].mxu0 %vm779_vm3, %v9794_v29 }
0x1a5c   : > { %8099 = vmatprep.mubr.msk.f32.mxu0 %vm8937_vm0, %v8938_v11 }
0x1a5e   : > { %v8680_v32 = vpop.eup %8679 }
0x1a5f   : > { %v3908_v21 = vmul.f32 %v8680_v32, %v3905_v31 }
0x1a61   : > { %v3915_v33 = vadd.f32 %v7451_v34, %v3908_v21 }
0x1a63   : > { %8074 = vmatmul.mubr.msk.f32.vlgmr.msra.gmra.mrb[42].mxu1 %vm779_vm3, %v3915_v33 }
0x1a64   : > { %8089 = vmatprep.mubr.msk.f32.mxu1 %vm8937_vm0, %v8938_v11 }
0x1b2e   : > { %v4090_v36 = vpop.f32.mrb[30].mxu0 }
0x1b2f   : > { %v9810_v37 = vadd.f32 %v4090_v36, %v4019_v35  ;;  %v8086_v38 = vpop.f32.mrb[31].mxu0 }
0x1b31   : > { %4328 = vrot.lane.b32.xlu0 %v9810_v37, %s10406_s26  ;;  %4172 = vrot.lane.b32.xlu1 %v9810_v37, %s10405_s17 }
0x1b32   : > { %8088 = vmatpush3.xpose.msk.msra.mxu1 %vm895_vm5, %v9810_v37 }
0x1b33   : > { %8092 = vmatprep.subr.mxu1 %v8938_v11 }
0x1b35   : > { %4250 = vrot.lane.b32.xlu1 %v9810_v37, %s10408_s25 }
0x1b36   : > { %v3998_v39 = vpop.f32.mrb[42].mxu1 }
0x1b37   : > { %v3999_v40 = vadd.f32 %v7457_v9, %v3998_v39  ;;  %v8075_v41 = vpop.f32.mrb[43].mxu1 }
0x1b39   : > { %4170 = vrot.lane.b32.xlu0 %v3999_v40, %s10405_s17  ;;  %4248 = vrot.lane.b32.xlu1 %v3999_v40, %s10408_s25 }
0x1b3a   : > { %8090 = vmatmul.mubr.msk.f32.vlgmr.msra.gmra.mrb[44].mxu1 %vm895_vm5, %v3999_v40 }
0x1b3b   : > { %8094 = vmatprep.mubr.msk.f32.mxu1 %vm8937_vm0, %v8938_v11 }
0x1b3d   : > { %4326 = vrot.lane.b32.xlu0 %v3999_v40, %s10406_s26 }
0x1ba3   : > { %v4173_v42 = vpop.permute.xlu1 %4172  ;;  %v4329_v43 = vpop.permute.xlu0 %4328 }
0x1ba4   : > { %8093 = vmatpush3.xpose.msk.msra.mxu1 %vm895_vm5, %v4173_v42 }
0x1ba5   : > { %8102 = vmatprep.subr.mxu1 %v8938_v11 }
0x1ba7   : > { %v4251_v5 = vpop.permute.xlu1 %4250 }
0x1ba8   : > { %8098 = vmatpush3.xpose.msk.msra.mxu0 %vm895_vm5, %v4251_v5 }
0x1ba9   : > { %8107 = vmatprep.subr.mxu0 %v8938_v11 }
0x1bab   : > { %v4171_v44 = vpop.permute.xlu0 %4170  ;;  %v4249_v2 = vpop.permute.xlu1 %4248 }
0x1bac   : > { %8095 = vmatmul.mubr.msk.f32.vlgmr.msra.gmra.mrb[46].mxu1 %vm895_vm5, %v4171_v44  ;;  %8100 = vmatmul.mubr.msk.f32.vlgmr.msra.gmra.mrb[32].mxu0 %vm895_vm5, %v4249_v2 }
0x1bad   : > { %8103 = vmatpush3.xpose.msk.msra.mxu1 %vm895_vm5, %v4329_v43  ;;  %8104 = vmatprep.mubr.msk.f32.mxu1 %vm8937_vm0, %v8938_v11 }
0x1bae   : > { %8112 = vmatprep.subr.mxu1 %v8938_v11  ;;  %8109 = vmatprep.mubr.msk.f32.mxu0 %vm8937_vm0, %v8938_v11 }
0x1baf   : > { %v4327_v45 = vpop.permute.xlu0 %4326 }
0x1bb0   : > { %8105 = vmatmul.mubr.msk.f32.vlgmr.msra.gmra.mrb[48].mxu1 %vm895_vm5, %v4327_v45 }
0x1bb1   : > { %8114 = vmatprep.mubr.msk.f32.mxu1 %vm8937_vm0, %v8938_v11 }
0x1c0d   : > { %v4166_v46 = vpop.f32.mrb[44].mxu1 }
0x1c0e   : > { %v4404_v47 = vmul.f32 0.35355338, %v4166_v46  ;;  %v8091_v48 = vpop.f32.mrb[45].mxu1  ;;  %v7472_v46 = vld [vmem:[%s10310_s8 + $0x80] sm:$0xff] }
0x1c10   : > { %v4408_v50 = vadd.f32 %v4404_v47, %v9233_v13  ;;  %v7473_v47 = vld [vmem:[%s10310_s8 + $0x88] sm:$0xff] }
0x1c11   : > { %v8424_v48 = vpack.c.bf16 %v7473_v47, %v7472_v46 }
0x1c12   : > { %v4412_v51 = vsel %vm895_vm5, %v4408_v50, -inf }
0x1c13   : > { %4413 = vmax.xlane.f32.xlu1 %v4412_v51  ;;  %v7475_v51 = vld [vmem:[%s10310_s8 + $0x98] sm:$0xff] }
0x1c7f   : > { %v4244_v54 = vpop.f32.mrb[46].mxu1  ;;  %v4322_v55 = vpop.f32.mrb[32].mxu0 }
0x1c80   : > { %v4405_v56 = vmul.f32 0.35355338, %v4244_v54  ;;  %v4406_v57 = vmul.f32 0.35355338, %v4322_v55  ;;  %v8096_v58 = vpop.f32.mrb[47].mxu1  ;;  %v8101_v59 = vpop.f32.mrb[33].mxu0 }
0x1c82   : > { %v4409_v53 = vadd.f32 %v4405_v56, %v9233_v13  ;;  %v4410_v49 = vadd.f32 %v4406_v57, %v9233_v13 }
0x1c83   : > { %v4400_v60 = vpop.f32.mrb[48].mxu1 }
0x1c84   : > { %v4407_v61 = vmul.f32 0.35355338, %v4400_v60  ;;  %v8106_v62 = vpop.f32.mrb[49].mxu1  ;;  %v4415_v18 = vsel %vm895_vm5, %v4409_v53, -inf  ;;  %v4418_v3 = vsel %vm895_vm5, %v4410_v49, -inf }
0x1c85   : > { %4416 = vmax.xlane.f32.xlu0 %v4415_v18 }
0x1c86   : > { %v4411_v63 = vadd.f32 %v4407_v61, %v9233_v13 }
0x1c88   : > { %v4421_v0 = vsel %vm895_vm5, %v4411_v63, -inf }
0x1c89   : > { %4422 = vmax.xlane.f32.xlu1 %v4421_v0  ;;  %4419 = vmax.xlane.f32.xlu0 %v4418_v3  ;;  %v7476_v0 = vld [vmem:[#allocation2 + $0x4] ss:$0 sm:$0xff] }
0x1c9a   : > { %4532 = vrot.lane.b32.xlu1 %v9810_v37, %s10402_s24 }
0x1c9f   : > { %4456 = vrot.lane.b32.xlu0 %v9810_v37, %s10403_s18 }
0x1ca0   : > { %v4414_v6 = vpop.xlane.xlu1 %4413 }
0x1ca1   : > { %v4424_v7 = vsub.f32 %v4408_v50, %v4414_v6  ;;  %v7474_v50 = vld [vmem:[%s10310_s8 + $0x90] sm:$0xff] }
0x1ca2   : > { %v8427_v54 = vpack.c.bf16 %v7475_v51, %v7474_v50 }
0x1ca3   : > { %v4428_v8 = vmul.f32 1.442695, %v4424_v7 }
0x1ca5   : > { %8681 = vpow2.f32 %v4428_v8 }
0x1caf   : > { %v8682_v9 = vpop.eup %8681 }
0x1cb0   : > { %v4436_v10 = vsel %vm895_vm5, %v8682_v9, 0.0 }
0x1cbe   : > { %4437 = vadd.xlane.f32.xlu0 %v4436_v10 }
0x1d12   : > { %v4417_v12 = vpop.xlane.xlu0 %4416 }
0x1d13   : > { %v4425_v4 = vsub.f32 %v4409_v53, %v4417_v12 }
0x1d15   : > { %v4430_v14 = vmul.f32 1.442695, %v4425_v4 }
0x1d16   : > { %v4423_v15 = vpop.xlane.xlu1 %4422  ;;  %v4420_v16 = vpop.xlane.xlu0 %4419 }
0x1d17   : > { %8683 = vpow2.f32 %v4430_v14  ;;  %v4427_v17 = vsub.f32 %v4411_v63, %v4423_v15  ;;  %v4426_v19 = vsub.f32 %v4410_v49, %v4420_v16  ;;  %v4894_v16 = vld [vmem:[#allocation5 + $0x40] sm:$0xff] }
0x1d19   : > { %v4434_v22 = vmul.f32 1.442695, %v4427_v17  ;;  %v4432_v23 = vmul.f32 1.442695, %v4426_v19  ;;  %v4895_v17 = vld [vmem:[#allocation5 + $0x48] sm:$0xff] }
0x1d1a   : > { %v4533_v24 = vpop.permute.xlu1 %4532  ;;  %v4457_v25 = vpop.permute.xlu0 %4456  ;;  %v8430_v19 = vpack.c.bf16 %v4895_v17, %v4894_v16 }
0x1d1b   : > { %8685 = vpow2.f32 %v4434_v22  ;;  %8108 = vmatpush3.msra.mxu0 %v4457_v25  ;;  %8113 = vmatpush3.msra.mxu1 %v4533_v24  ;;  %v4896_v22 = vld [vmem:[#allocation5 + $0x50] sm:$0xff]  ;;  %v7485_v25 = vld [vmem:[%s10314_s12 + $0x88] sm:$0xff] }
0x1d1c   : > { %8687 = vpow2.f32 %v4432_v23  ;;  %8117 = vmatprep.subr.mxu0 %v8938_v11  ;;  %8122 = vmatprep.subr.mxu1 %v8938_v11  ;;  %v4897_v23 = vld [vmem:[#allocation5 + $0x58] sm:$0xff] }
0x1d1d   : > { %v8433_v24 = vpack.c.bf16 %v4897_v23, %v4896_v22 }
0x1d21   : > { %v8684_v26 = vpop.eup %8683 }
0x1d22   : > { %v4439_v27 = vsel %vm895_vm5, %v8684_v26, 0.0 }
0x1d23   : > { %4440 = vadd.xlane.f32.xlu1 %v4439_v27 }
0x1d25   : > { %v8686_v28 = vpop.eup %8685 }
0x1d26   : > { %v8688_v30 = vpop.eup %8687  ;;  %v4445_v31 = vsel %vm895_vm5, %v8686_v28, 0.0 }
0x1d27   : > { %4446 = vadd.xlane.f32.xlu1 %v4445_v31  ;;  %v4442_v32 = vsel %vm895_vm5, %v8688_v30, 0.0  ;;  %v7488_v31 = vld [vmem:[%s10314_s12 + $0xa0] sm:$0xff] }
0x1d28   : > { %4443 = vadd.xlane.f32.xlu0 %v4442_v32  ;;  %v7489_v32 = vld [vmem:[%s10314_s12 + $0xa8] sm:$0xff] }
0x1d38   : > { %4608 = vrot.lane.b32.xlu1 %v9810_v37, %s10407_s21 }
0x1d3e   : > { %4684 = vrot.lane.b32.xlu0 %v9810_v37, %s10404_s0 }
0x1d4b   : > { %v4438_v34 = vpop.xlane.xlu0 %4437 }
0x1d4c   : > { %8689 = vrcp.f32 %v4438_v34  ;;  %v8442_v34 = vpack.c.bf16 %v7489_v32, %v7488_v31 }
0x1d56   : > { %v8690_v21 = vpop.eup %8689 }
0x1d57   : > { %v4452_v33 = vmul.f32 %v8690_v21, %v8682_v9 }
0x1d59   : > { %8110 = vmatmul.mubr.msk.f32.vlgmr.msra.gmra.mrb[34].mxu0 %vm895_vm5, %v4452_v33 }
0x1d5a   : > { %8119 = vmatprep.mubr.msk.f32.mxu0 %vm8937_vm0, %v8938_v11 }
0x1db0   : > { %v4441_v35 = vpop.xlane.xlu1 %4440 }
0x1db1   : > { %8691 = vrcp.f32 %v4441_v35 }
0x1db4   : > { %v4447_v36 = vpop.xlane.xlu1 %4446 }
0x1db5   : > { %8693 = vrcp.f32 %v4447_v36  ;;  %v4444_v38 = vpop.xlane.xlu0 %4443  ;;  %v7480_v36 = vld [vmem:[%s10316_s14 + $0x7] ss:$0 sm:$0xff] }
0x1db6   : > { %8695 = vrcp.f32 %v4444_v38 }
0x1db8   : > { %v4609_v39 = vpop.permute.xlu1 %4608 }
0x1db9   : > { %8118 = vmatpush3.msra.mxu0 %v4609_v39  ;;  %v4685_v41 = vpop.permute.xlu0 %4684 }
0x1dba   : > { %8423 = vmatprep.subr.bf16.mxu0 %v8936_v1 }
0x1dbb   : > { %v8692_v37 = vpop.eup %8691 }
0x1dbc   : > { %v4453_v40 = vmul.f32 %v8692_v37, %v8684_v26  ;;  %v7486_v26 = vld [vmem:[%s10314_s12 + $0x90] sm:$0xff] }
0x1dbd   : > { %v7481_v37 = vld [vmem:[%s10316_s14 + $0x13] ss:$0 sm:$0xff] }
0x1dbe   : > { %8115 = vmatmul.mubr.msk.f32.vlgmr.msra.gmra.mrb[50].mxu1 %vm895_vm5, %v4453_v40 }
0x1dbf   : > { %v8694_v42 = vpop.eup %8693  ;;  %8123 = vmatpush3.msra.mxu1 %v4685_v41  ;;  %8124 = vmatprep.mubr.msk.f32.mxu1 %vm8937_vm0, %v8938_v11 }
0x1dc0   : > { %v8696_v43 = vpop.eup %8695  ;;  %v4455_v5 = vmul.f32 %v8694_v42, %v8686_v28  ;;  %8429 = vmatprep.subr.bf16.mxu1 %v8936_v1  ;;  %v7487_v28 = vld [vmem:[%s10314_s12 + $0x98] sm:$0xff]  ;;  %v7490_v42 = vld [vmem:[%s10314_s12 + $0xb0] sm:$0xff] }
0x1dc1   : > { %v4454_v44 = vmul.f32 %v8696_v43, %v8688_v30  ;;  %v8439_v30 = vpack.c.bf16 %v7487_v28, %v7486_v26  ;;  %v7491_v43 = vld [vmem:[%s10314_s12 + $0xb8] sm:$0xff] }
0x1dc2   : > { %8125 = vmatmul.mubr.msk.f32.vlgmr.msra.gmra.mrb[52].mxu1 %vm895_vm5, %v4455_v5  ;;  %v8445_v5 = vpack.c.bf16 %v7491_v43, %v7490_v42 }
0x1dc3   : > { %8120 = vmatmul.mubr.msk.f32.vlgmr.msra.gmra.mrb[36].mxu0 %vm895_vm5, %v4454_v44  ;;  %8146 = vmatprep.mubr.msk.f32.mxu1 %vm8937_vm0, %v8938_v11  ;;  %v7482_v44 = vld [vmem:[#allocation7 + $0x2] ss:$0 sm:$0xff] }
0x1dc4   : > { %8135 = vmatprep.mubr.msk.f32.mxu0 %vm8937_vm0, %v8938_v11  ;;  %8425 = vmatpush3.bf16.msra.mxu0 %v8424_v48  ;;  %v7492_v48 = vld [vmem:[#allocation8 + $0x2] ss:$0 sm:$0xff] }
0x1dc5   : > { %8426 = vmatprep.subr.bf16.mxu0 %v8936_v1  ;;  %8431 = vmatpush3.bf16.msra.mxu1 %v8430_v19 }
0x1dc6   : > { %8432 = vmatprep.subr.bf16.mxu1 %v8936_v1 }
0x1dc8   : > { %8428 = vmatpush3.bf16.msra.mxu0 %v8427_v54 }
0x1dc9   : > { %8435 = vmatprep.subr.bf16.mxu0 %v8936_v1  ;;  %8434 = vmatpush3.bf16.msra.mxu1 %v8433_v24 }
0x1dca   : > { %8447 = vmatprep.subr.bf16.mxu1 %v8936_v1 }
0x1e2c   : > { %v4528_v2 = vpop.f32.mrb[34].mxu0 }
0x1e2d   : > { %v8111_v45 = vpop.f32.mrb[35].mxu0 }
0x1e91   : > { %v4604_v55 = vpop.f32.mrb[50].mxu1 }
0x1e92   : > { %4761 = vrot.lane.b32.xlu1 %v4604_v55, %s10399_s10  ;;  %v8116_v56 = vpop.f32.mrb[51].mxu1 }
0x1e95   : > { %v4756_v57 = vpop.f32.mrb[52].mxu1 }
0x1e96   : > { %v4680_v58 = vpop.f32.mrb[36].mxu0  ;;  %4769 = vrot.lane.b32.xlu1 %v4756_v57, %s10400_s27  ;;  %v8126_v59 = vpop.f32.mrb[53].mxu1 }
0x1e97   : > { %4765 = vrot.lane.b32.xlu0 %v4680_v58, %s10401_s29  ;;  %v8121_v53 = vpop.f32.mrb[37].mxu0 }
0x1f04   : > { %v4762_v60 = vpop.permute.xlu1 %4761 }
0x1f05   : > { %v4772_v62 = vsel %vm895_vm5, %v4528_v2, %v4762_v60 }
0x1f08   : > { %v4770_v61 = vpop.permute.xlu1 %4769 }
0x1f09   : > { %v4766_v18 = vpop.permute.xlu0 %4765 }
0x1f0a   : > { %v4773_v49 = vsel %vm614_vm1, %v4772_v62, %v4766_v18  ;;  %v7499_v62 = vld [vmem:[%s10308_s6 + $0x68] sm:$0xff] }
0x1f0b   : > { %v4774_v63 = vsel %vm1580_vm6, %v4773_v49, %v4770_v61  ;;  %v7498_v61 = vld [vmem:[%s10308_s6 + $0x60] sm:$0xff]  ;;  %v7500_v49 = vld [vmem:[%s10308_s6 + $0x70] sm:$0xff] }
0x1f0c   : > { %8136 = vmatmul.mubr.msk.f32.vlgmr.msra.gmra.mrb[38].mxu0 %vm779_vm3, %v4774_v63  ;;  %v8448_v18 = vpack.c.bf16 %v7499_v62, %v7498_v61  ;;  %v7501_v63 = vld [vmem:[%s10308_s6 + $0x78] sm:$0xff] }
0x1f0d   : > { %8165 = vmatprep.mubr.msk.f32.mxu0 %vm8937_vm0, %v8938_v11 }
0x1fdf   : > { %v4857_v3 = vpop.f32.mrb[38].mxu0 }
0x1fe0   : > { %v4858_v6 = vadd.f32 %v7476_v0, %v4857_v3  ;;  %v8137_v7 = vpop.f32.mrb[39].mxu0  ;;  %v8451_v0 = vpack.c.bf16 %v7501_v63, %v7500_v49 }
0x1fe2   : > { %v4861_v8 = vadd.f32 %v4858_v6, %v9761_v52  ;;  %v7484_v52 = vld [vmem:[%s10314_s12 + $0x80] sm:$0xff] }
0x1fe3   : > { %v8436_v27 = vpack.c.bf16 %v7485_v25, %v7484_v52 }
0x1fe4   : > { %v4866_v9 = vsel %vm779_vm3, %v4861_v8, 0.0 }
0x1fe5   : > { %4867 = vadd.xlane.f32.xlu0 %v4866_v9  ;;  %8437 = vmatpush3.bf16.msra.mxu0 %v8436_v27 }
0x1fe6   : > { %8438 = vmatprep.subr.bf16.mxu0 %v8936_v1 }
0x1fe9   : > { %8440 = vmatpush3.bf16.msra.mxu0 %v8439_v30 }
0x1fea   : > { %8441 = vmatprep.subr.bf16.mxu0 %v8936_v1 }
0x1fed   : > { %8443 = vmatpush3.bf16.msra.mxu0 %v8442_v34 }
0x1fee   : > { %8444 = vmatprep.subr.bf16.mxu0 %v8936_v1 }
0x1ff1   : > { %8446 = vmatpush3.bf16.msra.mxu0 %v8445_v5 }
0x1ff2   : > { %8189 = vmatprep.subr.mxu0 %v8938_v11 }
0x2072   : > { %v4868_v10 = vpop.xlane.xlu0 %4867 }
0x2073   : > { %v4869_v12 = vmul.f32 0.03125, %v4868_v10 }
0x2075   : > { %v4870_v4 = vsub.f32 %v4861_v8, %v4869_v12  ;;  %v7497_v12 = vld [vmem:[%s10316_s14 + $0x14] ss:$0 sm:$0xff] }
0x2077   : > { %v4871_v14 = vmul.f32 %v4870_v4, %v4870_v4  ;;  %v4882_v38 = vmul.f32 %v7480_v36, %v4870_v4 }
0x2079   : > { %v4872_v15 = vsel %vm779_vm3, %v4871_v14, 0.0 }
0x207a   : > { %4873 = vadd.xlane.f32.xlu1 %v4872_v15  ;;  %v7503_v15 = vld [vmem:[%s10309_s7 + $0x3] ss:$0 sm:$0xff] }
0x2107   : > { %v4874_v21 = vpop.xlane.xlu1 %4873 }
0x2108   : > { %v4875_v33 = vmul.f32 0.03125, %v4874_v21 }
0x210a   : > { %v4883_v35 = vadd.f32 1e-06, %v4875_v33 }
0x210c   : > { %8697 = vrsqrt.f32 %v4883_v35 }
0x2116   : > { %v8698_v39 = vpop.eup %8697 }
0x2117   : > { %v4885_v40 = vmul.f32 %v8698_v39, %v4882_v38 }
0x2119   : > { %v4892_v41 = vadd.f32 %v7481_v37, %v4885_v40 }
0x211b   : > { %8147 = vmatmul.mubr.msk.f32.vlgmr.msra.gmra.mrb[54].mxu1 %vm779_vm3, %v4892_v41 }
0x211c   : > { %8176 = vmatprep.mubr.msk.f32.mxu1 %vm8937_vm0, %v8938_v11  ;;  %8449 = vmatpush3.bf16.msra.mxu1 %v8448_v18 }
0x211d   : > { %8450 = vmatprep.subr.bf16.mxu1 %v8936_v1 }
0x2120   : > { %8452 = vmatpush3.bf16.msra.mxu1 %v8451_v0 }
0x2121   : > { %8179 = vmatprep.subr.mxu1 %v8938_v11 }
0x21ee   : > { %v4975_v2 = vpop.f32.mrb[54].mxu1 }
0x21ef   : > { %v4976_v45 = vadd.f32 %v7482_v44, %v4975_v2  ;;  %v8148_v46 = vpop.f32.mrb[55].mxu1 }
0x21f1   : > { %v4979_v47 = vmax.f32 %v4976_v45, 0.0 }
0x21f3   : > { %8166 = vmatmul.mubr.msk.f32.vlgmr.msra.gmra.mrb[40].mxu0 %vm1798_vm7, %v4979_v47 }
0x21f4   : > { %8191 = vmatprep.mubr.msk.f32.mxu0 %vm8937_vm0, %v8938_v11 }
0x22c6   : > { %v5066_v50 = vpop.f32.mrb[40].mxu0 }
0x22c7   : > { %v5067_v51 = vadd.f32 %v7492_v48, %v5066_v50  ;;  %v8167_v54 = vpop.f32.mrb[41].mxu0 }
0x22c9   : > { %v9946_v55 = vadd.f32 %v5067_v51, %v4861_v8  ;;  %v7496_v8 = vld [vmem:[%s10316_s14 + $0x8] ss:$0 sm:$0xff] }
0x22cb   : > { %v5075_v56 = vsel %vm779_vm3, %v9946_v55, 0.0 }
0x22cc   : > { %5076 = vadd.xlane.f32.xlu0 %v5075_v56 }
0x2359   : > { %v5077_v57 = vpop.xlane.xlu0 %5076 }
0x235a   : > { %v5078_v58 = vmul.f32 0.03125, %v5077_v57 }
0x235c   : > { %v5079_v59 = vsub.f32 %v9946_v55, %v5078_v58 }
0x235e   : > { %v5080_v53 = vmul.f32 %v5079_v59, %v5079_v59  ;;  %v5091_v9 = vmul.f32 %v7496_v8, %v5079_v59 }
0x2360   : > { %v5081_v60 = vsel %vm779_vm3, %v5080_v53, 0.0 }
0x2361   : > { %5082 = vadd.xlane.f32.xlu0 %v5081_v60 }
0x23ee   : > { %v5083_v3 = vpop.xlane.xlu0 %5082 }
0x23ef   : > { %v5084_v6 = vmul.f32 0.03125, %v5083_v3 }
0x23f1   : > { %v5092_v7 = vadd.f32 1e-06, %v5084_v6 }
0x23f3   : > { %8699 = vrsqrt.f32 %v5092_v7 }
0x23fd   : > { %v8700_v10 = vpop.eup %8699 }
0x23fe   : > { %v5094_v4 = vmul.f32 %v8700_v10, %v5091_v9 }
0x2400   : > { %v5101_v14 = vadd.f32 %v7497_v12, %v5094_v4 }
0x2402   : > { %8177 = vmatmul.mubr.msk.f32.vlgmr.msra.gmra.mrb[56].mxu1 %vm779_vm3, %v5101_v14 }
0x2403   : > { %8181 = vmatprep.mubr.msk.f32.mxu1 %vm8937_vm0, %v8938_v11 }
0x24d5   : > { %v5184_v16 = vpop.f32.mrb[56].mxu1 }
0x24d6   : > { %v9978_v17 = vadd.f32 %v7503_v15, %v5184_v16  ;;  %v8178_v19 = vpop.f32.mrb[57].mxu1 }
0x24d8   : > { %5267 = vrot.lane.b32.xlu0 %v9978_v17, %s10402_s24  ;;  %5189 = vrot.lane.b32.xlu1 %v9978_v17, %s10403_s18 }
0x24dc   : > { %5423 = vrot.lane.b32.xlu0 %v9978_v17, %s10404_s0  ;;  %5265 = vrot.lane.b32.xlu1 %v9978_v17, %s10405_s17 }
0x24e0   : > { %5421 = vrot.lane.b32.xlu0 %v9978_v17, %s10406_s26  ;;  %5345 = vrot.lane.b32.xlu1 %v9978_v17, %s10407_s21 }
0x24e4   : > { %5343 = vrot.lane.b32.xlu1 %v9978_v17, %s10408_s25 }
0x254a   : > { %v5268_v22 = vpop.permute.xlu0 %5267  ;;  %v5190_v23 = vpop.permute.xlu1 %5189 }
0x254b   : > { %8180 = vmatpush3.xpose.msk.msra.mxu1 %vm895_vm5, %v5190_v23 }
0x254c   : > { %8184 = vmatprep.subr.mxu1 %v8938_v11 }
0x254e   : > { %8182 = vmatmul.mubr.msk.f32.vlgmr.msra.gmra.mrb[58].mxu1 %vm895_vm5, %v9978_v17  ;;  %v5266_v24 = vpop.permute.xlu1 %5265  ;;  %v5424_v52 = vpop.permute.xlu0 %5423 }
0x254f   : > { %8185 = vmatpush3.xpose.msk.msra.mxu1 %vm895_vm5, %v5268_v22  ;;  %8186 = vmatprep.mubr.msk.f32.mxu1 %vm8937_vm0, %v8938_v11 }
0x2550   : > { %8194 = vmatprep.subr.mxu1 %v8938_v11 }
0x2552   : > { %8187 = vmatmul.mubr.msk.f32.vlgmr.msra.gmra.mrb[60].mxu1 %vm895_vm5, %v5266_v24  ;;  %v5346_v25 = vpop.permute.xlu1 %5345  ;;  %v5422_v26 = vpop.permute.xlu0 %5421 }
0x2553   : > { %8190 = vmatpush3.xpose.msk.msra.mxu0 %vm895_vm5, %v5346_v25  ;;  %8195 = vmatpush3.xpose.msk.msra.mxu1 %vm895_vm5, %v5424_v52  ;;  %v7517_v25 = vld [vmem:[%s10310_s8 + $0x60] sm:$0xff] }
0x2554   : > { %8196 = vmatprep.mubr.msk.f32.mxu1 %vm8937_vm0, %v8938_v11  ;;  %8204 = vmatprep.subr.mxu1 %v8938_v11 }
0x2555   : > { %8199 = vmatprep.subr.mxu0 %v8938_v11 }
0x2556   : > { %8197 = vmatmul.mubr.msk.f32.vlgmr.msra.gmra.mrb[62].mxu1 %vm895_vm5, %v5422_v26  ;;  %v5344_v27 = vpop.permute.xlu1 %5343  ;;  %v7518_v26 = vld [vmem:[%s10310_s8 + $0x68] sm:$0xff] }
0x2557   : > { %8192 = vmatmul.mubr.msk.f32.vlgmr.msra.gmra.mrb[42].mxu0 %vm895_vm5, %v5344_v27  ;;  %8206 = vmatprep.mubr.msk.f32.mxu1 %vm8937_vm0, %v8938_v11  ;;  %v8454_v27 = vpack.c.bf16 %v7518_v26, %v7517_v25 }
0x2558   : > { %8201 = vmatprep.mubr.msk.f32.mxu0 %vm8937_vm0, %v8938_v11 }
0x2621   : > { %v5261_v28 = vpop.f32.mrb[58].mxu1 }
0x2622   : > { %v5499_v30 = vmul.f32 0.35355338, %v5261_v28  ;;  %v8183_v31 = vpop.f32.mrb[59].mxu1  ;;  %v7519_v28 = vld [vmem:[%s10310_s8 + $0x70] sm:$0xff] }
0x2624   : > { %v5503_v32 = vadd.f32 %v5499_v30, %v9695_v20  ;;  %v7520_v30 = vld [vmem:[%s10310_s8 + $0x78] sm:$0xff] }
0x2625   : > { %v5339_v34 = vpop.f32.mrb[60].mxu1  ;;  %v8457_v31 = vpack.c.bf16 %v7520_v30, %v7519_v28 }
0x2626   : > { %v5500_v21 = vmul.f32 0.35355338, %v5339_v34  ;;  %v8188_v33 = vpop.f32.mrb[61].mxu1  ;;  %v5507_v35 = vsel %vm895_vm5, %v5503_v32, -inf }
0x2627   : > { %5508 = vmax.xlane.f32.xlu1 %v5507_v35 }
0x2628   : > { %v5504_v36 = vadd.f32 %v5500_v21, %v9695_v20 }
0x2629   : > { %v5495_v38 = vpop.f32.mrb[62].mxu1 }
0x262a   : > { %v5502_v39 = vmul.f32 0.35355338, %v5495_v38  ;;  %v5417_v37 = vpop.f32.mrb[42].mxu0  ;;  %v8198_v40 = vpop.f32.mrb[63].mxu1  ;;  %v5510_v41 = vsel %vm895_vm5, %v5504_v36, -inf }
0x262b   : > { %v5501_v42 = vmul.f32 0.35355338, %v5417_v37  ;;  %5511 = vmax.xlane.f32.xlu0 %v5510_v41  ;;  %v8193_v43 = vpop.f32.mrb[43].mxu0 }
0x262c   : > { %v5506_v5 = vadd.f32 %v5502_v39, %v9695_v20 }
0x262d   : > { %v5505_v44 = vadd.f32 %v5501_v42, %v9695_v20 }
0x262e   : > { %v5516_v2 = vsel %vm895_vm5, %v5506_v5, -inf }
0x262f   : > { %5517 = vmax.xlane.f32.xlu1 %v5516_v2  ;;  %v5513_v45 = vsel %vm895_vm5, %v5505_v44, -inf }
0x2630   : > { %5514 = vmax.xlane.f32.xlu0 %v5513_v45 }
0x2640   : > { %5627 = vrot.lane.b32.xlu1 %v9978_v17, %s10395_s30 }
0x2646   : > { %5551 = vrot.lane.b32.xlu0 %v9978_v17, %s10396_s16 }
0x26b4   : > { %v5509_v46 = vpop.xlane.xlu1 %5508 }
0x26b5   : > { %v5519_v47 = vsub.f32 %v5503_v32, %v5509_v46 }
0x26b7   : > { %v5523_v48 = vmul.f32 1.442695, %v5519_v47 }
0x26b8   : > { %v5512_v50 = vpop.xlane.xlu0 %5511 }
0x26b9   : > { %8701 = vpow2.f32 %v5523_v48  ;;  %v5520_v51 = vsub.f32 %v5504_v36, %v5512_v50  ;;  %v7527_v50 = vld [vmem:[%s10308_s6 + $0xa0] sm:$0xff] }
0x26bb   : > { %v5525_v54 = vmul.f32 1.442695, %v5520_v51  ;;  %v7528_v51 = vld [vmem:[%s10308_s6 + $0xa8] sm:$0xff] }
0x26bc   : > { %v5518_v20 = vpop.xlane.xlu1 %5517 }
0x26bd   : > { %8703 = vpow2.f32 %v5525_v54  ;;  %v5522_v56 = vsub.f32 %v5506_v5, %v5518_v20  ;;  %v5515_v57 = vpop.xlane.xlu0 %5514  ;;  %v8609_v54 = vpack.i.bf16 %v7528_v51, %v7527_v50 }
0x26be   : > { %v5521_v58 = vsub.f32 %v5505_v44, %v5515_v57  ;;  %v7521_v44 = vld [vmem:[#allocation2 + $0x3] ss:$0 sm:$0xff] }
0x26bf   : > { %v5529_v59 = vmul.f32 1.442695, %v5522_v56 }
0x26c0   : > { %v5527_v53 = vmul.f32 1.442695, %v5521_v58  ;;  %v5628_v60 = vpop.permute.xlu1 %5627 }
0x26c1   : > { %8705 = vpow2.f32 %v5529_v59  ;;  %8205 = vmatpush3.msra.mxu1 %v5628_v60  ;;  %v5552_v61 = vpop.permute.xlu0 %5551  ;;  %v7529_v59 = vld [vmem:[%s10308_s6 + $0xb0] sm:$0xff] }
0x26c2   : > { %8707 = vpow2.f32 %v5527_v53  ;;  %8200 = vmatpush3.msra.mxu0 %v5552_v61  ;;  %8214 = vmatprep.subr.mxu1 %v8938_v11  ;;  %v7530_v53 = vld [vmem:[%s10308_s6 + $0xb8] sm:$0xff] }
0x26c3   : > { %v8702_v62 = vpop.eup %8701  ;;  %8209 = vmatprep.subr.mxu0 %v8938_v11  ;;  %v8614_v60 = vpack.i.bf16 %v7530_v53, %v7529_v59 }
0x26c4   : > { %v5531_v18 = vsel %vm895_vm5, %v8702_v62, 0.0 }
0x26c5   : > { %5532 = vadd.xlane.f32.xlu0 %v5531_v18 }
0x26c7   : > { %v8704_v49 = vpop.eup %8703 }
0x26c8   : > { %v5534_v63 = vsel %vm895_vm5, %v8704_v49, 0.0 }
0x26c9   : > { %5535 = vadd.xlane.f32.xlu1 %v5534_v63  ;;  %v8460_v63 = vpack.c.bf16 %v7528_v51, %v7527_v50 }
0x26cb   : > { %v8706_v0 = vpop.eup %8705 }
0x26cc   : > { %v8708_v3 = vpop.eup %8707  ;;  %v5540_v6 = vsel %vm895_vm5, %v8706_v0, 0.0 }
0x26cd   : > { %5541 = vadd.xlane.f32.xlu1 %v5540_v6  ;;  %v5537_v7 = vsel %vm895_vm5, %v8708_v3, 0.0 }
0x26ce   : > { %5538 = vadd.xlane.f32.xlu0 %v5537_v7 }
0x26de   : > { %5703 = vrot.lane.b32.xlu1 %v9978_v17, %s10397_s20 }
0x26e4   : > { %5779 = vrot.lane.b32.xlu0 %v9978_v17, %s10398_s15 }
0x2752   : > { %v5533_v8 = vpop.xlane.xlu0 %5532 }
0x2753   : > { %8709 = vrcp.f32 %v5533_v8 }
0x2756   : > { %v5536_v9 = vpop.xlane.xlu1 %5535 }
0x2757   : > { %8711 = vrcp.f32 %v5536_v9 }
0x275a   : > { %v5542_v10 = vpop.xlane.xlu1 %5541 }
0x275b   : > { %8713 = vrcp.f32 %v5542_v10  ;;  %v5539_v12 = vpop.xlane.xlu0 %5538 }
0x275c   : > { %8715 = vrcp.f32 %v5539_v12 }
0x275d   : > { %v8710_v4 = vpop.eup %8709 }
0x275e   : > { %v5547_v14 = vmul.f32 %v8710_v4, %v8702_v62  ;;  %v5704_v15 = vpop.permute.xlu1 %5703 }
0x275f   : > { %v5780_v17 = vpop.permute.xlu0 %5779 }
0x2760   : > { %8202 = vmatmul.mubr.msk.f32.vlgmr.msra.gmra.mrb[44].mxu0 %vm895_vm5, %v5547_v14  ;;  %v7525_v14 = vld [vmem:[%s10316_s14 + $0x9] ss:$0 sm:$0xff] }
0x2761   : > { %v8712_v16 = vpop.eup %8711  ;;  %8210 = vmatpush3.msra.mxu0 %v5704_v15  ;;  %8211 = vmatprep.mubr.msk.f32.mxu0 %vm8937_vm0, %v8938_v11 }
0x2762   : > { %v5548_v19 = vmul.f32 %v8712_v16, %v8704_v49  ;;  %8453 = vmatprep.subr.bf16.mxu0 %v8936_v1 }
0x2764   : > { %8207 = vmatmul.mubr.msk.f32.vlgmr.msra.gmra.mrb[64].mxu1 %vm895_vm5, %v5548_v19  ;;  %v7526_v19 = vld [vmem:[%s10316_s14 + $0x15] ss:$0 sm:$0xff] }
0x2765   : > { %v8714_v22 = vpop.eup %8713  ;;  %8215 = vmatpush3.msra.mxu1 %v5780_v17  ;;  %8216 = vmatprep.mubr.msk.f32.mxu1 %vm8937_vm0, %v8938_v11 }
0x2766   : > { %v8716_v23 = vpop.eup %8715  ;;  %v5550_v24 = vmul.f32 %v8714_v22, %v8706_v0  ;;  %8459 = vmatprep.subr.bf16.mxu1 %v8936_v1  ;;  %v8463_v0 = vpack.c.bf16 %v7530_v53, %v7529_v59 }
0x2767   : > { %v5549_v52 = vmul.f32 %v8716_v23, %v8708_v3  ;;  %v7532_v3 = vld [vmem:[%s10309_s7 + $0x5] ss:$0 sm:$0xff] }
0x2768   : > { %8217 = vmatmul.mubr.msk.f32.vlgmr.msra.gmra.mrb[66].mxu1 %vm895_vm5, %v5550_v24 }
0x2769   : > { %8212 = vmatmul.mubr.msk.f32.vlgmr.msra.gmra.mrb[46].mxu0 %vm895_vm5, %v5549_v52  ;;  %8238 = vmatprep.mubr.msk.f32.mxu1 %vm8937_vm0, %v8938_v11 }
0x276a   : > { %8227 = vmatprep.mubr.msk.f32.mxu0 %vm8937_vm0, %v8938_v11  ;;  %8455 = vmatpush3.bf16.msra.mxu0 %v8454_v27 }
0x276b   : > { %8456 = vmatprep.subr.bf16.mxu0 %v8936_v1  ;;  %8461 = vmatpush3.bf16.msra.mxu1 %v8460_v63 }
0x276c   : > { %8462 = vmatprep.subr.bf16.mxu1 %v8936_v1 }
0x276e   : > { %8458 = vmatpush3.bf16.msra.mxu0 %v8457_v31 }
0x276f   : > { %8465 = vmatprep.subr.bf16.mxu0 %v8936_v1  ;;  %8464 = vmatpush3.bf16.msra.mxu1 %v8463_v0 }
0x2770   : > { %8252 = vmatprep.subr.mxu1 %v8938_v11 }
0x2833   : > { %v5623_v32 = vpop.f32.mrb[44].mxu0 }
0x2834   : > { %v8203_v34 = vpop.f32.mrb[45].mxu0 }
0x2837   : > { %v5699_v21 = vpop.f32.mrb[64].mxu1 }
0x2838   : > { %5856 = vrot.lane.b32.xlu1 %v5699_v21, %s10399_s10  ;;  %v8208_v33 = vpop.f32.mrb[65].mxu1 }
0x283b   : > { %v5851_v35 = vpop.f32.mrb[66].mxu1 }
0x283c   : > { %5864 = vrot.lane.b32.xlu1 %v5851_v35, %s10400_s27  ;;  %v5775_v36 = vpop.f32.mrb[46].mxu0  ;;  %v8218_v38 = vpop.f32.mrb[67].mxu1 }
0x283d   : > { %5860 = vrot.lane.b32.xlu0 %v5775_v36, %s10401_s29  ;;  %v8213_v39 = vpop.f32.mrb[47].mxu0 }
0x28aa   : > { %v5857_v37 = vpop.permute.xlu1 %5856 }
0x28ab   : > { %v5867_v40 = vsel %vm895_vm5, %v5623_v32, %v5857_v37 }
0x28ae   : > { %v5865_v42 = vpop.permute.xlu1 %5864 }
0x28af   : > { %v5861_v41 = vpop.permute.xlu0 %5860 }
0x28b0   : > { %v5868_v43 = vsel %vm614_vm1, %v5867_v40, %v5861_v41 }
0x28b1   : > { %v5869_v5 = vsel %vm1580_vm6, %v5868_v43, %v5865_v42 }
0x28b2   : > { %8228 = vmatmul.mubr.msk.f32.vlgmr.msra.gmra.mrb[48].mxu0 %vm779_vm3, %v5869_v5 }
0x28b3   : > { %8249 = vmatprep.mubr.msk.f32.mxu0 %vm8937_vm0, %v8938_v11 }
0x2985   : > { %v5952_v2 = vpop.f32.mrb[48].mxu0 }
0x2986   : > { %v5953_v45 = vadd.f32 %v7521_v44, %v5952_v2  ;;  %v8229_v46 = vpop.f32.mrb[49].mxu0 }
0x2988   : > { %v10075_v47 = vadd.f32 %v5953_v45, %v9946_v55 }
0x298a   : > { %v5961_v48 = vsel %vm779_vm3, %v10075_v47, 0.0 }
0x298b   : > { %5962 = vadd.xlane.f32.xlu0 %v5961_v48 }
0x29a1   : > { %8610 = vrot.lane.b32.xlu0 %v8609_v54, %s10403_s18 }
0x29a5   : > { %6090 = vrot.lane.b32.xlu0 %v7532_v3, %s10403_s18 }
0x2a18   : > { %v5963_v20 = vpop.xlane.xlu0 %5962 }
0x2a19   : > { %v5964_v56 = vmul.f32 0.03125, %v5963_v20 }
0x2a1b   : > { %v5965_v55 = vsub.f32 %v10075_v47, %v5964_v56 }
0x2a1c   : > { %v8611_v61 = vpop.permute.xlu0 %8610 }
0x2a1d   : > { %v5966_v57 = vmul.f32 %v5965_v55, %v5965_v55  ;;  %v8613_v62 = vunpack.i.h.bf16 %v8611_v61  ;;  %v8612_v18 = vunpack.i.l.bf16 %v8611_v61  ;;  %v5977_v15 = vmul.f32 %v7525_v14, %v5965_v55 }
0x2a1f   : > { %v5967_v58 = vsel %vm779_vm3, %v5966_v57, 0.0  ;;  %v8466_v49 = vpack.c.bf16 %v8613_v62, %v8612_v18 }
0x2a20   : > { %5968 = vadd.xlane.f32.xlu1 %v5967_v58  ;;  %v6091_v23 = vpop.permute.xlu0 %6090 }
0x2a21   : > { %8467 = vmatpush3.bf16.msra.mxu0 %v8466_v49 }
0x2a22   : > { %8468 = vmatprep.subr.bf16.mxu0 %v8936_v1 }
0x2a31   : > { %8615 = vrot.lane.b32.xlu1 %v8614_v60, %s10403_s18 }
0x2aad   : > { %v5969_v6 = vpop.xlane.xlu1 %5968 }
0x2aae   : > { %v5970_v7 = vmul.f32 0.03125, %v5969_v6 }
0x2ab0   : > { %v5978_v8 = vadd.f32 1e-06, %v5970_v7 }
0x2ab1   : > { %v8616_v9 = vpop.permute.xlu1 %8615 }
0x2ab2   : > { %8717 = vrsqrt.f32 %v5978_v8  ;;  %v8618_v10 = vunpack.i.h.bf16 %v8616_v9  ;;  %v8617_v12 = vunpack.i.l.bf16 %v8616_v9 }
0x2ab4   : > { %v8469_v4 = vpack.c.bf16 %v8618_v10, %v8617_v12 }
0x2ab6   : > { %8470 = vmatpush3.bf16.msra.mxu0 %v8469_v4 }
0x2ab7   : > { %8262 = vmatprep.subr.mxu0 %v8938_v11 }
0x2ab9   : > { %8250 = vmatmul.mubr.msk.f32.vlgmr.msra.gmra.mrb[50].mxu0 %vm779_vm3, %v9794_v29 }
0x2aba   : > { %8264 = vmatprep.mubr.msk.f32.mxu0 %vm8937_vm0, %v8938_v11 }
0x2abc   : > { %v8718_v16 = vpop.eup %8717 }
0x2abd   : > { %v5980_v17 = vmul.f32 %v8718_v16, %v5977_v15 }
0x2abf   : > { %v5987_v22 = vadd.f32 %v7526_v19, %v5980_v17 }
0x2ac1   : > { %8239 = vmatmul.mubr.msk.f32.vlgmr.msra.gmra.mrb[68].mxu1 %vm779_vm3, %v5987_v22 }
0x2ac2   : > { %8254 = vmatprep.mubr.msk.f32.mxu1 %vm8937_vm0, %v8938_v11 }
0x2b8c   : > { %v6159_v24 = vpop.f32.mrb[50].mxu0 }
0x2b8d   : > { %v10116_v52 = vadd.f32 %v6159_v24, %v6091_v23  ;;  %v8251_v29 = vpop.f32.mrb[51].mxu0 }
0x2b8f   : > { %6397 = vrot.lane.b32.xlu0 %v10116_v52, %s10406_s26  ;;  %6241 = vrot.lane.b32.xlu1 %v10116_v52, %s10405_s17 }
0x2b90   : > { %8253 = vmatpush3.xpose.msk.msra.mxu1 %vm895_vm5, %v10116_v52 }
0x2b91   : > { %8257 = vmatprep.subr.mxu1 %v8938_v11 }
0x2b93   : > { %6319 = vrot.lane.b32.xlu1 %v10116_v52, %s10408_s25 }
0x2b94   : > { %v6070_v25 = vpop.f32.mrb[68].mxu1 }
0x2b95   : > { %v6071_v26 = vadd.f32 %v7532_v3, %v6070_v25  ;;  %v8240_v27 = vpop.f32.mrb[69].mxu1 }
0x2b97   : > { %6239 = vrot.lane.b32.xlu0 %v6071_v26, %s10405_s17  ;;  %6317 = vrot.lane.b32.xlu1 %v6071_v26, %s10408_s25 }
0x2b98   : > { %8255 = vmatmul.mubr.msk.f32.vlgmr.msra.gmra.mrb[70].mxu1 %vm895_vm5, %v6071_v26 }
0x2b99   : > { %8259 = vmatprep.mubr.msk.f32.mxu1 %vm8937_vm0, %v8938_v11 }
0x2b9b   : > { %6395 = vrot.lane.b32.xlu0 %v6071_v26, %s10406_s26 }
0x2c01   : > { %v6242_v28 = vpop.permute.xlu1 %6241  ;;  %v6398_v30 = vpop.permute.xlu0 %6397 }
0x2c02   : > { %8258 = vmatpush3.xpose.msk.msra.mxu1 %vm895_vm5, %v6242_v28 }
0x2c03   : > { %8267 = vmatprep.subr.mxu1 %v8938_v11 }
0x2c05   : > { %v6320_v31 = vpop.permute.xlu1 %6319 }
0x2c06   : > { %8263 = vmatpush3.xpose.msk.msra.mxu0 %vm895_vm5, %v6320_v31 }
0x2c07   : > { %8272 = vmatprep.subr.mxu0 %v8938_v11 }
0x2c09   : > { %v6240_v32 = vpop.permute.xlu0 %6239  ;;  %v6318_v34 = vpop.permute.xlu1 %6317 }
0x2c0a   : > { %8260 = vmatmul.mubr.msk.f32.vlgmr.msra.gmra.mrb[72].mxu1 %vm895_vm5, %v6240_v32  ;;  %8265 = vmatmul.mubr.msk.f32.vlgmr.msra.gmra.mrb[52].mxu0 %vm895_vm5, %v6318_v34  ;;  %v7547_v32 = vld [vmem:[%s10310_s8 + $0xa0] sm:$0xff]  ;;  %v7548_v34 = vld [vmem:[%s10310_s8 + $0xa8] sm:$0xff] }
0x2c0b   : > { %8268 = vmatpush3.xpose.msk.msra.mxu1 %vm895_vm5, %v6398_v30  ;;  %8269 = vmatprep.mubr.msk.f32.mxu1 %vm8937_vm0, %v8938_v11 }
0x2c0c   : > { %8277 = vmatprep.subr.mxu1 %v8938_v11  ;;  %8274 = vmatprep.mubr.msk.f32.mxu0 %vm8937_vm0, %v8938_v11 }
0x2c0d   : > { %v6396_v21 = vpop.permute.xlu0 %6395 }
0x2c0e   : > { %8270 = vmatmul.mubr.msk.f32.vlgmr.msra.gmra.mrb[74].mxu1 %vm895_vm5, %v6396_v21  ;;  %v8472_v21 = vpack.c.bf16 %v7548_v34, %v7547_v32 }
0x2c0f   : > { %8279 = vmatprep.mubr.msk.f32.mxu1 %vm8937_vm0, %v8938_v11 }
0x2c6b   : > { %v6235_v33 = vpop.f32.mrb[70].mxu1 }
0x2c6c   : > { %v6473_v35 = vmul.f32 0.35355338, %v6235_v33  ;;  %v8256_v36 = vpop.f32.mrb[71].mxu1  ;;  %v7549_v33 = vld [vmem:[%s10310_s8 + $0xb0] sm:$0xff] }
0x2c6e   : > { %v6477_v38 = vadd.f32 %v6473_v35, %v9233_v13  ;;  %v7550_v35 = vld [vmem:[%s10310_s8 + $0xb8] sm:$0xff] }
0x2c6f   : > { %v8475_v36 = vpack.c.bf16 %v7550_v35, %v7549_v33 }
0x2c70   : > { %v6481_v39 = vsel %vm895_vm5, %v6477_v38, -inf }
0x2c71   : > { %6482 = vmax.xlane.f32.xlu1 %v6481_v39 }
0x2cdd   : > { %v6313_v37 = vpop.f32.mrb[72].mxu1  ;;  %v6391_v40 = vpop.f32.mrb[52].mxu0 }
0x2cde   : > { %v6474_v41 = vmul.f32 0.35355338, %v6313_v37  ;;  %v6475_v42 = vmul.f32 0.35355338, %v6391_v40  ;;  %v8261_v43 = vpop.f32.mrb[73].mxu1  ;;  %v8266_v5 = vpop.f32.mrb[53].mxu0 }
0x2ce0   : > { %v6478_v44 = vadd.f32 %v6474_v41, %v9233_v13  ;;  %v6479_v45 = vadd.f32 %v6475_v42, %v9233_v13 }
0x2ce1   : > { %v6469_v2 = vpop.f32.mrb[74].mxu1 }
0x2ce2   : > { %v6476_v46 = vmul.f32 0.35355338, %v6469_v2  ;;  %v8271_v48 = vpop.f32.mrb[75].mxu1  ;;  %v6484_v50 = vsel %vm895_vm5, %v6478_v44, -inf  ;;  %v6487_v20 = vsel %vm895_vm5, %v6479_v45, -inf }
0x2ce3   : > { %6485 = vmax.xlane.f32.xlu0 %v6484_v50  ;;  %v7551_v48 = vld [vmem:[#allocation2 + $0x5] ss:$0 sm:$0xff] }
0x2ce4   : > { %v6480_v51 = vadd.f32 %v6476_v46, %v9233_v13 }
0x2ce6   : > { %v6490_v54 = vsel %vm895_vm5, %v6480_v51, -inf }
0x2ce7   : > { %6491 = vmax.xlane.f32.xlu1 %v6490_v54  ;;  %6488 = vmax.xlane.f32.xlu0 %v6487_v20 }
0x2cf8   : > { %6601 = vrot.lane.b32.xlu1 %v10116_v52, %s10402_s24  ;;  %s8857_s24 = scalar_lea.vmem %s8856_s23, 256 }
0x2cfd   : > { %6525 = vrot.lane.b32.xlu0 %v10116_v52, %s10403_s18 }
0x2cfe   : > { %v6483_v56 = vpop.xlane.xlu1 %6482 }
0x2cff   : > { %v6493_v55 = vsub.f32 %v6477_v38, %v6483_v56 }
0x2d01   : > { %v6497_v57 = vmul.f32 1.442695, %v6493_v55 }
0x2d03   : > { %8719 = vpow2.f32 %v6497_v57 }
0x2d0d   : > { %v8720_v58 = vpop.eup %8719 }
0x2d0e   : > { %v6505_v59 = vsel %vm895_vm5, %v8720_v58, 0.0 }
0x2d1c   : > { %6506 = vadd.xlane.f32.xlu0 %v6505_v59 }
0x2d70   : > { %v6486_v13 = vpop.xlane.xlu0 %6485 }
0x2d71   : > { %v6494_v53 = vsub.f32 %v6478_v44, %v6486_v13 }
0x2d73   : > { %v6499_v60 = vmul.f32 1.442695, %v6494_v53  ;;  %v6963_v53 = vld [vmem:[#allocation5 + $0x60] sm:$0xff] }
0x2d74   : > { %v6492_v61 = vpop.xlane.xlu1 %6491  ;;  %v6489_v62 = vpop.xlane.xlu0 %6488 }
0x2d75   : > { %8721 = vpow2.f32 %v6499_v60  ;;  %v6496_v18 = vsub.f32 %v6480_v51, %v6492_v61  ;;  %v6495_v49 = vsub.f32 %v6479_v45, %v6489_v62  ;;  %v6964_v60 = vld [vmem:[#allocation5 + $0x68] sm:$0xff]  ;;  %v6966_v62 = vld [vmem:[#allocation5 + $0x78] sm:$0xff] }
0x2d76   : > { %v8478_v61 = vpack.c.bf16 %v6964_v60, %v6963_v53 }
0x2d77   : > { %v6503_v63 = vmul.f32 1.442695, %v6496_v18  ;;  %v6501_v0 = vmul.f32 1.442695, %v6495_v49  ;;  %v7560_v49 = vld [vmem:[%s10314_s12 + $0xc8] sm:$0xff] }
0x2d78   : > { %v6602_v3 = vpop.permute.xlu1 %6601  ;;  %v6526_v6 = vpop.permute.xlu0 %6525 }
0x2d79   : > { %8723 = vpow2.f32 %v6503_v63  ;;  %8273 = vmatpush3.msra.mxu0 %v6526_v6  ;;  %8278 = vmatpush3.msra.mxu1 %v6602_v3  ;;  %v7561_v63 = vld [vmem:[%s10314_s12 + $0xd0] sm:$0xff]  ;;  %v7562_v3 = vld [vmem:[%s10314_s12 + $0xd8] sm:$0xff] }
0x2d7a   : > { %8725 = vpow2.f32 %v6501_v0  ;;  %8282 = vmatprep.subr.mxu0 %v8938_v11  ;;  %8287 = vmatprep.subr.mxu1 %v8938_v11  ;;  %v8487_v6 = vpack.c.bf16 %v7562_v3, %v7561_v63 }
0x2d7f   : > { %v8722_v7 = vpop.eup %8721 }
0x2d80   : > { %v6508_v8 = vsel %vm895_vm5, %v8722_v7, 0.0 }
0x2d81   : > { %6509 = vadd.xlane.f32.xlu1 %v6508_v8  ;;  %v7564_v8 = vld [vmem:[%s10314_s12 + $0xe8] sm:$0xff] }
0x2d83   : > { %v8724_v9 = vpop.eup %8723 }
0x2d84   : > { %v8726_v10 = vpop.eup %8725  ;;  %v6514_v12 = vsel %vm895_vm5, %v8724_v9, 0.0 }
0x2d85   : > { %6515 = vadd.xlane.f32.xlu1 %v6514_v12  ;;  %v6511_v4 = vsel %vm895_vm5, %v8726_v10, 0.0 }
0x2d86   : > { %6512 = vadd.xlane.f32.xlu0 %v6511_v4 }
0x2d96   : > { %6677 = vrot.lane.b32.xlu1 %v10116_v52, %s10407_s21  ;;  %s10410_s21 = sld [smem:[#allocation16_spill]] }
0x2d9c   : > { %6753 = vrot.lane.b32.xlu0 %v10116_v52, %s10404_s0  ;;  %s579_s25 = sand.u32 1, %s10410_s21  }
0x2d9d   : > { %s7331_s28 = sshll.u32 %s579_s25, 3  ;;  %s7173_s5 = scalar_lea.sflag [#allocation4], %s579_s25 }
0x2d9e   : > { %s581_s30 = scalar_lea.vmem [#allocation10], %s7331_s28 }
0x2d9f   : > { %s7186_s16 = sshll.u32 %s581_s30, 4  ;;  %s10261_s16 = int_to_ptr.vmem [resolvable:$true] %s7186_s16 }
0x2da0   : > { %s8851_s1 = scalar_lea.vmem %s10261_s16, 128  ;;  %p8858_p8 = scmp.lt.s32.totalorder %s10261_s16, %s8856_s23 }
0x2da1   : > { %p8852_p2 = scmp.ne.s32.totalorder %s10261_s16, %s8851_s1  ;;  %p8859_p11 = scmp.lt.s32.totalorder %s8857_s24, %s8851_s1 }
0x2da3   : > { %p8860_p13 = por %p8859_p11, %p8858_p8 }
0x2da9   : > { %v6507_v14 = vpop.xlane.xlu0 %6506 }
0x2daa   : > { %8727 = vrcp.f32 %v6507_v14  ;;  %v7555_v14 = vld [vmem:[%s10316_s14 + $0xa] ss:$0 sm:$0xff] }
0x2db4   : > { %v8728_v15 = vpop.eup %8727 }
0x2db5   : > { %v6521_v16 = vmul.f32 %v8728_v15, %v8720_v58 }
0x2db7   : > { %8275 = vmatmul.mubr.msk.f32.vlgmr.msra.gmra.mrb[54].mxu0 %vm895_vm5, %v6521_v16 }
0x2db8   : > { %8284 = vmatprep.mubr.msk.f32.mxu0 %vm8937_vm0, %v8938_v11 }
0x2e0e   : > { %v6510_v19 = vpop.xlane.xlu1 %6509 }
0x2e0f   : > { %8729 = vrcp.f32 %v6510_v19  ;;  %v7556_v19 = vld [vmem:[%s10316_s14 + $0x16] ss:$0 sm:$0xff] }
0x2e12   : > { %v6516_v17 = vpop.xlane.xlu1 %6515 }
0x2e13   : > { %8731 = vrcp.f32 %v6516_v17  ;;  %v6513_v22 = vpop.xlane.xlu0 %6512 }
0x2e14   : > { %8733 = vrcp.f32 %v6513_v22 }
0x2e16   : > { %v6678_v23 = vpop.permute.xlu1 %6677 }
0x2e17   : > { %8283 = vmatpush3.msra.mxu0 %v6678_v23  ;;  %v6754_v29 = vpop.permute.xlu0 %6753  ;;  %v7566_v23 = vld [vmem:[%s10314_s12 + $0xf8] sm:$0xff] }
0x2e18   : > { %8471 = vmatprep.subr.bf16.mxu0 %v8936_v1 }
0x2e19   : > { %v8730_v24 = vpop.eup %8729 }
0x2e1a   : > { %v6522_v52 = vmul.f32 %v8730_v24, %v8722_v7  ;;  %v7563_v7 = vld [vmem:[%s10314_s12 + $0xe0] sm:$0xff] }
0x2e1c   : > { %8280 = vmatmul.mubr.msk.f32.vlgmr.msra.gmra.mrb[76].mxu1 %vm895_vm5, %v6522_v52  ;;  %v7557_v52 = vld [vmem:[#allocation7 + $0x3] ss:$0 sm:$0xff] }
0x2e1d   : > { %v8732_v25 = vpop.eup %8731  ;;  %8288 = vmatpush3.msra.mxu1 %v6754_v29  ;;  %8289 = vmatprep.mubr.msk.f32.mxu1 %vm8937_vm0, %v8938_v11 }
0x2e1e   : > { %v8734_v26 = vpop.eup %8733  ;;  %v6524_v27 = vmul.f32 %v8732_v25, %v8724_v9  ;;  %8477 = vmatprep.subr.bf16.mxu1 %v8936_v1  ;;  %v8490_v9 = vpack.c.bf16 %v7564_v8, %v7563_v7 }
0x2e1f   : > { %v6523_v28 = vmul.f32 %v8734_v26, %v8726_v10 }
0x2e20   : > { %8290 = vmatmul.mubr.msk.f32.vlgmr.msra.gmra.mrb[78].mxu1 %vm895_vm5, %v6524_v27 }
0x2e21   : > { %8285 = vmatmul.mubr.msk.f32.vlgmr.msra.gmra.mrb[56].mxu0 %vm895_vm5, %v6523_v28  ;;  %8311 = vmatprep.mubr.msk.f32.mxu1 %vm8937_vm0, %v8938_v11  ;;  %v7567_v28 = vld [vmem:[#allocation8 + $0x3] ss:$0 sm:$0xff] }
0x2e22   : > { %8300 = vmatprep.mubr.msk.f32.mxu0 %vm8937_vm0, %v8938_v11  ;;  %8473 = vmatpush3.bf16.msra.mxu0 %v8472_v21 }
0x2e23   : > { %8474 = vmatprep.subr.bf16.mxu0 %v8936_v1  ;;  %8479 = vmatpush3.bf16.msra.mxu1 %v8478_v61 }
0x2e24   : > { %8480 = vmatprep.subr.bf16.mxu1 %v8936_v1 }
0x2e26   : > { %8476 = vmatpush3.bf16.msra.mxu0 %v8475_v36 }
0x2e27   : > { %8483 = vmatprep.subr.bf16.mxu0 %v8936_v1 }
0x2e8a   : > { %v6597_v30 = vpop.f32.mrb[54].mxu0 }
0x2e8b   : > { %v8276_v31 = vpop.f32.mrb[55].mxu0 }
0x2eef   : > { %v6673_v38 = vpop.f32.mrb[76].mxu1 }
0x2ef0   : > { %6830 = vrot.lane.b32.xlu1 %v6673_v38, %s10399_s10  ;;  %v8281_v39 = vpop.f32.mrb[77].mxu1 }
0x2ef3   : > { %v6825_v37 = vpop.f32.mrb[78].mxu1 }
0x2ef4   : > { %v6749_v40 = vpop.f32.mrb[56].mxu0  ;;  %6838 = vrot.lane.b32.xlu1 %v6825_v37, %s10400_s27  ;;  %v8291_v41 = vpop.f32.mrb[79].mxu1 }
0x2ef5   : > { %6834 = vrot.lane.b32.xlu0 %v6749_v40, %s10401_s29  ;;  %v8286_v42 = vpop.f32.mrb[57].mxu0  ;;  %s10411_s29 = sld [smem:[#allocation21_spill]] }
0x2ef6   : > { %v7571_v42 = vld [vmem:[%s10316_s14 + $0xb] ss:$0 sm:$0xff] }
0x2efb   : > { %p10413_p3 = scmp.ne.s32.totalorder %s10411_s29, 0 }
0x2efd   : > { %p8853_p4 = pnand %p8852_p2, %p10413_p3 }
0x2eff   : > { %p8854_p7 = pneg %p8853_p4 }
0x2f01   : > { %p8861_p0 = pnand %p8860_p13, %p8854_p7 }
0x2f62   : > { %v6831_v43 = vpop.permute.xlu1 %6830 }
0x2f63   : > { %v6841_v44 = vsel %vm895_vm5, %v6597_v30, %v6831_v43 }
0x2f66   : > { %v6839_v5 = vpop.permute.xlu1 %6838 }
0x2f67   : > { %v6835_v2 = vpop.permute.xlu0 %6834 }
0x2f68   : > { %v6842_v45 = vsel %vm614_vm1, %v6841_v44, %v6835_v2  ;;  %v7572_v44 = vld [vmem:[%s10316_s14 + $0x17] ss:$0 sm:$0xff] }
0x2f69   : > { %v6843_v46 = vsel %vm1580_vm6, %v6842_v45, %v6839_v5 }
0x2f6a   : > { %8301 = vmatmul.mubr.msk.f32.vlgmr.msra.gmra.mrb[58].mxu0 %vm779_vm3, %v6843_v46 }
0x2f6b   : > { %8330 = vmatprep.mubr.msk.f32.mxu0 %vm8937_vm0, %v8938_v11  ;;  %v6965_v11 = vld [vmem:[#allocation5 + $0x70] sm:$0xff] }
0x2f6c   : > { %v8481_v18 = vpack.c.bf16 %v6966_v62, %v6965_v11 }
0x2f6e   : > { %8482 = vmatpush3.bf16.msra.mxu1 %v8481_v18 }
0x303d   : > { %v6926_v50 = vpop.f32.mrb[58].mxu0 }
0x303e   : > { %v6927_v51 = vadd.f32 %v7551_v48, %v6926_v50  ;;  %v8302_v54 = vpop.f32.mrb[59].mxu0 }
0x3040   : > { %v6930_v20 = vadd.f32 %v6927_v51, %v10075_v47  ;;  %v7559_v47 = vld [vmem:[%s10314_s12 + $0xc0] sm:$0xff] }
0x3041   : > { %v8484_v0 = vpack.c.bf16 %v7560_v49, %v7559_v47 }
0x3042   : > { %v6935_v56 = vsel %vm779_vm3, %v6930_v20, 0.0 }
0x3043   : > { %6936 = vadd.xlane.f32.xlu0 %v6935_v56  ;;  %8485 = vmatpush3.bf16.msra.mxu0 %v8484_v0 }
0x3044   : > { %8486 = vmatprep.subr.bf16.mxu0 %v8936_v1 }
0x3047   : > { %8488 = vmatpush3.bf16.msra.mxu0 %v8487_v6 }
0x3048   : > { %8489 = vmatprep.subr.bf16.mxu0 %v8936_v1 }
0x304b   : > { %8491 = vmatpush3.bf16.msra.mxu0 %v8490_v9 }
0x304c   : > { %8492 = vmatprep.subr.bf16.mxu0 %v8936_v1  ;;  %v7565_v1 = vld [vmem:[%s10314_s12 + $0xf0] sm:$0xff] }
0x304d   : > { %v8493_v24 = vpack.c.bf16 %v7566_v23, %v7565_v1 }
0x304f   : > { %8494 = vmatpush3.bf16.msra.mxu0 %v8493_v24 }
0x30d0   : > { %v6937_v55 = vpop.xlane.xlu0 %6936 }
0x30d1   : > { %v6938_v57 = vmul.f32 0.03125, %v6937_v55 }
0x30d3   : > { %v6939_v58 = vsub.f32 %v6930_v20, %v6938_v57 }
0x30d5   : > { %v6940_v59 = vmul.f32 %v6939_v58, %v6939_v58  ;;  %v6951_v15 = vmul.f32 %v7555_v14, %v6939_v58 }
0x30d7   : > { %v6941_v13 = vsel %vm779_vm3, %v6940_v59, 0.0 }
0x30d8   : > { %6942 = vadd.xlane.f32.xlu1 %v6941_v13 }
0x3165   : > { %v6943_v10 = vpop.xlane.xlu1 %6942 }
0x3166   : > { %v6944_v12 = vmul.f32 0.03125, %v6943_v10 }
0x3168   : > { %v6952_v4 = vadd.f32 1e-06, %v6944_v12 }
0x316a   : > { %8735 = vrsqrt.f32 %v6952_v4 }
0x3174   : > { %v8736_v16 = vpop.eup %8735 }
0x3175   : > { %v6954_v17 = vmul.f32 %v8736_v16, %v6951_v15 }
0x3177   : > { %v6961_v22 = vadd.f32 %v7556_v19, %v6954_v17 }
0x3179   : > { %8312 = vmatmul.mubr.msk.f32.vlgmr.msra.gmra.mrb[80].mxu1 %vm779_vm3, %v6961_v22 }
0x324c   : > { %v7044_v29 = vpop.f32.mrb[80].mxu1 }
0x324d   : > { %v7045_v25 = vadd.f32 %v7557_v52, %v7044_v29  ;;  %v8313_v26 = vpop.f32.mrb[81].mxu1 }
0x324f   : > { %v7048_v27 = vmax.f32 %v7045_v25, 0.0 }
0x3251   : > { %8331 = vmatmul.mubr.msk.f32.vlgmr.msra.gmra.mrb[60].mxu0 %vm1798_vm7, %v7048_v27 }
0x3324   : > { %v7135_v30 = vpop.f32.mrb[60].mxu0 }
0x3325   : > { %v7136_v31 = vadd.f32 %v7567_v28, %v7135_v30  ;;  %v8332_v32 = vpop.f32.mrb[61].mxu0 }
0x3327   : > { %v7139_v34 = vadd.f32 %v7136_v31, %v6930_v20 }
0x3329   : > { %v7144_v21 = vsel %vm779_vm3, %v7139_v34, 0.0 }
0x332a   : > { %7145 = vadd.xlane.f32.xlu0 %v7144_v21 }
0x33b7   : > { %v7146_v33 = vpop.xlane.xlu0 %7145 }
0x33b8   : > { %v7147_v35 = vmul.f32 0.03125, %v7146_v33 }
0x33ba   : > { %v7148_v36 = vsub.f32 %v7139_v34, %v7147_v35 }
0x33bc   : > { %v7149_v38 = vmul.f32 %v7148_v36, %v7148_v36  ;;  %v7160_v43 = vmul.f32 %v7571_v42, %v7148_v36 }
0x33be   : > { %v7150_v39 = vsel %vm779_vm3, %v7149_v38, 0.0 }
0x33bf   : > { %7151 = vadd.xlane.f32.xlu0 %v7150_v39 }
0x344c   : > { %v7152_v37 = vpop.xlane.xlu0 %7151 }
0x344d   : > { %v7153_v40 = vmul.f32 0.03125, %v7152_v37 }
0x344f   : > { %v7161_v41 = vadd.f32 1e-06, %v7153_v40 }
0x3451   : > { %8737 = vrsqrt.f32 %v7161_v41 }
0x345b   : > { %v8738_v5 = vpop.eup %8737 }
0x345c   : > { %v7163_v2 = vmul.f32 %v8738_v5, %v7160_v43 }
0x345e   : > { %v7170_v45 = vadd.f32 %v7572_v44, %v7163_v2 }
0x3460   : > { %7171 = vst.msk [vmem:[%s581_s30] sm:$0xff] %vm779_vm3, %v7170_v45 }
0x3461   : > { %8864 = shalt.err (!%p8861_p0)
}
0x3462   : > { %s8865_s18 = scalar_lea.hbm %s10259_s4, 128  ;;  %s8869_s26 = scalar_lea.hbm %s10412_s2, 256 }
0x3463   : > { %p8866_p5 = scmp.ne.s32.totalorder %s10259_s4, %s8865_s18  ;;  %p8870_p10 = scmp.lt.u32.totalorder %s10259_s4, %s10412_s2 }
0x3464   : > { %p8871_p12 = scmp.lt.u32.totalorder %s8869_s26, %s8865_s18  ;;  %p8873_p2 = scmp.lt.u32.totalorder %s8865_s18, %s10259_s4 }
0x3465   : > { %p8867_p6 = pnand %p8866_p5, %p10413_p3 }
0x3466   : > { %p8872_p1 = por %p8871_p12, %p8870_p10 }
0x3467   : > { %p8868_p9 = pneg %p8867_p6 }
0x3468   : > { %p8874_p4 = por %p8873_p2, %p8872_p1 }
0x346a   : > { %p8875_p7 = pnand %p8874_p4, %p8868_p9 }
0x346c   : > { %8878 = shalt.err (!%p8875_p7)
}
0x346d   : > { %8511 = dma.vmem_to_hbm [thread:$0]  (%p10413_p3), %s10261_s16, 128, %s10259_s4, %s7173_s5  }
0x346e PF: > { %s10414_s28 = sld [smem:[#allocation18_spill]]  ;;  %s10415_s10 = sld [smem:[#allocation15_spill]] }
0x346f   : > { %s10416_s27 = sld [smem:[#allocation22_spill]] }
0x3474   : > { %p8538_p8 = scmp.ge.s32.totalorder %s10414_s28, 2  ;;  %s7198_s19 = sand.u32 1, %s10415_s10  }
0x3475   : > { %p10417_p11 = scmp.ne.s32.totalorder %s10416_s27, 0  ;;  %s7199_s9 = scalar_lea.sflag [#allocation4], %s7198_s19 }
0x3477   : > { %p8527_p13 = pnand %p8538_p8, %p10417_p11 }
0x3479   : > { %8908 = dma.done.wait (!%p8527_p13), %s7199_s9, 128  }
0x347a   : > { %8910 = vsyncadd (!%p8527_p13), %s7199_s9, 4294967168  ;;  %s10418_s21 = sld [smem:[#allocation19_spill]]  ;;  %s10419_s18 = sld [smem:[#allocation16_spill]] }
0x347b   : > { %s10420_s19 = sld [smem:[#allocation17_spill]]  ;;  %s10421_s20 = sld [smem:[#allocation20_spill]] }
0x3480   : > { %p28_p0 = scmp.ge.s32.totalorder %s10418_s21, 4  }
0x3482   :  { %30 = sbr.rel (!%p28_p0) target bundleno = 16 (0x10), region = 197 }
0x3489   :  { %7204 = vsyncpa [#allocation3], 1 }
0x348a   :  { %7206 = vsyncpa [#allocation3 + $0x1], 1 }
0x348b   :  { %7207 = vsyncpa [#allocation6], 1 }
0x348c   :  { %7208 = vsyncpa [#allocation9], 1 }
0x348d   :  { %7209 = vsyncpa [#allocation4], 1 }
0x348e   :  { %7211 = vsyncpa [#allocation4 + $0x1], 1 }

</bundles_post_ra>
